<compile_context>
chip_gen: v6e
topology: v6e:2x2x1
jax: 0.10.0
libtpu: 0.0.40
codegen_flags: <defaults>
</compile_context>

<pallas_src>
import jax
import jax.numpy as jnp
from jax import lax
from jax.experimental import pallas as pl
from jax.experimental.pallas import tpu as pltpu

EPS = 1e-5  # nn.LayerNorm default eps


def attention_pool_kernel(x_ref, kq_ref, pooled_ref):
    """One grid step: TB batch elements, channels-first.

    x_ref:      (TB, C, N) block, native dtype (f32/bf16); upcast in-register.
    kq_ref:     (1, C, 1)  folded score vector  ln_w * (q @ Wk), f32.
    pooled_ref: (TB, C)    softmax-pooled normalized tokens, f32.
    """
    x = x_ref[...].astype(jnp.float32)                        # (TB, C, N)

    # --- LayerNorm statistics over the channel (sublane) axis, one pass -----
    # var = E[x^2] - mean^2 ; affine (ln_w, ln_b) is folded out of the kernel.
    mean = jnp.mean(x, axis=1, keepdims=True)                 # (TB, 1, N)
    ex2 = jnp.mean(x * x, axis=1, keepdims=True)              # (TB, 1, N)
    var = jnp.maximum(ex2 - mean * mean, 0.0)
    xhat = (x - mean) * lax.rsqrt(var + EPS)                  # (TB, C, N)

    # --- attention scores: s[b, n] = sum_c xhat[b, c, n] * kq'[c] -----------
    # (LN scale folded into kq'; LN bias and q.bk drop by softmax shift-inv.)
    s = jnp.sum(xhat * kq_ref[...], axis=1, keepdims=True)    # (TB, 1, N)

    # --- softmax over the N (lane) axis --------------------------------------
    s = s - jnp.max(s, axis=-1, keepdims=True)
    e = jnp.exp(s)                                            # (TB, 1, N)
    denom = jnp.sum(e, axis=-1, keepdims=True)                # (TB, 1, 1)
    p = e * pl.reciprocal(denom, approx=True)                 # EUP reciprocal

    # --- attention-weighted pooling on the MXU -------------------------------
    # Batched (1, N) @ (N, C) per batch element instead of an XLU lane reduce.
    # TODO(synk): on v6e/v7x with bf16 inputs the score/pooling multiplies
    # could stay in packed bf16 vregs; kept f32 here for v5e compatibility.
    pooled = jnp.einsum("bqn,bcn->bqc", p, xhat,
                        preferred_element_type=jnp.float32)   # (TB, 1, C)
    pooled_ref[...] = pooled[:, 0, :]                         # (TB, C) lane-dense


def _vmem_capacity_bytes():
    """Physical VMEM capacity (64 MiB on v7x, 128 MiB on v5e/v6e)."""
    try:
        return int(pltpu.get_tpu_info().vmem_capacity_bytes)
    except Exception:
        return 64 * 1024 * 1024  # conservative (v7x-sized) fallback


def _pick_block_batch(B, C, N, x_itemsize, block_budget):
    """Pick batch elements per grid step.

    TB must divide B and either be a multiple of 8 (sublane-aligned (TB, C)
    output block) or equal the whole batch.  Prefer >= 4 grid steps (>= 2 per
    v7x TensorCore) so block DMAs pipeline behind compute, then >= 2, then the
    largest block that fits the single-buffer x-block budget.
    """
    valid = [tb for tb in range(1, B + 1)
             if B % tb == 0 and (tb % 8 == 0 or tb == B)]
    fits = [tb for tb in valid if tb * C * N * x_itemsize <= block_budget]
    if not fits:
        # Best effort: smallest legal block (only exceeds the budget when B has
        # no multiple-of-8 divisor and a single batch element is already huge).
        return min(valid)
    for min_steps in (4, 2):
        multi = [tb for tb in fits if B // tb >= min_steps]
        if multi:
            return max(multi)
    return max(fits)


def attention_pool_2d(x_nchw, cls_q, params, *, block_b=None):
    B, C, H, W = x_nchw.shape
    N = H * W
    x_bcn = x_nchw.reshape(B, C, N)   # contiguous reshape -- no HBM transpose

    # ---- batch-independent projections, folded in plain JAX (f32) ----------
    ln_w = params["ln_w"].astype(jnp.float32)
    ln_b = params["ln_b"].astype(jnp.float32)
    q = (cls_q.reshape(1, C).astype(jnp.float32)
         @ params["q_w"].astype(jnp.float32).T
         + params["q_b"].astype(jnp.float32))                       # (1, C)
    wk = params["vk_w"][:C].astype(jnp.float32)                     # (C, C) out x in
    wv = params["vk_w"][C:].astype(jnp.float32)                     # (C, C) out x in
    bv = params["vk_b"][C:].astype(jnp.float32)                     # (C,)
    proj_w = params["proj_w"].astype(jnp.float32)
    proj_b = params["proj_b"].astype(jnp.float32)

    # Folded score vector (LN scale absorbed, constants dropped).
    kq = (ln_w * (q @ wk)).reshape(1, C, 1)                         # (1, C, 1)

    # Folded V + output projection, applied AFTER the kernel (LN affine and
    # value bias absorbed -- valid because softmax weights sum to 1).
    wcomb_t = (proj_w @ wv).T                                       # (C, C) in x out
    w_out = ln_w[:, None] * wcomb_t                                 # (C, C)
    b_out = ln_b @ wcomb_t + bv @ proj_w.T + proj_b                 # (C,)

    # ---- generation-aware tiling / VMEM policy ------------------------------
    vmem_limit = (_vmem_capacity_bytes() * 3) // 4
    if block_b is None:
        block_b = _pick_block_batch(B, C, N, x_bcn.dtype.itemsize,
                                    block_budget=vmem_limit // 10)
    assert B % block_b == 0, (B, block_b)

    pooled = pl.pallas_call(
        attention_pool_kernel,
        out_shape=jax.ShapeDtypeStruct((B, C), jnp.float32),
        grid_spec=pltpu.PrefetchScalarGridSpec(
            num_scalar_prefetch=0,
            grid=(B // block_b,),
            in_specs=[
                pl.BlockSpec((block_b, C, N), lambda i: (i, 0, 0)),  # x, native dtype
                pl.BlockSpec((1, C, 1), lambda i: (0, 0, 0)),        # folded score vec
            ],
            out_specs=pl.BlockSpec((block_b, C), lambda i: (i, 0)),
        ),
        compiler_params=pltpu.CompilerParams(
            dimension_semantics=("parallel",),
            vmem_limit_bytes=int(vmem_limit)),
    )(x_bcn, kq)

    # One MXU-shaped (B, C) @ (C, C) matmul in plain XLA (frees the kernel from
    # a resident double-buffered (C, C) weight and an M=8 MXU matmul).
    out = pooled @ w_out + b_out
    return out.astype(x_nchw.dtype)


def reference_forward(x_nchw, cls_q, params):
    """Pure-JAX reference matching the PyTorch module exactly."""
    B, C, H, W = x_nchw.shape
    x = jnp.transpose(x_nchw.reshape(B, C, H * W), (0, 2, 1))
    mean = x.mean(-1, keepdims=True)
    var = ((x - mean) ** 2).mean(-1, keepdims=True)
    xn = (x - mean) / jnp.sqrt(var + EPS) * params["ln_w"] + params["ln_b"]
    q = jnp.broadcast_to(cls_q, (B, 1, C)) @ params["q_w"].T + params["q_b"]
    kv = xn @ params["vk_w"].T + params["vk_b"]
    k, v = kv[..., :C], kv[..., C:]
    attn = q @ jnp.swapaxes(k, -1, -2)
    attn = jax.nn.softmax(attn, axis=-1)
    pooled = (attn @ v).reshape(B, C)
    return pooled @ params["proj_w"].T + params["proj_b"]


def init_params(key, ni):
    ks = jax.random.split(key, 6)
    scale = 0.02
    return {
        "ln_w": jnp.ones((ni,), jnp.float32),
        "ln_b": jnp.zeros((ni,), jnp.float32),
        "q_w": scale * jax.random.normal(ks[0], (ni, ni), jnp.float32),
        "q_b": scale * jax.random.normal(ks[1], (ni,), jnp.float32),
        "vk_w": scale * jax.random.normal(ks[2], (2 * ni, ni), jnp.float32),
        "vk_b": scale * jax.random.normal(ks[3], (2 * ni,), jnp.float32),
        "proj_w": scale * jax.random.normal(ks[4], (ni, ni), jnp.float32),
        "proj_b": scale * jax.random.normal(ks[5], (ni,), jnp.float32),
    }


if __name__ == "__main__":
    B, C, H, W = 32, 128, 8, 8          # ni = C = 128, N = H*W = 64
    key = jax.random.PRNGKey(0)
    kx, kc, kp = jax.random.split(key, 3)

    x = jax.random.normal(kx, (B, C, H, W), jnp.float32)   # NCHW, like PyTorch
    cls_q = jax.random.normal(kc, (1, 1, C), jnp.float32)  # learned cls query
    params = init_params(kp, C)

    out = attention_pool_2d(x, cls_q, params)
    out = jax.block_until_ready(out)

    ref = reference_forward(x, cls_q, params)
    assert out.shape == (B, C)
    err = jnp.max(jnp.abs(out - ref))
    assert jnp.allclose(out, ref, atol=2e-3, rtol=2e-3), f"max abs err = {err}"

    print("KERNEL_OK")
</pallas_src>

<mosaic_0001>
module attributes {stable_mosaic.version = 11 : i64} {
  func.func @attention_pool_kernel(%arg0: i32, %arg1: memref<8x128x64xf32, #tpu.memory_space<vmem>>, %arg2: memref<1x128x1xf32, #tpu.memory_space<vmem>>, %arg3: memref<8x128xf32, #tpu.memory_space<vmem>>) attributes {dimension_semantics = [#tpu.dimension_semantics<parallel>], iteration_bounds = array<i64: 4>, scalar_prefetch = 0 : i64, scratch_operands = 0 : i64, tpu.core_type = #tpu.core_type<tc>, window_params = [{transform_indices = @transform_0, window_bounds = array<i64: 8, 128, 64>}, {pipeline_mode = #tpu.pipeline_mode<synchronous>, transform_indices = @transform_1, window_bounds = array<i64: 1, 128, 1>}, {transform_indices = @transform_2, window_bounds = array<i64: 8, 128>}]} {
    %c0 = arith.constant 0 : index
    %c0_0 = arith.constant 0 : index
    %c0_1 = arith.constant 0 : index
    %0 = vector.load %arg1[%c0, %c0_0, %c0_1] : memref<8x128x64xf32, #tpu.memory_space<vmem>>, vector<8x128x64xf32>
    %cst = arith.constant dense<0.000000e+00> : vector<8x64xf32>
    %1 = vector.multi_reduction <add>, %0, %cst [1] : vector<8x128x64xf32> to vector<8x64xf32>
    %2 = vector.shape_cast %1 : vector<8x64xf32> to vector<8x1x64xf32>
    %cst_2 = arith.constant 1.280000e+02 : f32
    %3 = vector.broadcast %cst_2 : f32 to vector<8x1x64xf32>
    %4 = arith.divf %2, %3 : vector<8x1x64xf32>
    %5 = arith.mulf %0, %0 : vector<8x128x64xf32>
    %cst_3 = arith.constant dense<0.000000e+00> : vector<8x64xf32>
    %6 = vector.multi_reduction <add>, %5, %cst_3 [1] : vector<8x128x64xf32> to vector<8x64xf32>
    %7 = vector.shape_cast %6 : vector<8x64xf32> to vector<8x1x64xf32>
    %cst_4 = arith.constant 1.280000e+02 : f32
    %8 = vector.broadcast %cst_4 : f32 to vector<8x1x64xf32>
    %9 = arith.divf %7, %8 : vector<8x1x64xf32>
    %10 = arith.mulf %4, %4 : vector<8x1x64xf32>
    %11 = arith.subf %9, %10 : vector<8x1x64xf32>
    %cst_5 = arith.constant 0.000000e+00 : f32
    %12 = vector.broadcast %cst_5 : f32 to vector<8x1x64xf32>
    %13 = arith.maximumf %11, %12 : vector<8x1x64xf32>
    %14 = vector.broadcast %4 : vector<8x1x64xf32> to vector<8x128x64xf32>
    %15 = arith.subf %0, %14 : vector<8x128x64xf32>
    %cst_6 = arith.constant 9.99999974E-6 : f32
    %16 = vector.broadcast %cst_6 : f32 to vector<8x1x64xf32>
    %17 = arith.addf %13, %16 : vector<8x1x64xf32>
    %18 = math.rsqrt %17 : vector<8x1x64xf32>
    %19 = vector.broadcast %18 : vector<8x1x64xf32> to vector<8x128x64xf32>
    %20 = arith.mulf %15, %19 : vector<8x128x64xf32>
    %c0_7 = arith.constant 0 : index
    %c0_8 = arith.constant 0 : index
    %c0_9 = arith.constant 0 : index
    %21 = vector.load %arg2[%c0_7, %c0_8, %c0_9] : memref<1x128x1xf32, #tpu.memory_space<vmem>>, vector<1x128x1xf32>
    %22 = vector.broadcast %21 : vector<1x128x1xf32> to vector<8x128x64xf32>
    %23 = arith.mulf %20, %22 : vector<8x128x64xf32>
    %cst_10 = arith.constant dense<0.000000e+00> : vector<8x64xf32>
    %24 = vector.multi_reduction <add>, %23, %cst_10 [1] : vector<8x128x64xf32> to vector<8x64xf32>
    %25 = vector.shape_cast %24 : vector<8x64xf32> to vector<8x1x64xf32>
    %cst_11 = arith.constant dense<0xFF800000> : vector<8x1xf32>
    %26 = vector.multi_reduction <maximumf>, %25, %cst_11 [2] : vector<8x1x64xf32> to vector<8x1xf32>
    %27 = vector.shape_cast %26 : vector<8x1xf32> to vector<8x1x1xf32>
    %28 = vector.broadcast %27 : vector<8x1x1xf32> to vector<8x1x64xf32>
    %29 = arith.subf %25, %28 : vector<8x1x64xf32>
    %30 = math.exp %29 : vector<8x1x64xf32>
    %cst_12 = arith.constant dense<0.000000e+00> : vector<8x1xf32>
    %31 = vector.multi_reduction <add>, %30, %cst_12 [2] : vector<8x1x64xf32> to vector<8x1xf32>
    %32 = vector.shape_cast %31 : vector<8x1xf32> to vector<8x1x1xf32>
    %33 = tpu.reciprocal %32 {approx = true} : vector<8x1x1xf32> -> vector<8x1x1xf32>
    %34 = vector.broadcast %33 : vector<8x1x1xf32> to vector<8x1x64xf32>
    %35 = arith.mulf %30, %34 : vector<8x1x64xf32>
    "tpu.trace_start"() <{level = 10 : i32, message = "bqn,bcn->bqc"}> : () -> ()
    %cst_13 = arith.constant dense<0.000000e+00> : vector<8x1x128xf32>
    %36 = tpu.matmul %35, %20, %cst_13 {dimension_numbers = #tpu.dot_dimension_numbers<[2], [2], [1], [1], [0, 0, 0, 1, 1, 1], [0], [0]>} : vector<8x1x64xf32>, vector<8x128x64xf32>, vector<8x1x128xf32> -> vector<8x1x128xf32>
    "tpu.trace_stop"() : () -> ()
    %37 = vector.shape_cast %36 : vector<8x1x128xf32> to vector<8x128xf32>
    %c0_14 = arith.constant 0 : index
    %c0_15 = arith.constant 0 : index
    %38 = vector.load %arg3[%c0_14, %c0_15] : memref<8x128xf32, #tpu.memory_space<vmem>>, vector<8x128xf32>
    tpu.vector_store %arg3[%c0_14, %c0_15], %37 {strides = array<i32>} : memref<8x128xf32, #tpu.memory_space<vmem>>, vector<8x128xf32>,
    return
  }
  func.func @transform_0(%arg0: i32) -> (i32, i32, i32) {
    %c0_i32 = arith.constant 0 : i32
    %c0_i32_0 = arith.constant 0 : i32
    %c0_i32_1 = arith.constant 0 : i32
    return %arg0, %c0_i32, %c0_i32_0 : i32, i32, i32
  }
  func.func @transform_1(%arg0: i32) -> (i32, i32, i32) {
    %c0_i32 = arith.constant 0 : i32
    %c0_i32_0 = arith.constant 0 : i32
    %c0_i32_1 = arith.constant 0 : i32
    %c0_i32_2 = arith.constant 0 : i32
    return %c0_i32, %c0_i32_0, %c0_i32_1 : i32, i32, i32
  }
  func.func @transform_2(%arg0: i32) -> (i32, i32) {
    %c0_i32 = arith.constant 0 : i32
    %c0_i32_0 = arith.constant 0 : i32
    return %arg0, %c0_i32 : i32, i32
  }
}

</mosaic_0001>

<bundles_post_ra>
// kernel: tpu_custom_call.1
= control target key start
LH: loop header
LB: loop body
LE: loop exit
PB: predicated region body
PF: predicated region fallthrough
CT: control target
= control target key end

     0   :  { %7 = vsyncpa [#allocation3], 0  ;;  %s6964_s0 = inlined_call_operand.vmem [shape: f32[32,128,64], index: 0, kind: input, shape index: {}]   ;;  %s6965_s1 = inlined_call_operand.vmem [shape: f32[1,128,1], index: 1, kind: input, shape index: {}]   ;;  %s6966_s2 = inlined_call_operand.hbm [shape: f32[32,128], index: 2, kind: output, shape index: {}]  }
   0x1   :  { %9 = vsyncpa [#allocation3 + $0x1], 0  ;;  %s3741_s9 = smov 0   ;;  %s3743_s10 = smov 0  }
   0x2   :  { %s3745_s11 = smov 0   ;;  %s3747_s12 = smov 0  }
   0x3 LB: > { %s3762_s13 = sadd.s32 4294967295, %s3720_s12   ;;  %s2989_s14 = sadd.s32 4294967294, %s3720_s12   ;;  %s3720_s12 = sphi %s3747_s12, %s7819_s12   ;;  %s3716_s11 = sphi %s3745_s11, %s7818_s11   ;;  %s3712_s10 = sphi %s3743_s10, %s7817_s10   ;;  %s3708_s9 = sphi %s3741_s9, %s7816_s9  }
   0x4   : > { %s3766_s15 = sadd.s32 1, %s3720_s12   ;;  %s69_s16 = sadd.s32 1, %s3716_s11 }
   0x5   : > { %s66_s17 = ssub.s32 %s3720_s12, %s3766_s15  ;;  %p79_p0 = scmp.ne.s32.totalorder %s3716_s11, %s3712_s10 }
   0x6   : > { %p67_p1 = scmp.eq.s32.totalorder %s66_s17, 0  ;;  %p80_p2 = scmp.eq.s32.totalorder %s3762_s13, 3 }
   0x7   : > { %p85_p3 = scmp.ne.s32.totalorder %s3712_s10, %s3708_s9  ;;  %p86_p4 = scmp.eq.s32.totalorder %s2989_s14, 3 }
   0x8   : > { %s3777_s18 = scalar_select %p67_p1, %s3716_s11, %s69_s16  }
   0x9   : > { %p3779_p5 = por %p80_p2, %p79_p0  ;;  %p3783_p6 = por %p86_p4, %p85_p3 }
   0xa   : > { %p2992_p7 = scmp.ge.s32.totalorder %s3720_s12, 1  ;;  %p117_p8 = scmp.lt.s32.totalorder %s3720_s12, 5 }
   0xc   : > { %p118_p9 = pnand %p2992_p7, %p117_p8 }
   0xe   : > { %121 = sbr.rel (%p118_p9) target bundleno = 987 (0x3db), region = 28 }
  0x13   : > { %v1311_v0 = vld [vmem:[%s6965_s1 + $0x10] sm:$0xff]  ;;  %v1309_v1 = vld [vmem:[%s6965_s1] sm:$0xff]  ;;  %s2994_s25 = sshll.u32 %s3762_s13, 3  ;;  %v3722_v2 = vmov 0   ;;  %v1312_v3 = vld [vmem:[%s6965_s1 + $0x18] sm:$0xff]  ;;  %vm275_vm0 = vcmask 523264  }
  0x14   : > { %3597 = vset.pattern.permute.xlu1 %v3722_v2  ;;  %3596 = vset.pattern.permute.xlu0 %v3722_v2  ;;  %p141_p10 = scmp.lt.s32.totalorder %s2994_s25, 31  ;;  %v1310_v4 = vld [vmem:[%s6965_s1 + $0x8] sm:$0xff]  ;;  %v1313_v6 = vld [vmem:[%s6965_s1 + $0x20] sm:$0xff]  ;;  %v1316_v17 = vld [vmem:[%s6965_s1 + $0x38] sm:$0xff]  ;;  %vm3724_vm1 = vmmov 0   ;;  %vm2894_vm2 = vcmask 1041409  }
  0x15   : > { %1337 = vperm.xlu1 %3597, %v1311_v0   ;;  %1327 = vperm.xlu0 %3596, %v1309_v1   ;;  %v1314_v5 = vld [vmem:[%s6965_s1 + $0x28] sm:$0xff]  ;;  %v1315_v18 = vld [vmem:[%s6965_s1 + $0x30] sm:$0xff]  ;;  %v1317_v30 = vld [vmem:[%s6965_s1 + $0x40] sm:$0xff]  ;;  %vm2897_vm3 = vcmask 1042434   ;;  %vm2900_vm4 = vcmask 1043459   ;;  %vm2903_vm5 = vcmask 1044484  }
  0x16   : > { %s7821_s25 = smov (!%p141_p10, %s2994_s25), 31  ;;  %v1318_v29 = vld [vmem:[%s6965_s1 + $0x48] sm:$0xff]  ;;  %v1320_v49 = vld [vmem:[%s6965_s1 + $0x58] sm:$0xff]  ;;  %v1319_v54 = vld [vmem:[%s6965_s1 + $0x50] sm:$0xff]  ;;  %vm2906_vm6 = vcmask 1045509   ;;  %vm2909_vm7 = vcmask 1046534  }
  0x17   : > { %s3137_s30 = sshll.u32 %s7821_s25, 7  ;;  %s3134_s22 = sshll.u32 %s3762_s13, 7  ;;  %vm2912_vm8 = vcmask 1047559  }
  0x18   : > { %s3811_s14 = scalar_lea.vmem %s6964_s0, %s3137_s30  ;;  %s6929_s27 = scalar_lea.hbm %s6966_s2, %s3134_s22 }
  0x19   : > { %1342 = vperm.xlu1 %3597, %v1312_v3   ;;  %1332 = vperm.xlu0 %3596, %v1310_v4   ;;  %v3814_v7 = vld [vmem:[%s3811_s14 + $0x80] sm:$0xff]  ;;  %v3817_v8 = vld [vmem:[%s3811_s14 + $0x88] sm:$0xff]  ;;  %v3820_v9 = vld [vmem:[%s3811_s14 + $0x90] sm:$0xff]  ;;  %s3725_s13 = smov [#allocation2]  }
  0x1a   : > { %v3823_v10 = vld [vmem:[%s3811_s14 + $0x98] sm:$0xff]  ;;  %v313_v11 = vsel %vm275_vm0, %v3814_v7, 0.0  ;;  %v314_v12 = vsel %vm275_vm0, %v3817_v8, 0.0  ;;  %v316_v13 = vsel %vm275_vm0, %v3820_v9, 0.0  ;;  %v3832_v14 = vld [vmem:[%s3811_s14 + $0xa0] sm:$0xff]  ;;  %v3843_v19 = vld [vmem:[%s3811_s14 + $0xa8] sm:$0xff]  ;;  %v597_v21 = vmul.f32 %v3814_v7, %v3814_v7 }
  0x1b   : > { %v315_v15 = vadd.f32 %v314_v12, %v313_v11  ;;  %v318_v16 = vsel %vm275_vm0, %v3823_v10, 0.0  ;;  %v320_v22 = vsel %vm275_vm0, %v3832_v14, 0.0  ;;  %v3850_v23 = vld [vmem:[%s3811_s14 + $0xb0] sm:$0xff]  ;;  %v3853_v24 = vld [vmem:[%s3811_s14 + $0xb8] sm:$0xff]  ;;  %v3856_v25 = vld [vmem:[%s3811_s14 + $0xc0] sm:$0xff]  ;;  %v598_v27 = vmul.f32 %v3817_v8, %v3817_v8  ;;  %s3664_s30 = sshll.u32 %s3725_s13, 4  ;;  %s3665_s30 = int_to_ptr.vmem [resolvable:$false] %s3664_s30 }
  0x1c   : > { %v599_v28 = vmul.f32 %v3820_v9, %v3820_v9  ;;  %v322_v31 = vsel %vm275_vm0, %v3843_v19, 0.0  ;;  %v3871_v32 = vld [vmem:[%s3811_s14 + $0xc8] sm:$0xff]  ;;  %v3874_v33 = vld [vmem:[%s3811_s14 + $0xd0] sm:$0xff]  ;;  %v3877_v34 = vld [vmem:[%s3811_s14 + $0xd8] sm:$0xff]  ;;  %v600_v36 = vmul.f32 %v3823_v10, %v3823_v10  ;;  %v746_v37 = vsel %vm275_vm0, %v597_v21, 0.0  ;;  %s3666_s3 = scalar_lea.vmem %s3665_s30, 256 }
  0x1d   : > { %1352 = vperm.xlu1 %3597, %v1314_v5   ;;  %1347 = vperm.xlu0 %3596, %v1313_v6   ;;  %v317_v20 = vadd.f32 %v316_v13, %v315_v15  ;;  %v3883_v38 = vld [vmem:[%s3811_s14 + $0xe0] sm:$0xff]  ;;  %v324_v39 = vsel %vm275_vm0, %v3850_v23, 0.0  ;;  %v326_v40 = vsel %vm275_vm0, %v3853_v24, 0.0  ;;  %v328_v41 = vsel %vm275_vm0, %v3856_v25, 0.0  ;;  %v3892_v42 = vld [vmem:[%s3811_s14 + $0xe8] sm:$0xff]  ;;  %v3895_v43 = vld [vmem:[%s3811_s14 + $0xf0] sm:$0xff] }
  0x1e   : > { %v3898_v44 = vld [vmem:[%s3811_s14 + $0xf8] sm:$0xff]  ;;  %v601_v46 = vmul.f32 %v3832_v14, %v3832_v14  ;;  %v747_v47 = vsel %vm275_vm0, %v598_v27, 0.0  ;;  %v749_v48 = vsel %vm275_vm0, %v599_v28, 0.0  ;;  %v330_v50 = vsel %vm275_vm0, %v3871_v32, 0.0  ;;  %v3924_v59 = vld [vmem:[%s3811_s14] sm:$0xff]  ;;  %v3927_v60 = vld [vmem:[%s3811_s14 + $0x8] sm:$0xff] }
  0x1f   : > { %v319_v26 = vadd.f32 %v318_v16, %v317_v20  ;;  %v332_v51 = vsel %vm275_vm0, %v3874_v33, 0.0  ;;  %v334_v52 = vsel %vm275_vm0, %v3877_v34, 0.0  ;;  %v748_v53 = vadd.f32 %v747_v47, %v746_v37  ;;  %7249 = vst [vmem:[#allocation5_spill] sm:$0xff] %v3924_v59  ;;  %7250 = vst [vmem:[#allocation6_spill] sm:$0xff] %v3927_v60  ;;  %v3942_v1 = vld [vmem:[%s3811_s14 + $0x10] sm:$0xff]  ;;  %v3950_v6 = vld [vmem:[%s3811_s14 + $0x18] sm:$0xff] }
  0x20   : > { %v3918_v56 = vsel %vm275_vm0, %v3883_v38, 0.0  ;;  %v602_v57 = vmul.f32 %v3843_v19, %v3843_v19  ;;  %v751_v58 = vsel %vm275_vm0, %v600_v36, 0.0  ;;  %v3931_v61 = vsel %vm275_vm0, %v3892_v42, 0.0  ;;  %7251 = vst [vmem:[#allocation7_spill] sm:$0xff] %v3942_v1  ;;  %7252 = vst [vmem:[#allocation8_spill] sm:$0xff] %v3950_v6  ;;  %v1322_v16 = vld [vmem:[%s6965_s1 + $0x68] sm:$0xff] }
  0x21   : > { %1362 = vperm.xlu1 %3597, %v1316_v17   ;;  %1357 = vperm.xlu0 %3596, %v1315_v18   ;;  %v321_v35 = vadd.f32 %v320_v22, %v319_v26  ;;  %v3935_v62 = vsel %vm275_vm0, %v3895_v43, 0.0  ;;  %v3939_v63 = vsel %vm275_vm0, %v3898_v44, 0.0  ;;  %v750_v0 = vadd.f32 %v749_v48, %v748_v53  ;;  %v1321_v17 = vld [vmem:[%s6965_s1 + $0x60] sm:$0xff]  ;;  %v3980_v37 = vld [vmem:[%s3811_s14 + $0x28] sm:$0xff]  ;;  %v1324_v47 = vld [vmem:[%s6965_s1 + $0x78] sm:$0xff] }
  0x22   : > { %v603_v3 = vmul.f32 %v3850_v23, %v3850_v23  ;;  %v604_v4 = vmul.f32 %v3853_v24, %v3853_v24  ;;  %v753_v5 = vsel %vm275_vm0, %v601_v46, 0.0  ;;  %v605_v11 = vmul.f32 %v3856_v25, %v3856_v25  ;;  %v3966_v21 = vld [vmem:[%s3811_s14 + $0x20] sm:$0xff]  ;;  %7254 = vst [vmem:[#allocation10_spill] sm:$0xff] %v3980_v37  ;;  %v1323_v48 = vld [vmem:[%s6965_s1 + $0x70] sm:$0xff] }
  0x23   : > { %v323_v45 = vadd.f32 %v322_v31, %v321_v35  ;;  %v752_v12 = vadd.f32 %v751_v58, %v750_v0  ;;  %v276_v13 = vsel %vm275_vm0, %v3924_v59, 0.0  ;;  %v277_v15 = vsel %vm275_vm0, %v3927_v60, 0.0  ;;  %7253 = vst [vmem:[#allocation9_spill] sm:$0xff] %v3966_v21 }
  0x24   : > { %v755_v20 = vsel %vm275_vm0, %v602_v57, 0.0  ;;  %v278_v22 = vadd.f32 %v277_v15, %v276_v13  ;;  %v279_v26 = vsel %vm275_vm0, %v3942_v1, 0.0  ;;  %v606_v27 = vmul.f32 %v3871_v32, %v3871_v32 }
  0x25   : > { %1372 = vperm.xlu1 %3597, %v1318_v29   ;;  %1367 = vperm.xlu0 %3596, %v1317_v30   ;;  %v325_v55 = vadd.f32 %v324_v39, %v323_v45  ;;  %v607_v28 = vmul.f32 %v3874_v33, %v3874_v33  ;;  %v754_v29 = vadd.f32 %v753_v5, %v752_v12  ;;  %v281_v30 = vsel %vm275_vm0, %v3950_v6, 0.0  ;;  %v4007_v5 = vld [vmem:[%s3811_s14 + $0x38] sm:$0xff] }
  0x26   : > { %v608_v35 = vmul.f32 %v3877_v34, %v3877_v34  ;;  %v757_v36 = vsel %vm275_vm0, %v603_v3, 0.0  ;;  %v280_v39 = vadd.f32 %v279_v26, %v278_v22  ;;  %v283_v46 = vsel %vm275_vm0, %v3966_v21, 0.0  ;;  %7256 = vst [vmem:[#allocation12_spill] sm:$0xff] %v4007_v5 }
  0x27   : > { %v327_v2 = vadd.f32 %v326_v40, %v325_v55  ;;  %v609_v40 = vmul.f32 %v3883_v38, %v3883_v38  ;;  %v756_v45 = vadd.f32 %v755_v20, %v754_v29  ;;  %v759_v53 = vsel %vm275_vm0, %v604_v4, 0.0 }
  0x28   : > { %v282_v55 = vadd.f32 %v281_v30, %v280_v39  ;;  %v612_v57 = vmul.f32 %v3898_v44, %v3898_v44  ;;  %v761_v0 = vsel %vm275_vm0, %v605_v11, 0.0  ;;  %v581_v4 = vmul.f32 %v3924_v59, %v3924_v59  ;;  %v4029_v30 = vld [vmem:[%s3811_s14 + $0x48] sm:$0xff] }
  0x29   : > { %1382 = vperm.xlu1 %3597, %v1320_v49   ;;  %1377 = vperm.xlu0 %3596, %v1319_v54   ;;  %v329_v18 = vadd.f32 %v328_v41, %v327_v2  ;;  %v610_v41 = vmul.f32 %v3892_v42, %v3892_v42  ;;  %v3998_v54 = vld [vmem:[%s3811_s14 + $0x30] sm:$0xff]  ;;  %v758_v58 = vadd.f32 %v757_v36, %v756_v45  ;;  %v285_v2 = vsel %vm275_vm0, %v3980_v37, 0.0 }
  0x2a   : > { %7255 = vst [vmem:[#allocation11_spill] sm:$0xff] %v3998_v54  ;;  %v284_v12 = vadd.f32 %v283_v46, %v282_v55  ;;  %v765_v15 = vsel %vm275_vm0, %v607_v28, 0.0  ;;  %v767_v11 = vsel %vm275_vm0, %v608_v35, 0.0  ;;  %v582_v22 = vmul.f32 %v3927_v60, %v3927_v60  ;;  %7258 = vst [vmem:[#allocation14_spill] sm:$0xff] %v4029_v30  ;;  %v4040_v46 = vld [vmem:[%s3811_s14 + $0x50] sm:$0xff]  ;;  %v4046_v55 = vld [vmem:[%s3811_s14 + $0x58] sm:$0xff] }
  0x2b   : > { %v331_v31 = vadd.f32 %v330_v50, %v329_v18  ;;  %v611_v50 = vmul.f32 %v3895_v43, %v3895_v43  ;;  %v760_v13 = vadd.f32 %v759_v53, %v758_v58  ;;  %v4018_v18 = vld [vmem:[%s3811_s14 + $0x40] sm:$0xff]  ;;  %v289_v28 = vsel %vm275_vm0, %v4007_v5, 0.0  ;;  %7259 = vst [vmem:[#allocation15_spill] sm:$0xff] %v4040_v46  ;;  %7260 = vst [vmem:[#allocation16_spill] sm:$0xff] %v4046_v55 }
  0x2c   : > { %7257 = vst [vmem:[#allocation13_spill] sm:$0xff] %v4018_v18  ;;  %v286_v20 = vadd.f32 %v285_v2, %v284_v12  ;;  %v583_v29 = vmul.f32 %v3942_v1, %v3942_v1  ;;  %v584_v35 = vmul.f32 %v3950_v6, %v3950_v6  ;;  %v709_v36 = vsel %vm275_vm0, %v581_v4, 0.0  ;;  %v4056_v2 = vld [vmem:[%s3811_s14 + $0x68] sm:$0xff] }
  0x2d   : > { %1392 = vperm.xlu1 %3597, %v1322_v16   ;;  %1387 = vperm.xlu0 %3596, %v1321_v17   ;;  %v333_v49 = vadd.f32 %v332_v51, %v331_v31  ;;  %v763_v51 = vsel %vm275_vm0, %v606_v27, 0.0  ;;  %v287_v16 = vsel %vm275_vm0, %v3998_v54, 0.0  ;;  %v769_v17 = vsel %vm275_vm0, %v609_v40, 0.0  ;;  %7262 = vst [vmem:[#allocation18_spill] sm:$0xff] %v4056_v2 }
  0x2e   : > { %v762_v26 = vadd.f32 %v761_v0, %v760_v13  ;;  %v771_v27 = vsel %vm275_vm0, %v610_v41, 0.0  ;;  %v288_v31 = vadd.f32 %v287_v16, %v286_v20  ;;  %v773_v40 = vsel %vm275_vm0, %v611_v50, 0.0 }
  0x2f   : > { %v335_v3 = vadd.f32 %v334_v52, %v333_v49  ;;  %v775_v41 = vsel %vm275_vm0, %v612_v57, 0.0  ;;  %v291_v45 = vsel %vm275_vm0, %v4018_v18, 0.0  ;;  %v710_v49 = vsel %vm275_vm0, %v582_v22, 0.0 }
  0x30   : > { %v764_v39 = vadd.f32 %v763_v51, %v762_v26  ;;  %v293_v50 = vsel %vm275_vm0, %v4029_v30, 0.0  ;;  %v711_v57 = vadd.f32 %v710_v49, %v709_v36  ;;  %v712_v58 = vsel %vm275_vm0, %v583_v29, 0.0 }
  0x31   : > { %1402 = vperm.xlu1 %3597, %v1324_v47   ;;  %1397 = vperm.xlu0 %3596, %v1323_v48   ;;  %v337_v52 = vadd.f32 %v3918_v56, %v335_v3  ;;  %v290_v47 = vadd.f32 %v289_v28, %v288_v31  ;;  %v585_v48 = vmul.f32 %v3966_v21, %v3966_v21  ;;  %v714_v12 = vsel %vm275_vm0, %v584_v35, 0.0  ;;  %v4076_v31 = vld [vmem:[%s3811_s14 + $0x108] sm:$0xff] }
  0x32   : > { %v766_v53 = vadd.f32 %v765_v15, %v764_v39  ;;  %v586_v51 = vmul.f32 %v3980_v37, %v3980_v37  ;;  %v295_v13 = vsel %vm275_vm0, %v4040_v46, 0.0  ;;  %v587_v15 = vmul.f32 %v3998_v54, %v3998_v54  ;;  %7264 = vst [vmem:[#allocation20_spill] sm:$0xff] %v4076_v31 }
  0x33   : > { %v339_v56 = vadd.f32 %v3931_v61, %v337_v52  ;;  %v292_v3 = vadd.f32 %v291_v45, %v290_v47  ;;  %v297_v20 = vsel %vm275_vm0, %v4046_v55, 0.0  ;;  %v716_v22 = vsel %vm275_vm0, %v585_v48, 0.0  ;;  %v4082_v45 = vld [vmem:[%s3811_s14 + $0x110] sm:$0xff] }
  0x34   : > { %v768_v4 = vadd.f32 %v767_v11, %v766_v53  ;;  %v301_v28 = vsel %vm275_vm0, %v4056_v2, 0.0  ;;  %v588_v39 = vmul.f32 %v4007_v5, %v4007_v5  ;;  %7265 = vst [vmem:[#allocation21_spill] sm:$0xff] %v4082_v45  ;;  %v4085_v47 = vld [vmem:[%s3811_s14 + $0x70] sm:$0xff]  ;;  %v589_v48 = vmul.f32 %v4018_v18, %v4018_v18 }
  0x35   : > { %v341_v61 = vadd.f32 %v3935_v62, %v339_v56  ;;  %v4053_v62 = vld [vmem:[%s3811_s14 + $0x60] sm:$0xff]  ;;  %v294_v52 = vadd.f32 %v293_v50, %v292_v3  ;;  %7266 = vst [vmem:[#allocation22_spill] sm:$0xff] %v4085_v47  ;;  %v720_v53 = vsel %vm275_vm0, %v587_v15, 0.0  ;;  %v4091_v50 = vld [vmem:[%s3811_s14 + $0x118] sm:$0xff]  ;;  %v351_v3 = vsel %vm275_vm0, %v4076_v31, 0.0 }
  0x36   : > { %7261 = vst [vmem:[#allocation17_spill] sm:$0xff] %v4053_v62  ;;  %v770_v26 = vadd.f32 %v769_v17, %v768_v4  ;;  %v299_v11 = vsel %vm275_vm0, %v4053_v62, 0.0  ;;  %v4073_v56 = vld [vmem:[%s3811_s14 + $0x100] sm:$0xff]  ;;  %v718_v17 = vsel %vm275_vm0, %v586_v51, 0.0  ;;  %7267 = vst [vmem:[#allocation23_spill] sm:$0xff] %v4091_v50 }
  0x37   : > { %v343_v0 = vadd.f32 %v3939_v63, %v341_v61  ;;  %v713_v63 = vadd.f32 %v712_v58, %v711_v57  ;;  %7263 = vst [vmem:[#allocation19_spill] sm:$0xff] %v4073_v56  ;;  %v296_v36 = vadd.f32 %v295_v13, %v294_v52  ;;  %v353_v13 = vsel %vm275_vm0, %v4082_v45, 0.0 }
  0x38   : > { %v772_v61 = vadd.f32 %v771_v27, %v770_v26  ;;  %v355_v52 = vsel %vm275_vm0, %v4091_v50, 0.0 }
  0x39   : > { %v344_v16 = vrot.slane %v343_v0, 4  ;;  %v715_v29 = vadd.f32 %v714_v12, %v713_v63  ;;  %v298_v58 = vadd.f32 %v297_v20, %v296_v36  ;;  %v4098_v12 = vld [vmem:[%s3811_s14 + $0x120] sm:$0xff]  ;;  %v303_v63 = vsel %vm275_vm0, %v4085_v47, 0.0 }
  0x3a   : > { %v774_v27 = vadd.f32 %v773_v40, %v772_v61  ;;  %7268 = vst [vmem:[#allocation24_spill] sm:$0xff] %v4098_v12  ;;  %v4108_v40 = vld [vmem:[%s3811_s14 + $0x78] sm:$0xff]  ;;  %v357_v61 = vsel %vm275_vm0, %v4098_v12, 0.0 }
  0x3b   : > { %v345_v35 = vadd.f32 %v344_v16, %v343_v0  ;;  %v717_v49 = vadd.f32 %v716_v22, %v715_v29  ;;  %v350_v0 = vsel %vm275_vm0, %v4073_v56, 0.0  ;;  %v300_v15 = vadd.f32 %v299_v11, %v298_v58  ;;  %7269 = vst [vmem:[#allocation25_spill] sm:$0xff] %v4108_v40  ;;  %v4116_v58 = vld [vmem:[%s3811_s14 + $0x128] sm:$0xff] }
  0x3c   : > { %v352_v4 = vadd.f32 %v351_v3, %v350_v0  ;;  %v722_v16 = vsel %vm275_vm0, %v588_v39, 0.0  ;;  %v776_v22 = vadd.f32 %v775_v41, %v774_v27  ;;  %v724_v11 = vsel %vm275_vm0, %v589_v48, 0.0  ;;  %7270 = vst [vmem:[#allocation26_spill] sm:$0xff] %v4116_v58 }
  0x3d   : > { %v346_v57 = vrot.slane %v345_v35, 2  ;;  %v719_v51 = vadd.f32 %v718_v17, %v717_v49  ;;  %v302_v36 = vadd.f32 %v301_v28, %v300_v15  ;;  %v590_v17 = vmul.f32 %v4029_v30, %v4029_v30 }
  0x3e   : > { %v354_v29 = vadd.f32 %v353_v13, %v352_v4  ;;  %v777_v39 = vrot.slane %v776_v22, 4  ;;  %v591_v48 = vmul.f32 %v4040_v46, %v4040_v46  ;;  %v4126_v13 = vld [vmem:[%s3811_s14 + $0x130] sm:$0xff] }
  0x3f   : > { %v347_v20 = vadd.f32 %v346_v57, %v345_v35  ;;  %v721_v26 = vadd.f32 %v720_v53, %v719_v51  ;;  %v304_v41 = vadd.f32 %v303_v63, %v302_v36  ;;  %v305_v53 = vsel %vm275_vm0, %v4108_v40, 0.0  ;;  %7271 = vst [vmem:[#allocation27_spill] sm:$0xff] %v4126_v13 }
  0x40   : > { %v356_v35 = vadd.f32 %v355_v52, %v354_v29  ;;  %v778_v57 = vadd.f32 %v777_v39, %v776_v22  ;;  %v726_v27 = vsel %vm275_vm0, %v590_v17, 0.0  ;;  %v359_v51 = vsel %vm275_vm0, %v4116_v58, 0.0 }
  0x41   : > { %v723_v49 = vadd.f32 %v722_v16, %v721_v26  ;;  %v348_v28 = vrot.slane %v347_v20, 1  ;;  %v306_v15 = vadd.f32 %v305_v53, %v304_v41  ;;  %v592_v63 = vmul.f32 %v4046_v55, %v4046_v55  ;;  %v4131_v26 = vld [vmem:[%s3811_s14 + $0x138] sm:$0xff] }
  0x42   : > { %v358_v3 = vadd.f32 %v357_v61, %v356_v35  ;;  %v779_v4 = vrot.slane %v778_v57, 2  ;;  %7272 = vst [vmem:[#allocation28_spill] sm:$0xff] %v4131_v26  ;;  %v593_v36 = vmul.f32 %v4053_v62, %v4053_v62  ;;  %v728_v17 = vsel %vm275_vm0, %v591_v48, 0.0 }
  0x43   : > { %v725_v0 = vadd.f32 %v724_v11, %v723_v49  ;;  %v349_v16 = vadd.f32 %v348_v28, %v347_v20  ;;  %v361_v11 = vsel %vm275_vm0, %v4126_v13, 0.0  ;;  %v594_v39 = vmul.f32 %v4056_v2, %v4056_v2  ;;  %v4141_v20 = vld [vmem:[%s3811_s14 + $0x140] sm:$0xff] }
  0x44   : > { %v780_v52 = vadd.f32 %v779_v4, %v778_v57  ;;  %v360_v29 = vadd.f32 %v359_v51, %v358_v3  ;;  %7273 = vst [vmem:[#allocation29_spill] sm:$0xff] %v4141_v20  ;;  %v307_v49 = vrot.slane %v306_v15, 4  ;;  %v595_v35 = vmul.f32 %v4085_v47, %v4085_v47  ;;  %v4151_v3 = vld [vmem:[%s3811_s14 + $0x148] sm:$0xff] }
  0x45   : > { %v727_v22 = vadd.f32 %v726_v27, %v725_v0  ;;  %v730_v41 = vsel %vm275_vm0, %v592_v63, 0.0  ;;  %v363_v53 = vsel %vm275_vm0, %v4131_v26, 0.0  ;;  %v4148_v28 = vmul.f32 0.0078125, %v349_v16  ;;  %7274 = vst [vmem:[#allocation30_spill] sm:$0xff] %v4151_v3  ;;  %v4159_v16 = vld [vmem:[%s3811_s14 + $0x150] sm:$0xff] }
  0x46   : > { %v781_v61 = vrot.slane %v780_v52, 1  ;;  %v362_v48 = vadd.f32 %v361_v11, %v360_v29  ;;  %v308_v27 = vadd.f32 %v307_v49, %v306_v15  ;;  %v732_v51 = vsel %vm275_vm0, %v593_v36, 0.0  ;;  %7275 = vst [vmem:[#allocation31_spill] sm:$0xff] %v4159_v16  ;;  %v4164_v29 = vld [vmem:[%s3811_s14 + $0x158] sm:$0xff]  ;;  %v4171_v49 = vld [vmem:[%s3811_s14 + $0x160] sm:$0xff] }
  0x47   : > { %v729_v0 = vadd.f32 %v728_v17, %v727_v22  ;;  %v365_v4 = vsel %vm275_vm0, %v4141_v20, 0.0  ;;  %v596_v63 = vmul.f32 %v4108_v40, %v4108_v40  ;;  %v734_v22 = vsel %vm275_vm0, %v594_v39, 0.0  ;;  %7276 = vst [vmem:[#allocation32_spill] sm:$0xff] %v4164_v29  ;;  %7277 = vst [vmem:[#allocation33_spill] sm:$0xff] %v4171_v49 }
  0x48   : > { %v782_v57 = vadd.f32 %v781_v61, %v780_v52  ;;  %v364_v52 = vadd.f32 %v363_v53, %v362_v48  ;;  %v736_v17 = vsel %vm275_vm0, %v595_v35, 0.0  ;;  %v367_v15 = vsel %vm275_vm0, %v4151_v3, 0.0 }
  0x49   : > { %v731_v47 = vadd.f32 %v730_v41, %v729_v0  ;;  %v1014_v11 = vmul.f32 %v4148_v28, %v4148_v28  ;;  %v4174_v41 = vld [vmem:[%s3811_s14 + $0x168] sm:$0xff]  ;;  %v4177_v0 = vld [vmem:[%s3811_s14 + $0x170] sm:$0xff]  ;;  %v309_v39 = vrot.slane %v308_v27, 2  ;;  %v369_v35 = vsel %vm275_vm0, %v4159_v16, 0.0 }
  0x4a   : > { %v1006_v36 = vmul.f32 0.0078125, %v782_v57  ;;  %7278 = vst [vmem:[#allocation34_spill] sm:$0xff] %v4174_v41  ;;  %7279 = vst [vmem:[#allocation35_spill] sm:$0xff] %v4177_v0  ;;  %v366_v53 = vadd.f32 %v365_v4, %v364_v52  ;;  %v613_v48 = vmul.f32 %v4073_v56, %v4073_v56  ;;  %v614_v57 = vmul.f32 %v4076_v31, %v4076_v31 }
  0x4b   : > { %v733_v61 = vadd.f32 %v732_v51, %v731_v47  ;;  %v738_v47 = vsel %vm275_vm0, %v596_v63, 0.0  ;;  %v371_v2 = vsel %vm275_vm0, %v4164_v29, 0.0  ;;  %v373_v4 = vsel %vm275_vm0, %v4171_v49, 0.0 }
  0x4c   : > { %v368_v51 = vadd.f32 %v367_v15, %v366_v53  ;;  %v375_v52 = vsel %vm275_vm0, %v4174_v41, 0.0  ;;  %v377_v62 = vsel %vm275_vm0, %v4177_v0, 0.0  ;;  %v615_v56 = vmul.f32 %v4082_v45, %v4082_v45 }
  0x4d   : > { %v735_v40 = vadd.f32 %v734_v22, %v733_v61  ;;  %v1022_v31 = vsub.f32 %v1006_v36, %v1014_v11  ;;  %v310_v53 = vadd.f32 %v309_v39, %v308_v27  ;;  %v783_v55 = vsel %vm275_vm0, %v613_v48, 0.0  ;;  %v4245_v39 = vld [vmem:[%s3811_s14 + $0x180] sm:$0xff]  ;;  %v4282_v61 = vld [vmem:[%s3811_s14 + $0x198] sm:$0xff] }
  0x4e   : > { %v370_v15 = vadd.f32 %v369_v35, %v368_v51  ;;  %v784_v46 = vsel %vm275_vm0, %v614_v57, 0.0  ;;  %v786_v27 = vsel %vm275_vm0, %v615_v56, 0.0  ;;  %v617_v57 = vmul.f32 %v4098_v12, %v4098_v12  ;;  %7281 = vst [vmem:[#allocation37_spill] sm:$0xff] %v4245_v39  ;;  %7284 = vst [vmem:[#allocation40_spill] sm:$0xff] %v4282_v61  ;;  %v4668_v12 = vld [vmem:[%s3811_s14 + $0x2a0] sm:$0xff] }
  0x4f   : > { %v737_v22 = vadd.f32 %v736_v17, %v735_v40  ;;  %v785_v45 = vadd.f32 %v784_v46, %v783_v55  ;;  %v616_v17 = vmul.f32 %v4091_v50, %v4091_v50  ;;  %v1030_v11 = vmax.f32 %v1022_v31, 0.0  ;;  %v4270_v40 = vld [vmem:[%s3811_s14 + $0x190] sm:$0xff]  ;;  %7390 = vst [vmem:[#allocation71_spill] sm:$0xff] %v4668_v12  ;;  %v4703_v50 = vld [vmem:[%s3811_s14 + $0x2c8] sm:$0xff] }
  0x50   : > { %v372_v5 = vadd.f32 %v371_v2, %v370_v15  ;;  %v311_v35 = vrot.slane %v310_v53, 1  ;;  %v618_v15 = vmul.f32 %v4116_v58, %v4116_v58  ;;  %v625_v31 = vmul.f32 %v4171_v49, %v4171_v49  ;;  %7283 = vst [vmem:[#allocation39_spill] sm:$0xff] %v4270_v40  ;;  %v4647_v58 = vld [vmem:[%s3811_s14 + $0x290] sm:$0xff]  ;;  %7395 = vst [vmem:[#allocation76_spill] sm:$0xff] %v4703_v50 }
  0x51   : > { %v739_v18 = vadd.f32 %v738_v47, %v737_v22  ;;  %v787_v51 = vadd.f32 %v786_v27, %v785_v45  ;;  %v788_v55 = vsel %vm275_vm0, %v616_v17, 0.0  ;;  %v1166_v45 = vadd.f32 1e-05, %v1030_v11 }
  0x52   : > { %v374_v48 = vadd.f32 %v373_v4, %v372_v5  ;;  %v4230_v4 = vld [vmem:[%s3811_s14 + $0x178] sm:$0xff]  ;;  %v790_v5 = vsel %vm275_vm0, %v617_v57, 0.0  ;;  %v621_v11 = vmul.f32 %v4141_v20, %v4141_v20 }
  0x53   : > { %v740_v46 = vrot.slane %v739_v18, 4  ;;  %7280 = vst [vmem:[#allocation36_spill] sm:$0xff] %v4230_v4  ;;  %v379_v56 = vsel %vm275_vm0, %v4230_v4, 0.0  ;;  %v789_v2 = vadd.f32 %v788_v55, %v787_v51  ;;  %3598 = vrsqrt.f32 %v1166_v45 }
  0x54   : > { %v376_v22 = vadd.f32 %v375_v52, %v374_v48  ;;  %v619_v52 = vmul.f32 %v4126_v13, %v4126_v13  ;;  %v622_v55 = vmul.f32 %v4151_v3, %v4151_v3  ;;  %v792_v51 = vsel %vm275_vm0, %v618_v15, 0.0  ;;  %v7367_v3 = vld [vmem:[#allocation12_spill] sm:$0xff] }
  0x55   : > { %v741_v47 = vadd.f32 %v740_v46, %v739_v18  ;;  %v312_v46 = vadd.f32 %v311_v35, %v310_v53  ;;  %v620_v53 = vmul.f32 %v4131_v26, %v4131_v26  ;;  %v4254_v35 = vld [vmem:[%s3811_s14 + $0x188] sm:$0xff]  ;;  %v791_v57 = vadd.f32 %v790_v5, %v789_v2 }
  0x56   : > { %v378_v18 = vadd.f32 %v377_v62, %v376_v22  ;;  %7282 = vst [vmem:[#allocation38_spill] sm:$0xff] %v4254_v35  ;;  %v387_v22 = vsel %vm275_vm0, %v4245_v39, 0.0  ;;  %v624_v45 = vmul.f32 %v4164_v29, %v4164_v29  ;;  %v388_v2 = vsel %vm275_vm0, %v4254_v35, 0.0 }
  0x57   : > { %v742_v27 = vrot.slane %v741_v47, 2  ;;  %v627_v15 = vmul.f32 %v4177_v0, %v4177_v0  ;;  %v628_v5 = vmul.f32 %v4230_v4, %v4230_v4  ;;  %v793_v30 = vadd.f32 %v792_v51, %v791_v57  ;;  %v4301_v51 = vld [vmem:[%s3811_s14 + $0x1a0] sm:$0xff] }
  0x58   : > { %v380_v62 = vadd.f32 %v379_v56, %v378_v18  ;;  %v626_v56 = vmul.f32 %v4174_v41, %v4174_v41  ;;  %v794_v18 = vsel %vm275_vm0, %v619_v52, 0.0  ;;  %v389_v63 = vadd.f32 %v388_v2, %v387_v22  ;;  %7285 = vst [vmem:[#allocation41_spill] sm:$0xff] %v4301_v51  ;;  %v7293_v22 = vld [vmem:[#allocation18_spill] sm:$0xff] }
  0x59   : > { %v743_v17 = vadd.f32 %v742_v27, %v741_v47  ;;  %v4258_v47 = vmul.f32 0.0078125, %v312_v46  ;;  %v623_v27 = vmul.f32 %v4159_v16, %v4159_v16  ;;  %v390_v4 = vsel %vm275_vm0, %v4270_v40, 0.0  ;;  %v7364_v16 = vld [vmem:[#allocation11_spill] sm:$0xff] }
  0x5a   : > { %v381_v36 = vrot.slane %v380_v62, 4  ;;  %v796_v41 = vsel %vm275_vm0, %v620_v53, 0.0  ;;  %v795_v1 = vadd.f32 %v794_v18, %v793_v30  ;;  %v391_v21 = vadd.f32 %v390_v4, %v389_v63  ;;  %v7291_v30 = vld [vmem:[#allocation16_spill] sm:$0xff]  ;;  %v7292_v4 = vld [vmem:[#allocation17_spill] sm:$0xff] }
  0x5b   : > { %v744_v48 = vrot.slane %v743_v17, 1  ;;  %v1013_v49 = vmul.f32 %v4258_v47, %v4258_v47  ;;  %v798_v0 = vsel %vm275_vm0, %v621_v11, 0.0  ;;  %v394_v53 = vsel %vm275_vm0, %v4301_v51, 0.0 }
  0x5c   : > { %v382_v6 = vadd.f32 %v381_v36, %v380_v62  ;;  %v797_v62 = vadd.f32 %v796_v41, %v795_v1  ;;  %v800_v57 = vsel %vm275_vm0, %v622_v55, 0.0  ;;  %v7295_v1 = vld [vmem:[#allocation22_spill] sm:$0xff]  ;;  %v7296_v41 = vld [vmem:[#allocation25_spill] sm:$0xff]  ;;  %v802_v55 = vsel %vm275_vm0, %v623_v27, 0.0 }
  0x5d   : > { %v745_v46 = vadd.f32 %v744_v48, %v743_v17  ;;  %v392_v17 = vsel %vm275_vm0, %v4282_v61, 0.0  ;;  %v4311_v48 = vld [vmem:[%s3811_s14 + $0x1a8] sm:$0xff]  ;;  %v804_v18 = vsel %vm275_vm0, %v624_v45, 0.0 }
  0x5e   : > { %7287 = vst [vmem:[#allocation42_spill] sm:$0xff] %v4311_v48  ;;  %v393_v63 = vadd.f32 %v392_v17, %v391_v21  ;;  %v383_v37 = vrot.slane %v382_v6, 2  ;;  %v396_v11 = vsel %vm275_vm0, %v4311_v48, 0.0  ;;  %v799_v59 = vadd.f32 %v798_v0, %v797_v62 }
  0x5f   : > { %v1005_v52 = vmul.f32 0.0078125, %v745_v46  ;;  %v4332_v46 = vld [vmem:[%s3811_s14 + $0x1b0] sm:$0xff]  ;;  %v808_v0 = vsel %vm275_vm0, %v626_v56, 0.0  ;;  %v7297_v17 = vsub.f32 %v3814_v7, %v4148_v28 }
  0x60   : > { %7294 = vst [vmem:[#allocation16_spill] sm:$0xff] %v4332_v46  ;;  %v395_v2 = vadd.f32 %v394_v53, %v393_v63  ;;  %v3599_v36 = vpop.eup %3598  ;;  %v384_v60 = vadd.f32 %v383_v37, %v382_v6  ;;  %v810_v53 = vsel %vm275_vm0, %v627_v15, 0.0  ;;  %v812_v63 = vsel %vm275_vm0, %v628_v5, 0.0  ;;  %v4357_v6 = vld [vmem:[%s3811_s14 + $0x1b8] sm:$0xff] }
  0x61   : > { %v1021_v54 = vsub.f32 %v1005_v52, %v1013_v49  ;;  %v801_v49 = vadd.f32 %v800_v57, %v799_v59  ;;  %v806_v52 = vsel %vm275_vm0, %v625_v31, 0.0  ;;  %v398_v21 = vsel %vm275_vm0, %v4332_v46, 0.0  ;;  %7301 = vst [vmem:[#allocation22_spill] sm:$0xff] %v4357_v6 }
  0x62   : > { %v397_v62 = vadd.f32 %v396_v11, %v395_v2  ;;  %v4349_v27 = vmul.f32 %v3599_v36, %v7297_v17  ;;  %v7299_v59 = vsub.f32 %v3817_v8, %v4148_v28  ;;  %v7302_v37 = vsub.f32 %v3820_v9, %v4148_v28 }
  0x63   : > { %v1029_v45 = vmax.f32 %v1021_v54, 0.0  ;;  %v803_v56 = vadd.f32 %v802_v55, %v801_v49  ;;  %v7304_v5 = vsub.f32 %v3823_v10, %v4148_v28  ;;  %v7306_v8 = vsub.f32 %v3832_v14, %v4148_v28 }
  0x64   : > { %7298 = vst [vmem:[#allocation17_spill] sm:$0xff] %v4349_v27  ;;  %v4354_v31 = vmul.f32 %v3599_v36, %v7299_v59  ;;  %v4362_v15 = vmul.f32 %v3599_v36, %v7302_v37  ;;  %v7308_v54 = vsub.f32 %v3843_v19, %v4148_v28  ;;  %v7310_v9 = vsub.f32 %v3850_v23, %v4148_v28 }
  0x65   : > { %v4367_v7 = vmul.f32 %v3599_v36, %v7304_v5  ;;  %v4372_v57 = vmul.f32 %v3599_v36, %v7306_v8  ;;  %v7312_v10 = vsub.f32 %v3853_v24, %v4148_v28  ;;  %v805_v14 = vadd.f32 %v804_v18, %v803_v56  ;;  %v4412_v5 = vld [vmem:[%s3811_s14 + $0x1c0] sm:$0xff]  ;;  %v4415_v8 = vld [vmem:[%s3811_s14 + $0x1c8] sm:$0xff] }
  0x66   : > { %7300 = vst [vmem:[#allocation18_spill] sm:$0xff] %v4354_v31  ;;  %7303 = vst [vmem:[#allocation25_spill] sm:$0xff] %v4362_v15  ;;  %v4377_v2 = vmul.f32 %v3599_v36, %v7308_v54  ;;  %v4382_v11 = vmul.f32 %v3599_v36, %v7310_v9  ;;  %v399_v55 = vadd.f32 %v398_v21, %v397_v62  ;;  %v385_v37 = vrot.slane %v384_v60, 1 }
  0x67   : > { %7305 = vst [vmem:[#allocation43_spill] sm:$0xff] %v4367_v7  ;;  %7307 = vst [vmem:[#allocation44_spill] sm:$0xff] %v4372_v57  ;;  %v4387_v17 = vmul.f32 %v3599_v36, %v7312_v10  ;;  %v7314_v49 = vsub.f32 %v3856_v25, %v4148_v28  ;;  %v7316_v59 = vsub.f32 %v3871_v32, %v4148_v28  ;;  %v400_v24 = vsel %vm275_vm0, %v4357_v6, 0.0 }
  0x68   : > { %7309 = vst [vmem:[#allocation45_spill] sm:$0xff] %v4377_v2  ;;  %7311 = vst [vmem:[#allocation46_spill] sm:$0xff] %v4382_v11  ;;  %v7318_v18 = vsub.f32 %v3874_v33, %v4148_v28  ;;  %v7320_v25 = vsub.f32 %v3877_v34, %v4148_v28  ;;  %v1165_v32 = vadd.f32 1e-05, %v1029_v45  ;;  %v807_v56 = vadd.f32 %v806_v52, %v805_v14  ;;  %v4433_v52 = vld [vmem:[%s3811_s14 + $0x1d0] sm:$0xff]  ;;  %v4436_v14 = vld [vmem:[%s3811_s14 + $0x1d8] sm:$0xff] }
  0x69   : > { %7313 = vst [vmem:[#allocation47_spill] sm:$0xff] %v4387_v17  ;;  %v4392_v19 = vmul.f32 %v3599_v36, %v7314_v49  ;;  %v4397_v23 = vmul.f32 %v3599_v36, %v7316_v59  ;;  %7322 = vst [vmem:[#allocation52_spill] sm:$0xff] %v4412_v5  ;;  %v7324_v54 = vsub.f32 %v3883_v38, %v4148_v28 }
  0x6a   : > { %v4404_v21 = vmul.f32 %v3599_v36, %v7318_v18  ;;  %v4409_v62 = vmul.f32 %v3599_v36, %v7320_v25  ;;  %7323 = vst [vmem:[#allocation53_spill] sm:$0xff] %v4415_v8  ;;  %v7326_v9 = vsub.f32 %v3892_v42, %v4148_v28  ;;  %v7328_v34 = vsub.f32 %v3895_v43, %v4148_v28  ;;  %v4446_v18 = vld [vmem:[%s3811_s14 + $0x1e0] sm:$0xff]  ;;  %v4449_v25 = vld [vmem:[%s3811_s14 + $0x1e8] sm:$0xff]  ;;  %v4452_v43 = vld [vmem:[%s3811_s14 + $0x1f0] sm:$0xff] }
  0x6b   : > { %7315 = vst [vmem:[#allocation48_spill] sm:$0xff] %v4392_v19  ;;  %7317 = vst [vmem:[#allocation49_spill] sm:$0xff] %v4397_v23  ;;  %v4420_v33 = vmul.f32 %v3599_v36, %v7324_v54  ;;  %v629_v49 = vmul.f32 %v4245_v39, %v4245_v39  ;;  %v7332_v38 = vsub.f32 %v3898_v44, %v4148_v28  ;;  %v402_v39 = vsel %vm275_vm0, %v4412_v5, 0.0 }
  0x6c   : > { %7319 = vst [vmem:[#allocation50_spill] sm:$0xff] %v4404_v21  ;;  %7321 = vst [vmem:[#allocation51_spill] sm:$0xff] %v4409_v62  ;;  %v4425_v10 = vmul.f32 %v3599_v36, %v7326_v9  ;;  %v4430_v45 = vmul.f32 %v3599_v36, %v7328_v34  ;;  %v809_v42 = vadd.f32 %v808_v0, %v807_v56  ;;  %v404_v44 = vsel %vm275_vm0, %v4415_v8, 0.0 }
  0x6d   : > { %7325 = vst [vmem:[#allocation54_spill] sm:$0xff] %v4420_v33  ;;  %7330 = vst [vmem:[#allocation57_spill] sm:$0xff] %v4433_v52  ;;  %v4443_v59 = vmul.f32 %v3599_v36, %v7332_v38  ;;  %v401_v54 = vadd.f32 %v400_v24, %v399_v55  ;;  %v630_v9 = vmul.f32 %v4254_v35, %v4254_v35  ;;  %3600 = vrsqrt.f32 %v1165_v32 }
  0x6e   : > { %7327 = vst [vmem:[#allocation55_spill] sm:$0xff] %v4425_v10  ;;  %7329 = vst [vmem:[#allocation56_spill] sm:$0xff] %v4430_v45  ;;  %v386_v34 = vadd.f32 %v385_v37, %v384_v60  ;;  %v4457_v45 = vld [vmem:[%s3811_s14 + $0x1f8] sm:$0xff]  ;;  %v631_v28 = vmul.f32 %v4270_v40, %v4270_v40  ;;  %v811_v36 = vadd.f32 %v810_v53, %v809_v42  ;;  %v406_v0 = vsel %vm275_vm0, %v4433_v52, 0.0 }
  0x6f   : > { %7331 = vst [vmem:[#allocation58_spill] sm:$0xff] %v4436_v14  ;;  %7333 = vst [vmem:[#allocation59_spill] sm:$0xff] %v4443_v59  ;;  %v408_v55 = vsel %vm275_vm0, %v4436_v14, 0.0  ;;  %v4471_v60 = vsel %vm275_vm0, %v4446_v18, 0.0  ;;  %v4475_v37 = vsel %vm275_vm0, %v4449_v25, 0.0  ;;  %v4479_v24 = vsel %vm275_vm0, %v4452_v43, 0.0 }
  0x70   : > { %7334 = vst [vmem:[#allocation60_spill] sm:$0xff] %v4446_v18  ;;  %7335 = vst [vmem:[#allocation61_spill] sm:$0xff] %v4449_v25  ;;  %v820_v53 = vsel %vm275_vm0, %v629_v49, 0.0  ;;  %v813_v32 = vadd.f32 %v812_v63, %v811_v36  ;;  %v403_v56 = vadd.f32 %v402_v39, %v401_v54  ;;  %v4484_v38 = vsel %vm275_vm0, %v4457_v45, 0.0 }
  0x71   : > { %7336 = vst [vmem:[#allocation62_spill] sm:$0xff] %v4452_v43  ;;  %7337 = vst [vmem:[#allocation63_spill] sm:$0xff] %v4457_v45  ;;  %v821_v42 = vsel %vm275_vm0, %v630_v9, 0.0  ;;  %v4487_v40 = vmul.f32 0.0078125, %v386_v34  ;;  %v632_v35 = vmul.f32 %v4282_v61, %v4282_v61  ;;  %v823_v10 = vsel %vm275_vm0, %v631_v28, 0.0 }
  0x72   : > { %v822_v59 = vadd.f32 %v821_v42, %v820_v53  ;;  %v633_v33 = vmul.f32 %v4301_v51, %v4301_v51  ;;  %v634_v39 = vmul.f32 %v4311_v48, %v4311_v48  ;;  %v635_v63 = vmul.f32 %v4332_v46, %v4332_v46 }
  0x73   : > { %7338 = vst [vmem:[#allocation64_spill] sm:$0xff] %v4487_v40  ;;  %v636_v49 = vmul.f32 %v4357_v6, %v4357_v6  ;;  %v637_v54 = vmul.f32 %v4412_v5, %v4412_v5  ;;  %v638_v9 = vmul.f32 %v4415_v8, %v4415_v8  ;;  %v639_v34 = vmul.f32 %v4433_v52, %v4433_v52 }
  0x74   : > { %v4508_v28 = vmul.f32 %v4436_v14, %v4436_v14  ;;  %v814_v36 = vrot.slane %v813_v32, 4  ;;  %v405_v53 = vadd.f32 %v404_v44, %v403_v56  ;;  %v4512_v42 = vmul.f32 %v4446_v18, %v4446_v18 }
  0x75   : > { %v824_v6 = vadd.f32 %v823_v10, %v822_v59  ;;  %v4516_v5 = vmul.f32 %v4487_v40, %v4487_v40  ;;  %v4522_v52 = vmul.f32 %v4449_v25, %v4449_v25  ;;  %v825_v14 = vsel %vm275_vm0, %v632_v35, 0.0  ;;  %v7346_v59 = vld [vmem:[#allocation5_spill] sm:$0xff] }
  0x76   : > { %v827_v56 = vsel %vm275_vm0, %v633_v33, 0.0  ;;  %v815_v51 = vadd.f32 %v814_v36, %v813_v32  ;;  %v407_v61 = vadd.f32 %v406_v0, %v405_v53  ;;  %v829_v13 = vsel %vm275_vm0, %v634_v39, 0.0 }
  0x77   : > { %v826_v10 = vadd.f32 %v825_v14, %v824_v6  ;;  %v643_v39 = vmul.f32 %v4452_v43, %v4452_v43  ;;  %v831_v25 = vsel %vm275_vm0, %v635_v63, 0.0  ;;  %v644_v48 = vmul.f32 %v4457_v45, %v4457_v45  ;;  %v7355_v45 = vld [vmem:[#allocation8_spill] sm:$0xff] }
  0x78   : > { %v816_v35 = vrot.slane %v815_v51, 2  ;;  %v409_v32 = vadd.f32 %v408_v55, %v407_v61  ;;  %v835_v53 = vsel %vm275_vm0, %v637_v54, 0.0  ;;  %v4565_v14 = vsel %vm275_vm0, %v638_v9, 0.0  ;;  %v7349_v61 = vld [vmem:[#allocation6_spill] sm:$0xff]  ;;  %v4584_v54 = vld [vmem:[%s3811_s14 + $0x288] sm:$0xff]  ;;  %v7352_v9 = vld [vmem:[#allocation7_spill] sm:$0xff] }
  0x79   : > { %v828_v0 = vadd.f32 %v827_v56, %v826_v10  ;;  %v833_v10 = vsel %vm275_vm0, %v636_v49, 0.0  ;;  %v4568_v46 = vsel %vm275_vm0, %v639_v34, 0.0  ;;  %v7347_v43 = vsub.f32 %v7346_v59, %v4258_v47 }
  0x7a   : > { %v3601_v6 = vpop.eup %3600  ;;  %v817_v29 = vadd.f32 %v816_v35, %v815_v51  ;;  %v7350_v51 = vsub.f32 %v7349_v61, %v4258_v47  ;;  %v4581_v35 = vld [vmem:[%s3811_s14 + $0x280] sm:$0xff]  ;;  %v7353_v34 = vsub.f32 %v7352_v9, %v4258_v47  ;;  %v7358_v61 = vld [vmem:[#allocation9_spill] sm:$0xff]  ;;  %v7365_v9 = vsub.f32 %v7364_v16, %v4258_v47 }
  0x7b   : > { %v830_v56 = vadd.f32 %v829_v13, %v828_v0  ;;  %v4573_v63 = vmul.f32 %v3601_v6, %v7347_v43  ;;  %v7356_v43 = vsub.f32 %v7355_v45, %v4258_v47  ;;  %v7368_v45 = vsub.f32 %v7367_v3, %v4258_v47 }
  0x7c   : > { %v4578_v55 = vmul.f32 %v3601_v6, %v7350_v51  ;;  %v818_v13 = vrot.slane %v817_v29, 1  ;;  %v4589_v0 = vmul.f32 %v3601_v6, %v7353_v34  ;;  %v7359_v51 = vsub.f32 %v7358_v61, %v4258_v47 }
  0x7d   : > { %7348 = vst [vmem:[#allocation5_spill] sm:$0xff] %v4573_v63  ;;  %v832_v49 = vadd.f32 %v831_v25, %v830_v56  ;;  %v4594_v59 = vmul.f32 %v3601_v6, %v7356_v43  ;;  %v7361_v25 = vld [vmem:[#allocation10_spill] sm:$0xff]  ;;  %v4609_v34 = vmul.f32 %v3601_v6, %v7365_v9  ;;  %v4614_v43 = vmul.f32 %v3601_v6, %v7368_v45 }
  0x7e   : > { %7351 = vst [vmem:[#allocation6_spill] sm:$0xff] %v4578_v55  ;;  %7354 = vst [vmem:[#allocation7_spill] sm:$0xff] %v4589_v0  ;;  %v4599_v36 = vmul.f32 %v3601_v6, %v7359_v51  ;;  %v7362_v56 = vsub.f32 %v7361_v25, %v4258_v47  ;;  %v819_v20 = vadd.f32 %v818_v13, %v817_v29  ;;  %v7370_v51 = vld [vmem:[#allocation13_spill] sm:$0xff]  ;;  %v461_v16 = vsel %vm275_vm0, %v4581_v35, 0.0  ;;  %v7373_v9 = vld [vmem:[#allocation14_spill] sm:$0xff] }
  0x7f   : > { %7357 = vst [vmem:[#allocation8_spill] sm:$0xff] %v4594_v59  ;;  %7366 = vst [vmem:[#allocation11_spill] sm:$0xff] %v4609_v34  ;;  %v411_v61 = vadd.f32 %v4471_v60, %v409_v32  ;;  %v7371_v25 = vsub.f32 %v7370_v51, %v4258_v47  ;;  %v834_v26 = vadd.f32 %v833_v10, %v832_v49  ;;  %v462_v3 = vsel %vm275_vm0, %v4584_v54, 0.0  ;;  %v7376_v60 = vld [vmem:[#allocation15_spill] sm:$0xff] }
  0x80   : > { %7360 = vst [vmem:[#allocation9_spill] sm:$0xff] %v4599_v36  ;;  %v4604_v33 = vmul.f32 %v3601_v6, %v7362_v56  ;;  %7369 = vst [vmem:[#allocation12_spill] sm:$0xff] %v4614_v43  ;;  %v7374_v45 = vsub.f32 %v7373_v9, %v4258_v47  ;;  %v7377_v32 = vsub.f32 %v7376_v60, %v4258_v47 }
  0x81   : > { %v4620_v56 = vmul.f32 %v3601_v6, %v7371_v25  ;;  %v7379_v10 = vsub.f32 %v7291_v30, %v4258_v47  ;;  %v7381_v51 = vsub.f32 %v7292_v4, %v4258_v47  ;;  %v7383_v9 = vsub.f32 %v7293_v22, %v4258_v47  ;;  %v4671_v22 = vld [vmem:[%s3811_s14 + $0x2a8] sm:$0xff] }
  0x82   : > { %7363 = vst [vmem:[#allocation10_spill] sm:$0xff] %v4604_v33  ;;  %v4629_v29 = vmul.f32 %v3601_v6, %v7374_v45  ;;  %v4634_v13 = vmul.f32 %v3601_v6, %v7377_v32  ;;  %v7385_v60 = vsub.f32 %v7295_v1, %v4258_v47  ;;  %v7387_v30 = vsub.f32 %v7296_v41, %v4258_v47 }
  0x83   : > { %7372 = vst [vmem:[#allocation13_spill] sm:$0xff] %v4620_v56  ;;  %v4639_v49 = vmul.f32 %v3601_v6, %v7379_v10  ;;  %v4644_v25 = vmul.f32 %v3601_v6, %v7381_v51  ;;  %v4652_v45 = vmul.f32 %v3601_v6, %v7383_v9  ;;  %v1007_v4 = vmul.f32 0.0078125, %v819_v20  ;;  %v4665_v51 = vld [vmem:[%s3811_s14 + $0x298] sm:$0xff]  ;;  %7391 = vst [vmem:[#allocation72_spill] sm:$0xff] %v4671_v22  ;;  %v4683_v20 = vld [vmem:[%s3811_s14 + $0x2b0] sm:$0xff] }
  0x84   : > { %7375 = vst [vmem:[#allocation14_spill] sm:$0xff] %v4629_v29  ;;  %7378 = vst [vmem:[#allocation15_spill] sm:$0xff] %v4634_v13  ;;  %v4657_v32 = vmul.f32 %v3601_v6, %v7385_v60  ;;  %v4662_v10 = vmul.f32 %v3601_v6, %v7387_v30  ;;  %v413_v1 = vadd.f32 %v4475_v37, %v411_v61  ;;  %v4676_v9 = vsel %vm275_vm0, %v4508_v28, 0.0  ;;  %v4697_v28 = vld [vmem:[%s3811_s14 + $0x2b8] sm:$0xff] }
  0x85   : > { %7380 = vst [vmem:[#allocation65_spill] sm:$0xff] %v4639_v49  ;;  %7382 = vst [vmem:[#allocation66_spill] sm:$0xff] %v4644_v25  ;;  %v4680_v47 = vsel %vm275_vm0, %v4512_v42, 0.0  ;;  %v463_v41 = vadd.f32 %v462_v3, %v461_v16  ;;  %v836_v30 = vadd.f32 %v835_v53, %v834_v26  ;;  %v4691_v37 = vsel %vm275_vm0, %v4522_v52, 0.0  ;;  %v4700_v42 = vld [vmem:[%s3811_s14 + $0x2c0] sm:$0xff]  ;;  %v4711_v26 = vld [vmem:[%s3811_s14 + $0x2d0] sm:$0xff] }
  0x86   : > { %7384 = vst [vmem:[#allocation67_spill] sm:$0xff] %v4652_v45  ;;  %7386 = vst [vmem:[#allocation68_spill] sm:$0xff] %v4657_v32  ;;  %v4694_v61 = vsel %vm275_vm0, %v643_v39, 0.0  ;;  %v464_v16 = vsel %vm275_vm0, %v4647_v58, 0.0  ;;  %v4708_v3 = vsel %vm275_vm0, %v644_v48, 0.0  ;;  %v4714_v52 = vld [vmem:[%s3811_s14 + $0x2d8] sm:$0xff]  ;;  %v1023_v44 = vsub.f32 %v1007_v4, %v4516_v5 }
  0x87   : > { %7388 = vst [vmem:[#allocation69_spill] sm:$0xff] %v4662_v10  ;;  %7389 = vst [vmem:[#allocation70_spill] sm:$0xff] %v4665_v51  ;;  %v466_v53 = vsel %vm275_vm0, %v4665_v51, 0.0  ;;  %v4720_v39 = vsel %vm275_vm0, %v4668_v12, 0.0  ;;  %v4724_v18 = vsel %vm275_vm0, %v4671_v22, 0.0  ;;  %v4733_v40 = vsel %vm275_vm0, %v4683_v20, 0.0 }
  0x88   : > { %7394 = vst [vmem:[#allocation75_spill] sm:$0xff] %v4700_v42  ;;  %7396 = vst [vmem:[#allocation77_spill] sm:$0xff] %v4711_v26  ;;  %v415_v51 = vadd.f32 %v4479_v24, %v413_v1  ;;  %v4737_v12 = vld [vmem:[%s3811_s14 + $0x2e0] sm:$0xff]  ;;  %v465_v8 = vadd.f32 %v464_v16, %v463_v41  ;;  %v4741_v22 = vsel %vm275_vm0, %v4697_v28, 0.0  ;;  %v838_v4 = vadd.f32 %v4565_v14, %v836_v30 }
  0x89   : > { %7397 = vst [vmem:[#allocation78_spill] sm:$0xff] %v4714_v52  ;;  %7398 = vst [vmem:[#allocation79_spill] sm:$0xff] %v4737_v12  ;;  %v4754_v24 = vsel %vm275_vm0, %v4703_v50, 0.0  ;;  %v4758_v1 = vsel %vm275_vm0, %v4711_v26, 0.0  ;;  %v4762_v41 = vsel %vm275_vm0, %v4714_v52, 0.0  ;;  %v4776_v52 = vsel %vm275_vm0, %v4737_v12, 0.0 }
  0x8a   : > { %7402 = vst [vmem:[#allocation83_spill] sm:$0xff] %v4754_v24  ;;  %7403 = vst [vmem:[#allocation84_spill] sm:$0xff] %v4758_v1  ;;  %v1031_v1 = vmax.f32 %v1023_v44, 0.0  ;;  %v417_v12 = vadd.f32 %v4484_v38, %v415_v51  ;;  %v4797_v24 = vld [vmem:[%s3811_s14 + $0x2e8] sm:$0xff] }
  0x8b   : > { %7404 = vst [vmem:[#allocation85_spill] sm:$0xff] %v4762_v41  ;;  %7405 = vst [vmem:[#allocation86_spill] sm:$0xff] %v4776_v52  ;;  %v840_v52 = vadd.f32 %v4568_v46, %v838_v4 }
  0x90   : > { %v4685_v6 = vpop.permute.xlu1 %1337  ;;  %v4687_v60 = vpop.permute.xlu0 %1327 }
  0x91   : > { %7392 = vst [vmem:[#allocation73_spill] sm:$0xff] %v4685_v6  ;;  %7393 = vst [vmem:[#allocation74_spill] sm:$0xff] %v4687_v60  ;;  %v1421_v10 = vmul.f32 %v4687_v60, %v4349_v27  ;;  %v1405_v48 = vmul.f32 %v4687_v60, %v4573_v63  ;;  %v4745_v27 = vsel %vm275_vm0, %v4700_v42, 0.0  ;;  %v1423_v42 = vmul.f32 %v4685_v6, %v4362_v15 }
  0x92   : > { %7399 = vst [vmem:[#allocation80_spill] sm:$0xff] %v4745_v27  ;;  %v1407_v30 = vmul.f32 %v4685_v6, %v4589_v0 }
  0x93   : > { %v1570_v50 = vsel %vm275_vm0, %v1421_v10, 0.0  ;;  %v1533_v26 = vsel %vm275_vm0, %v1405_v48, 0.0 }
  0x94   : > { %v4747_v63 = vpop.permute.xlu1 %1342  ;;  %v4749_v5 = vpop.permute.xlu0 %1332 }
  0x95   : > { %7400 = vst [vmem:[#allocation81_spill] sm:$0xff] %v4747_v63  ;;  %7401 = vst [vmem:[#allocation82_spill] sm:$0xff] %v4749_v5  ;;  %v1422_v16 = vmul.f32 %v4749_v5, %v4354_v31  ;;  %v1406_v14 = vmul.f32 %v4749_v5, %v4578_v55  ;;  %v1424_v31 = vmul.f32 %v4747_v63, %v4367_v7 }
  0x96   : > { %v1408_v55 = vmul.f32 %v4747_v63, %v4594_v59 }
  0x97   : > { %v1571_v15 = vsel %vm275_vm0, %v1422_v16, 0.0  ;;  %v1534_v0 = vsel %vm275_vm0, %v1406_v14, 0.0  ;;  %v1573_v16 = vsel %vm275_vm0, %v1423_v42, 0.0  ;;  %v1536_v14 = vsel %vm275_vm0, %v1407_v30, 0.0 }
  0x98   : > { %v4784_v41 = vpop.permute.xlu1 %1352  ;;  %v4786_v10 = vpop.permute.xlu0 %1347  ;;  %v1572_v44 = vadd.f32 %v1571_v15, %v1570_v50  ;;  %v1535_v48 = vadd.f32 %v1534_v0, %v1533_v26  ;;  %v1167_v15 = vadd.f32 1e-05, %v1031_v1  ;;  %v467_v0 = vadd.f32 %v466_v53, %v465_v8  ;;  %v4806_v26 = vld [vmem:[%s3811_s14 + $0x2f0] sm:$0xff] }
  0x99   : > { %7406 = vst [vmem:[#allocation87_spill] sm:$0xff] %v4784_v41  ;;  %7407 = vst [vmem:[#allocation88_spill] sm:$0xff] %v4786_v10  ;;  %v1425_v7 = vmul.f32 %v4786_v10, %v4372_v57  ;;  %v1409_v59 = vmul.f32 %v4786_v10, %v4599_v36  ;;  %v1426_v38 = vmul.f32 %v4784_v41, %v4377_v2  ;;  %v1575_v46 = vsel %vm275_vm0, %v1424_v31, 0.0 }
  0x9a   : > { %v1574_v27 = vadd.f32 %v1573_v16, %v1572_v44  ;;  %v1537_v50 = vadd.f32 %v1536_v14, %v1535_v48  ;;  %v1410_v51 = vmul.f32 %v4784_v41, %v4604_v33  ;;  %v1538_v42 = vsel %vm275_vm0, %v1408_v55, 0.0  ;;  %7408 = vst [vmem:[#allocation89_spill] sm:$0xff] %v4806_v26 }
  0x9b   : > { %v842_v8 = vadd.f32 %v4676_v9, %v840_v52  ;;  %v4815_v53 = vsel %vm275_vm0, %v4797_v24, 0.0  ;;  %v1577_v55 = vsel %vm275_vm0, %v1425_v7, 0.0  ;;  %v1540_v16 = vsel %vm275_vm0, %v1409_v59, 0.0 }
  0x9c   : > { %v4808_v4 = vpop.permute.xlu1 %1362  ;;  %v4810_v30 = vpop.permute.xlu0 %1357  ;;  %v1576_v44 = vadd.f32 %v1575_v46, %v1574_v27  ;;  %v1539_v1 = vadd.f32 %v1538_v42, %v1537_v50  ;;  %3602 = vrsqrt.f32 %v1167_v15  ;;  %v4825_v9 = vsel %vm275_vm0, %v4806_v26, 0.0  ;;  %v4834_v42 = vld [vmem:[%s3811_s14 + $0x2f8] sm:$0xff] }
  0x9d   : > { %v1427_v31 = vmul.f32 %v4810_v30, %v4382_v11  ;;  %v1411_v48 = vmul.f32 %v4810_v30, %v4609_v34  ;;  %v1428_v52 = vmul.f32 %v4808_v4, %v4387_v17  ;;  %v1579_v50 = vsel %vm275_vm0, %v1426_v38, 0.0  ;;  %7409 = vst [vmem:[#allocation90_spill] sm:$0xff] %v4834_v42 }
  0x9e   : > { %v1578_v14 = vadd.f32 %v1577_v55, %v1576_v44  ;;  %v1541_v27 = vadd.f32 %v1540_v16, %v1539_v1  ;;  %v1412_v7 = vmul.f32 %v4808_v4, %v4614_v43  ;;  %v1542_v46 = vsel %vm275_vm0, %v1410_v51, 0.0 }
  0x9f   : > { %v418_v55 = vrot.slane %v417_v12, 4  ;;  %v844_v16 = vadd.f32 %v4680_v47, %v842_v8  ;;  %v1581_v38 = vsel %vm275_vm0, %v1427_v31, 0.0  ;;  %v1544_v51 = vsel %vm275_vm0, %v1411_v48, 0.0 }
  0xa0   : > { %v4836_v59 = vpop.permute.xlu1 %1372  ;;  %v4838_v44 = vpop.permute.xlu0 %1367  ;;  %v1580_v15 = vadd.f32 %v1579_v50, %v1578_v14  ;;  %v1543_v1 = vadd.f32 %v1542_v46, %v1541_v27  ;;  %v4849_v11 = vsel %vm275_vm0, %v4834_v42, 0.0  ;;  %v4853_v14 = vmul.f32 %v4581_v35, %v4581_v35 }
  0xa1   : > { %v1429_v57 = vmul.f32 %v4838_v44, %v4392_v19  ;;  %v1413_v36 = vmul.f32 %v4838_v44, %v4620_v56  ;;  %v1430_v47 = vmul.f32 %v4836_v59, %v4397_v23  ;;  %v1583_v8 = vsel %vm275_vm0, %v1428_v52, 0.0 }
  0xa2   : > { %v1582_v2 = vadd.f32 %v1581_v38, %v1580_v15  ;;  %v1545_v33 = vadd.f32 %v1544_v51, %v1543_v1  ;;  %v1414_v31 = vmul.f32 %v4836_v59, %v4629_v29  ;;  %v1546_v48 = vsel %vm275_vm0, %v1412_v7, 0.0  ;;  %v7417_v29 = vld [vmem:[#allocation19_spill] sm:$0xff] }
  0xa3   : > { %v419_v1 = vadd.f32 %v418_v55, %v417_v12  ;;  %v846_v35 = vadd.f32 %v4691_v37, %v844_v16  ;;  %v1585_v51 = vsel %vm275_vm0, %v1429_v57, 0.0  ;;  %v1548_v34 = vsel %vm275_vm0, %v1413_v36, 0.0  ;;  %v7412_v16 = vld [vmem:[#allocation54_spill] sm:$0xff] }
  0xa4   : > { %v4861_v27 = vpop.permute.xlu1 %1382  ;;  %v4863_v50 = vpop.permute.xlu0 %1377  ;;  %v1584_v46 = vadd.f32 %v1583_v8, %v1582_v2  ;;  %v1547_v15 = vadd.f32 %v1546_v48, %v1545_v33  ;;  %v469_v43 = vadd.f32 %v4720_v39, %v467_v0  ;;  %v4875_v2 = vmul.f32 %v4584_v54, %v4584_v54 }
  0xa5   : > { %v1431_v38 = vmul.f32 %v4863_v50, %v4404_v21  ;;  %v1415_v52 = vmul.f32 %v4863_v50, %v4634_v13  ;;  %v1432_v12 = vmul.f32 %v4861_v27, %v4409_v62  ;;  %v1587_v33 = vsel %vm275_vm0, %v1430_v47, 0.0  ;;  %v7418_v21 = vld [vmem:[#allocation64_spill] sm:$0xff] }
  0xa6   : > { %v1586_v7 = vadd.f32 %v1585_v51, %v1584_v46  ;;  %v1549_v17 = vadd.f32 %v1548_v34, %v1547_v15  ;;  %v1416_v57 = vmul.f32 %v4861_v27, %v4639_v49  ;;  %v1550_v37 = vsel %vm275_vm0, %v1414_v31, 0.0 }
  0xa7   : > { %v420_v0 = vrot.slane %v419_v1, 2  ;;  %v848_v54 = vadd.f32 %v4694_v61, %v846_v35  ;;  %v1589_v48 = vsel %vm275_vm0, %v1431_v38, 0.0  ;;  %v1552_v46 = vsel %vm275_vm0, %v1415_v52, 0.0  ;;  %v7413_v61 = vld [vmem:[#allocation55_spill] sm:$0xff] }
  0xa8   : > { %v4883_v55 = vpop.permute.xlu1 %1392  ;;  %v4885_v36 = vpop.permute.xlu0 %1387  ;;  %v1588_v34 = vadd.f32 %v1587_v33, %v1586_v7  ;;  %v1551_v39 = vadd.f32 %v1550_v37, %v1549_v17  ;;  %v471_v51 = vadd.f32 %v4724_v18, %v469_v43  ;;  %v4897_v17 = vmul.f32 %v4647_v58, %v4647_v58 }
  0xa9   : > { %7410 = vst [vmem:[#allocation91_spill] sm:$0xff] %v4883_v55  ;;  %7411 = vst [vmem:[#allocation92_spill] sm:$0xff] %v4885_v36  ;;  %v1433_v8 = vmul.f32 %v4885_v36, %v7412_v16  ;;  %v1417_v47 = vmul.f32 %v4885_v36, %v4644_v25  ;;  %v4899_v7 = vpop.eup %3602  ;;  %v1434_v35 = vmul.f32 %v4883_v55, %v7413_v61  ;;  %v1591_v38 = vsel %vm275_vm0, %v1432_v12, 0.0 }
  0xaa   : > { %v1590_v31 = vadd.f32 %v1589_v48, %v1588_v34  ;;  %v1553_v15 = vadd.f32 %v1552_v46, %v1551_v39  ;;  %v1418_v33 = vmul.f32 %v4883_v55, %v4652_v45  ;;  %v1554_v52 = vsel %vm275_vm0, %v1416_v57, 0.0  ;;  %v7416_v48 = vld [vmem:[#allocation56_spill] sm:$0xff] }
  0xab   : > { %v421_v58 = vadd.f32 %v420_v0, %v419_v1  ;;  %v850_v39 = vadd.f32 %v4708_v3, %v848_v54  ;;  %v1593_v19 = vsel %vm275_vm0, %v1433_v8, 0.0  ;;  %v1556_v56 = vsel %vm275_vm0, %v1417_v47, 0.0  ;;  %v7421_v1 = vld [vmem:[#allocation20_spill] sm:$0xff]  ;;  %v7424_v54 = vld [vmem:[#allocation59_spill] sm:$0xff]  ;;  %v7425_v47 = vld [vmem:[#allocation69_spill] sm:$0xff] }
  0xac   : > { %v4907_v37 = vpop.permute.xlu1 %1402  ;;  %v4909_v34 = vpop.permute.xlu0 %1397  ;;  %v1592_v18 = vadd.f32 %v1591_v38, %v1590_v31  ;;  %v1555_v43 = vadd.f32 %v1554_v52, %v1553_v15  ;;  %v7419_v13 = vsub.f32 %v7417_v29, %v7418_v21  ;;  %v7422_v3 = vsub.f32 %v7421_v1, %v7418_v21  ;;  %v7426_v52 = vld [vmem:[#allocation70_spill] sm:$0xff] }
  0xad   : > { %7414 = vst [vmem:[#allocation93_spill] sm:$0xff] %v4907_v37  ;;  %7415 = vst [vmem:[#allocation94_spill] sm:$0xff] %v4909_v34  ;;  %v1435_v46 = vmul.f32 %v4909_v34, %v7416_v48  ;;  %v1419_v12 = vmul.f32 %v4909_v34, %v4657_v32  ;;  %v1436_v8 = vmul.f32 %v4907_v37, %v7424_v54  ;;  %v1595_v15 = vsel %vm275_vm0, %v1434_v35, 0.0  ;;  %v7497_v48 = vld [vmem:[#allocation76_spill] sm:$0xff]  ;;  %v7499_v54 = vld [vmem:[#allocation78_spill] sm:$0xff] }
  0xae   : > { %v1594_v57 = vadd.f32 %v1593_v19, %v1592_v18  ;;  %v1557_v23 = vadd.f32 %v1556_v56, %v1555_v43  ;;  %v4922_v31 = vmul.f32 %v4899_v7, %v7419_v13  ;;  %v4928_v0 = vmul.f32 %v4899_v7, %v7422_v3  ;;  %v7427_v3 = vld [vmem:[#allocation21_spill] sm:$0xff] }
  0xaf   : > { %v1420_v19 = vmul.f32 %v4907_v37, %v7425_v47  ;;  %v1558_v56 = vsel %vm275_vm0, %v1418_v33, 0.0  ;;  %v422_v13 = vrot.slane %v421_v58, 1  ;;  %v4938_v18 = vmul.f32 %v7426_v52, %v7426_v52  ;;  %v7500_v47 = vld [vmem:[#allocation79_spill] sm:$0xff] }
  0xb0   : > { %7420 = vst [vmem:[#allocation19_spill] sm:$0xff] %v4922_v31  ;;  %7423 = vst [vmem:[#allocation64_spill] sm:$0xff] %v4928_v0  ;;  %v1596_v29 = vadd.f32 %v1595_v15, %v1594_v57  ;;  %v1559_v38 = vadd.f32 %v1558_v56, %v1557_v23  ;;  %v1597_v43 = vsel %vm275_vm0, %v1435_v46, 0.0  ;;  %v1560_v1 = vsel %vm275_vm0, %v1419_v12, 0.0  ;;  %v7430_v57 = vld [vmem:[#allocation23_spill] sm:$0xff] }
  0xb1   : > { %v7428_v62 = vsub.f32 %v7427_v3, %v7418_v21  ;;  %v851_v49 = vrot.slane %v850_v39, 4  ;;  %v7431_v23 = vsub.f32 %v7430_v57, %v7418_v21  ;;  %v473_v56 = vadd.f32 %v4733_v40, %v471_v51  ;;  %v7434_v57 = vld [vmem:[#allocation24_spill] sm:$0xff] }
  0xb2   : > { %v1598_v16 = vadd.f32 %v1597_v43, %v1596_v29  ;;  %v1561_v33 = vadd.f32 %v1560_v1, %v1559_v38  ;;  %v1599_v46 = vsel %vm275_vm0, %v1436_v8, 0.0  ;;  %v1562_v12 = vsel %vm275_vm0, %v1420_v19, 0.0  ;;  %v7433_v1 = vld [vmem:[#allocation71_spill] sm:$0xff] }
  0xb3   : > { %v4946_v35 = vmul.f32 %v4899_v7, %v7428_v62  ;;  %v4952_v15 = vmul.f32 %v4899_v7, %v7431_v23  ;;  %v1437_v52 = vmul.f32 %v4687_v60, %v4922_v31  ;;  %v1438_v62 = vmul.f32 %v4749_v5, %v4928_v0  ;;  %v7437_v23 = vld [vmem:[#allocation72_spill] sm:$0xff] }
  0xb4   : > { %v1600_v29 = vadd.f32 %v1599_v46, %v1598_v16  ;;  %v1563_v38 = vadd.f32 %v1562_v12, %v1561_v33  ;;  %v423_v43 = vadd.f32 %v422_v13, %v421_v58  ;;  %v4963_v3 = vmul.f32 %v7433_v1, %v7433_v1  ;;  %v7438_v46 = vld [vmem:[#allocation26_spill] sm:$0xff] }
  0xb5   : > { %7429 = vst [vmem:[#allocation20_spill] sm:$0xff] %v4946_v35  ;;  %7432 = vst [vmem:[#allocation70_spill] sm:$0xff] %v4952_v15  ;;  %v7435_v40 = vsub.f32 %v7434_v57, %v7418_v21  ;;  %v1439_v8 = vmul.f32 %v4685_v6, %v4946_v35  ;;  %v852_v19 = vadd.f32 %v851_v49, %v850_v39  ;;  %v1607_v39 = vsel %vm275_vm0, %v1437_v52, 0.0 }
  0xb6   : > { %v4975_v31 = vmul.f32 %v7437_v23, %v7437_v23  ;;  %v1601_v16 = vrot.slane %v1600_v29, 4  ;;  %v1564_v58 = vrot.slane %v1563_v38, 4  ;;  %v475_v13 = vadd.f32 %v4741_v22, %v473_v56 }
  0xb7   : > { %v4969_v51 = vmul.f32 %v4899_v7, %v7435_v40  ;;  %v4980_v33 = vmul.f32 %v4683_v20, %v4683_v20  ;;  %v7439_v12 = vsub.f32 %v7438_v46, %v7418_v21  ;;  %v1440_v49 = vmul.f32 %v4747_v63, %v4952_v15  ;;  %v7441_v20 = vld [vmem:[#allocation27_spill] sm:$0xff] }
  0xb8   : > { %v1608_v57 = vsel %vm275_vm0, %v1438_v62, 0.0  ;;  %v1602_v40 = vadd.f32 %v1601_v16, %v1600_v29  ;;  %v1565_v23 = vadd.f32 %v1564_v58, %v1563_v38  ;;  %v4992_v56 = vmul.f32 0.0078125, %v423_v43  ;;  %v7444_v38 = vld [vmem:[#allocation28_spill] sm:$0xff] }
  0xb9   : > { %7436 = vst [vmem:[#allocation21_spill] sm:$0xff] %v4969_v51  ;;  %v4986_v1 = vmul.f32 %v4899_v7, %v7439_v12  ;;  %v1609_v22 = vadd.f32 %v1608_v57, %v1607_v39  ;;  %v7442_v0 = vsub.f32 %v7441_v20, %v7418_v21  ;;  %v1441_v12 = vmul.f32 %v4786_v10, %v4969_v51 }
  0xba   : > { %v1610_v35 = vsel %vm275_vm0, %v1439_v8, 0.0  ;;  %v853_v15 = vrot.slane %v852_v19, 2  ;;  %v1603_v52 = vrot.slane %v1602_v40, 2  ;;  %v1566_v25 = vrot.slane %v1565_v23, 2  ;;  %v7447_v8 = vld [vmem:[#allocation80_spill] sm:$0xff] }
  0xbb   : > { %7440 = vst [vmem:[#allocation23_spill] sm:$0xff] %v4986_v1  ;;  %v4998_v46 = vmul.f32 %v4899_v7, %v7442_v0  ;;  %v1611_v62 = vadd.f32 %v1610_v35, %v1609_v22  ;;  %v5005_v29 = vmul.f32 %v4697_v28, %v4697_v28  ;;  %v7445_v43 = vsub.f32 %v7444_v38, %v7418_v21  ;;  %v7448_v22 = vld [vmem:[#allocation29_spill] sm:$0xff] }
  0xbc   : > { %v1442_v0 = vmul.f32 %v4784_v41, %v4986_v1  ;;  %v1612_v58 = vsel %vm275_vm0, %v1440_v49, 0.0  ;;  %v477_v39 = vadd.f32 %v7447_v8, %v475_v13  ;;  %v1604_v57 = vadd.f32 %v1603_v52, %v1602_v40  ;;  %v7451_v40 = vld [vmem:[#allocation30_spill] sm:$0xff] }
  0xbd   : > { %7443 = vst [vmem:[#allocation71_spill] sm:$0xff] %v4998_v46  ;;  %v5011_v16 = vmul.f32 %v4899_v7, %v7445_v43  ;;  %v1567_v20 = vadd.f32 %v1566_v25, %v1565_v23  ;;  %v1613_v35 = vadd.f32 %v1612_v58, %v1611_v62  ;;  %v1016_v28 = vmul.f32 %v4992_v56, %v4992_v56  ;;  %v7454_v62 = vld [vmem:[#allocation31_spill] sm:$0xff] }
  0xbe   : > { %v7449_v51 = vsub.f32 %v7448_v22, %v7418_v21  ;;  %v1443_v43 = vmul.f32 %v4810_v30, %v4998_v46  ;;  %v1614_v1 = vsel %vm275_vm0, %v1441_v12, 0.0  ;;  %v854_v49 = vadd.f32 %v853_v15, %v852_v19 }
  0xbf   : > { %7446 = vst [vmem:[#allocation24_spill] sm:$0xff] %v5011_v16  ;;  %v1605_v61 = vrot.slane %v1604_v57, 1  ;;  %v1568_v13 = vrot.slane %v1567_v20, 1  ;;  %v7452_v25 = vsub.f32 %v7451_v40, %v7418_v21  ;;  %v1615_v52 = vadd.f32 %v1614_v1, %v1613_v35  ;;  %v7459_v40 = vld [vmem:[#allocation32_spill] sm:$0xff] }
  0xc0   : > { %v5023_v38 = vmul.f32 %v4899_v7, %v7449_v51  ;;  %v7455_v58 = vsub.f32 %v7454_v62, %v7418_v21  ;;  %v1444_v8 = vmul.f32 %v4808_v4, %v5011_v16  ;;  %v1616_v15 = vsel %vm275_vm0, %v1442_v0, 0.0  ;;  %v7462_v62 = vld [vmem:[#allocation33_spill] sm:$0xff]  ;;  %v7469_v16 = vld [vmem:[#allocation35_spill] sm:$0xff] }
  0xc1   : > { %v5032_v23 = vmul.f32 %v4899_v7, %v7452_v25  ;;  %v855_v19 = vrot.slane %v854_v49, 1  ;;  %v5043_v12 = vadd.f32 %v1605_v61, %v1604_v57  ;;  %v5045_v22 = vadd.f32 %v1568_v13, %v1567_v20 }
  0xc2   : > { %7450 = vst [vmem:[#allocation72_spill] sm:$0xff] %v5023_v38  ;;  %v5038_v51 = vmul.f32 %v4899_v7, %v7455_v58  ;;  %v7460_v25 = vsub.f32 %v7459_v40, %v7418_v21  ;;  %v1617_v35 = vadd.f32 %v1616_v15, %v1615_v52  ;;  %v7463_v58 = vsub.f32 %v7462_v62, %v7418_v21  ;;  %v7465_v40 = vld [vmem:[#allocation34_spill] sm:$0xff] }
  0xc3   : > { %7453 = vst [vmem:[#allocation26_spill] sm:$0xff] %v5032_v23  ;;  %7457 = vst [vmem:[#allocation28_spill] sm:$0xff] %v5043_v12  ;;  %v1445_v0 = vmul.f32 %v4838_v44, %v5023_v38  ;;  %v1618_v61 = vsel %vm275_vm0, %v1443_v43, 0.0  ;;  %v856_v57 = vadd.f32 %v855_v19, %v854_v49  ;;  %v1832_v20 = vsel %vm275_vm0, %v5043_v12, -inf  ;;  %v7468_v19 = vld [vmem:[#allocation83_spill] sm:$0xff] }
  0xc4   : > { %7456 = vst [vmem:[#allocation27_spill] sm:$0xff] %v5038_v51  ;;  %7458 = vst [vmem:[#allocation80_spill] sm:$0xff] %v5045_v22  ;;  %v5051_v1 = vmul.f32 %v4899_v7, %v7460_v25  ;;  %v5057_v46 = vmul.f32 %v4899_v7, %v7463_v58  ;;  %v1829_v13 = vsel %vm275_vm0, %v5045_v22, -inf  ;;  %v1446_v52 = vmul.f32 %v4836_v59, %v5032_v23  ;;  %v5204_v12 = vld [vmem:[%s3811_s14 + $0x220] sm:$0xff] }
  0xc5   : > { %v1619_v15 = vadd.f32 %v1618_v61, %v1617_v35  ;;  %1833 = vmax.xlane.f32.xlu1 %v1832_v20  ;;  %1830 = vmax.xlane.f32.xlu0 %v1829_v13  ;;  %v7466_v25 = vsub.f32 %v7465_v40, %v7418_v21  ;;  %v1620_v43 = vsel %vm275_vm0, %v1444_v8, 0.0  ;;  %v1008_v49 = vmul.f32 0.0078125, %v856_v57  ;;  %v7472_v35 = vld [vmem:[#allocation36_spill] sm:$0xff] }
  0xc6   : > { %7461 = vst [vmem:[#allocation29_spill] sm:$0xff] %v5051_v1  ;;  %7464 = vst [vmem:[#allocation30_spill] sm:$0xff] %v5057_v46  ;;  %v479_v58 = vadd.f32 %v7468_v19, %v477_v39  ;;  %v7470_v38 = vsub.f32 %v7469_v16, %v7418_v21  ;;  %v7473_v61 = vsub.f32 %v7472_v35, %v7418_v21  ;;  %v1622_v39 = vsel %vm275_vm0, %v1445_v0, 0.0  ;;  %v7475_v16 = vld [vmem:[#allocation84_spill] sm:$0xff] }
  0xc7   : > { %v5072_v62 = vmul.f32 %v4899_v7, %v7466_v25  ;;  %v1447_v13 = vmul.f32 %v4863_v50, %v5038_v51  ;;  %v1621_v40 = vadd.f32 %v1620_v43, %v1619_v15  ;;  %v1448_v8 = vmul.f32 %v4861_v27, %v5051_v1  ;;  %v7490_v51 = vld [vmem:[#allocation53_spill] sm:$0xff]  ;;  %7503 = vst [vmem:[#allocation84_spill] sm:$0xff] %v5204_v12 }
  0xc8   : > { %v5080_v45 = vmul.f32 %v4899_v7, %v7470_v38  ;;  %v5086_v20 = vmul.f32 %v4899_v7, %v7473_v61  ;;  %v1024_v57 = vsub.f32 %v1008_v49, %v1016_v28  ;;  %v481_v25 = vadd.f32 %v7475_v16, %v479_v58  ;;  %v7476_v61 = vld [vmem:[#allocation85_spill] sm:$0xff] }
  0xc9   : > { %7467 = vst [vmem:[#allocation31_spill] sm:$0xff] %v5072_v62  ;;  %v1449_v38 = vmul.f32 %v4885_v36, %v5057_v46  ;;  %v1623_v19 = vadd.f32 %v1622_v39, %v1621_v40  ;;  %v1624_v21 = vsel %vm275_vm0, %v1446_v52, 0.0  ;;  %v894_v7 = vsel %vm275_vm0, %v4853_v14, 0.0  ;;  %v7477_v39 = vld [vmem:[#allocation86_spill] sm:$0xff]  ;;  %v7491_v1 = vld [vmem:[#allocation57_spill] sm:$0xff]  ;;  %v7494_v46 = vld [vmem:[#allocation60_spill] sm:$0xff] }
  0xca   : > { %7471 = vst [vmem:[#allocation32_spill] sm:$0xff] %v5080_v45  ;;  %7474 = vst [vmem:[#allocation33_spill] sm:$0xff] %v5086_v20  ;;  %v1032_v35 = vmax.f32 %v1024_v57, 0.0  ;;  %v483_v15 = vadd.f32 %v7476_v61, %v481_v25  ;;  %v895_v43 = vsel %vm275_vm0, %v4875_v2, 0.0  ;;  %v897_v28 = vsel %vm275_vm0, %v4897_v17, 0.0  ;;  %v7478_v25 = vld [vmem:[#allocation75_spill] sm:$0xff] }
  0xcb   : > { %v1450_v0 = vmul.f32 %v4883_v55, %v5072_v62  ;;  %v1451_v49 = vmul.f32 %v4909_v34, %v5080_v45  ;;  %v1625_v58 = vadd.f32 %v1624_v21, %v1623_v19  ;;  %v896_v52 = vadd.f32 %v895_v43, %v894_v7  ;;  %v7480_v7 = vld [vmem:[#allocation38_spill] sm:$0xff]  ;;  %v5259_v55 = vld [vmem:[%s3811_s14 + $0x250] sm:$0xff] }
  0xcc   : > { %v1626_v40 = vsel %vm275_vm0, %v1447_v13, 0.0  ;;  %v1168_v14 = vadd.f32 1e-05, %v1032_v35  ;;  %v485_v57 = vadd.f32 %v7477_v39, %v483_v15  ;;  %v899_v16 = vsel %vm275_vm0, %v4938_v18, 0.0  ;;  %v7479_v13 = vld [vmem:[#allocation37_spill] sm:$0xff]  ;;  %v7481_v15 = vld [vmem:[#allocation39_spill] sm:$0xff] }
  0xcd   : > { %v1452_v2 = vmul.f32 %v4907_v37, %v5086_v20  ;;  %v1627_v17 = vadd.f32 %v1626_v40, %v1625_v58  ;;  %v669_v61 = vmul.f32 %v7478_v25, %v7478_v25  ;;  %v898_v23 = vadd.f32 %v897_v28, %v896_v52  ;;  %v5130_v25 = vld [vmem:[%s3811_s14 + $0x200] sm:$0xff]  ;;  %v5133_v35 = vld [vmem:[%s3811_s14 + $0x208] sm:$0xff]  ;;  %v5262_v36 = vld [vmem:[%s3811_s14 + $0x258] sm:$0xff] }
  0xce   : > { %v1628_v19 = vsel %vm275_vm0, %v1448_v8, 0.0  ;;  %3604 = vrsqrt.f32 %v1168_v14  ;;  %v901_v58 = vsel %vm275_vm0, %v4963_v3, 0.0  ;;  %v1630_v40 = vsel %vm275_vm0, %v1449_v38, 0.0  ;;  %7482 = vst [vmem:[#allocation34_spill] sm:$0xff] %v5130_v25  ;;  %7483 = vst [vmem:[#allocation83_spill] sm:$0xff] %v5133_v35  ;;  %v7485_v3 = vld [vmem:[#allocation41_spill] sm:$0xff] }
  0xcf   : > { %v1629_v18 = vadd.f32 %v1628_v19, %v1627_v17  ;;  %v900_v39 = vadd.f32 %v899_v16, %v898_v23  ;;  %v1632_v28 = vsel %vm275_vm0, %v1450_v0, 0.0  ;;  %v1634_v8 = vsel %vm275_vm0, %v1451_v49, 0.0  ;;  %v7484_v23 = vld [vmem:[#allocation40_spill] sm:$0xff]  ;;  %v7486_v0 = vld [vmem:[#allocation42_spill] sm:$0xff]  ;;  %v7495_v19 = vld [vmem:[#allocation61_spill] sm:$0xff] }
  0xd0   : > { %v487_v52 = vadd.f32 %v4815_v53, %v485_v57  ;;  %v1636_v17 = vsel %vm275_vm0, %v1452_v2, 0.0  ;;  %v7487_v49 = vld [vmem:[#allocation16_spill] sm:$0xff]  ;;  %v7488_v57 = vld [vmem:[#allocation22_spill] sm:$0xff]  ;;  %v903_v2 = vsel %vm275_vm0, %v4975_v31, 0.0  ;;  %v425_v38 = vsel %vm275_vm0, %v5133_v35, 0.0 }
  0xd1   : > { %v1631_v14 = vadd.f32 %v1630_v40, %v1629_v18  ;;  %v902_v21 = vadd.f32 %v901_v58, %v900_v39  ;;  %v424_v40 = vsel %vm275_vm0, %v5130_v25, 0.0  ;;  %v7489_v16 = vld [vmem:[#allocation52_spill] sm:$0xff]  ;;  %v5160_v58 = vld [vmem:[%s3811_s14 + $0x210] sm:$0xff]  ;;  %v7496_v53 = vld [vmem:[#allocation62_spill] sm:$0xff]  ;;  %v670_v43 = vmul.f32 %v7497_v48, %v7497_v48  ;;  %7517 = vst [vmem:[#allocation22_spill] sm:$0xff] %v5259_v55 }
  0xd2   : > { %v489_v39 = vadd.f32 %v4825_v9, %v487_v52  ;;  %7492 = vst [vmem:[#allocation35_spill] sm:$0xff] %v5160_v58  ;;  %v426_v52 = vadd.f32 %v425_v38, %v424_v40  ;;  %v427_v62 = vsel %vm275_vm0, %v5160_v58, 0.0  ;;  %v672_v20 = vmul.f32 %v7499_v54, %v7499_v54  ;;  %v5245_v37 = vld [vmem:[%s3811_s14 + $0x248] sm:$0xff]  ;;  %7518 = vst [vmem:[#allocation52_spill] sm:$0xff] %v5262_v36 }
  0xd3   : > { %v1633_v18 = vadd.f32 %v1632_v28, %v1631_v14  ;;  %v7493_v28 = vld [vmem:[#allocation58_spill] sm:$0xff]  ;;  %v904_v9 = vadd.f32 %v903_v2, %v902_v21  ;;  %v905_v14 = vsel %vm275_vm0, %v4980_v33, 0.0  ;;  %v673_v48 = vmul.f32 %v7500_v47, %v7500_v47  ;;  %v7502_v33 = vld [vmem:[#allocation63_spill] sm:$0xff]  ;;  %7513 = vst [vmem:[#allocation41_spill] sm:$0xff] %v5245_v37 }
  0xd4   : > { %v491_v45 = vadd.f32 %v4849_v11, %v489_v39  ;;  %v674_v21 = vmul.f32 %v4797_v24, %v4797_v24  ;;  %v675_v40 = vmul.f32 %v4806_v26, %v4806_v26  ;;  %v676_v11 = vmul.f32 %v4834_v42, %v4834_v42  ;;  %v5239_v42 = vld [vmem:[%s3811_s14 + $0x238] sm:$0xff]  ;;  %v5242_v26 = vld [vmem:[%s3811_s14 + $0x240] sm:$0xff] }
  0xd5   : > { %v1635_v31 = vadd.f32 %v1634_v8, %v1633_v18  ;;  %v7498_v8 = vld [vmem:[#allocation77_spill] sm:$0xff]  ;;  %v906_v54 = vadd.f32 %v905_v14, %v904_v9  ;;  %v907_v47 = vsel %vm275_vm0, %v5005_v29, 0.0  ;;  %v909_v24 = vsel %vm275_vm0, %v669_v61, 0.0  ;;  %7511 = vst [vmem:[#allocation39_spill] sm:$0xff] %v5239_v42  ;;  %7512 = vst [vmem:[#allocation40_spill] sm:$0xff] %v5242_v26 }
  0xd6   : > { %v671_v18 = vmul.f32 %v7498_v8, %v7498_v8  ;;  %v428_v39 = vadd.f32 %v427_v62, %v426_v52  ;;  %v911_v2 = vsel %vm275_vm0, %v670_v43, 0.0  ;;  %v492_v29 = vrot.slane %v491_v45, 4  ;;  %v5218_v43 = vld [vmem:[%s3811_s14 + $0x228] sm:$0xff]  ;;  %v5221_v9 = vld [vmem:[%s3811_s14 + $0x230] sm:$0xff] }
  0xd7   : > { %v1637_v32 = vadd.f32 %v1636_v17, %v1635_v31  ;;  %v5186_v17 = vld [vmem:[%s3811_s14 + $0x218] sm:$0xff]  ;;  %v5209_v61 = vsel %vm275_vm0, %v672_v20, 0.0  ;;  %v5212_v62 = vsel %vm275_vm0, %v673_v48, 0.0  ;;  %7504 = vst [vmem:[#allocation85_spill] sm:$0xff] %v5218_v43  ;;  %7505 = vst [vmem:[#allocation86_spill] sm:$0xff] %v5221_v9  ;;  %v7508_v20 = vsub.f32 %v7480_v7, %v4992_v56 }
  0xd8   : > { %7501 = vst [vmem:[#allocation36_spill] sm:$0xff] %v5186_v17  ;;  %v5201_v22 = vsel %vm275_vm0, %v671_v18, 0.0  ;;  %v429_v14 = vsel %vm275_vm0, %v5186_v17, 0.0  ;;  %v7506_v18 = vsub.f32 %v7479_v13, %v4992_v56  ;;  %v908_v13 = vadd.f32 %v907_v47, %v906_v54 }
  0xd9   : > { %v1638_v38 = vrot.slane %v1637_v32, 4  ;;  %v430_v34 = vadd.f32 %v429_v14, %v428_v39  ;;  %v431_v7 = vsel %vm275_vm0, %v5204_v12, 0.0  ;;  %v435_v54 = vsel %vm275_vm0, %v5221_v9, 0.0  ;;  %v5269_v39 = vld [vmem:[%s3811_s14 + $0x260] sm:$0xff]  ;;  %v5292_v9 = vld [vmem:[%s3811_s14 + $0x268] sm:$0xff] }
  0xda   : > { %v493_v47 = vadd.f32 %v492_v29, %v491_v45  ;;  %7519 = vst [vmem:[#allocation53_spill] sm:$0xff] %v5269_v39  ;;  %v5279_v14 = vsel %vm275_vm0, %v5245_v37, 0.0  ;;  %7523 = vst [vmem:[#allocation60_spill] sm:$0xff] %v5292_v9 }
  0xdb   : > { %v5197_v31 = vpop.eup %3604  ;;  %v1639_v8 = vadd.f32 %v1638_v38, %v1637_v32  ;;  %v5215_v32 = vsel %vm275_vm0, %v674_v21, 0.0  ;;  %v5236_v21 = vsel %vm275_vm0, %v675_v40, 0.0  ;;  %v7515_v40 = vsub.f32 %v7481_v15, %v4992_v56  ;;  %7520 = vst [vmem:[#allocation57_spill] sm:$0xff] %v5279_v14 }
  0xdc   : > { %v5227_v38 = vmul.f32 %v5197_v31, %v7506_v18  ;;  %v5233_v48 = vmul.f32 %v5197_v31, %v7508_v20  ;;  %7510 = vst [vmem:[#allocation38_spill] sm:$0xff] %v5236_v21  ;;  %v5248_v18 = vsel %vm275_vm0, %v676_v11, 0.0  ;;  %v433_v11 = vsel %vm275_vm0, %v5218_v43, 0.0 }
  0xdd   : > { %v1640_v52 = vrot.slane %v1639_v8, 2  ;;  %7514 = vst [vmem:[#allocation42_spill] sm:$0xff] %v5248_v18  ;;  %v5256_v21 = vmul.f32 %v5197_v31, %v7515_v40  ;;  %v437_v15 = vsel %vm275_vm0, %v5239_v42, 0.0  ;;  %v7521_v40 = vsub.f32 %v7484_v23, %v4992_v56 }
  0xde   : > { %7507 = vst [vmem:[#allocation75_spill] sm:$0xff] %v5227_v38  ;;  %7509 = vst [vmem:[#allocation37_spill] sm:$0xff] %v5233_v48  ;;  %v1453_v29 = vmul.f32 %v4687_v60, %v5227_v38  ;;  %v1454_v42 = vmul.f32 %v4749_v5, %v5233_v48  ;;  %v910_v18 = vadd.f32 %v909_v24, %v908_v13  ;;  %v5299_v14 = vsel %vm275_vm0, %v5259_v55, 0.0 }
  0xdf   : > { %v1641_v20 = vadd.f32 %v1640_v52, %v1639_v8  ;;  %7516 = vst [vmem:[#allocation16_spill] sm:$0xff] %v5256_v21  ;;  %v5275_v8 = vsel %vm275_vm0, %v5242_v26, 0.0  ;;  %v5285_v45 = vmul.f32 %v5197_v31, %v7521_v40  ;;  %v5295_v26 = vld [vmem:[%s3811_s14 + $0x270] sm:$0xff]  ;;  %v432_v37 = vadd.f32 %v431_v7, %v430_v34  ;;  %v5316_v34 = vld [vmem:[%s3811_s14 + $0x278] sm:$0xff] }
  0xe0   : > { %7524 = vst [vmem:[#allocation61_spill] sm:$0xff] %v5295_v26  ;;  %v5303_v23 = vsel %vm275_vm0, %v5262_v36, 0.0  ;;  %v7526_v38 = vsub.f32 %v7485_v3, %v4992_v56  ;;  %v1455_v24 = vmul.f32 %v4685_v6, %v5256_v21  ;;  %7528 = vst [vmem:[#allocation77_spill] sm:$0xff] %v5316_v34  ;;  %v5320_v13 = vsel %vm275_vm0, %v5269_v39, 0.0 }
  0xe1   : > { %v1642_v52 = vrot.slane %v1641_v20, 1  ;;  %7522 = vst [vmem:[#allocation58_spill] sm:$0xff] %v5285_v45  ;;  %v7529_v7 = vsub.f32 %v7486_v0, %v4992_v56  ;;  %v5330_v3 = vsel %vm275_vm0, %v5292_v9, 0.0  ;;  %v1456_v6 = vmul.f32 %v4747_v63, %v5285_v45 }
  0xe2   : > { %v5311_v48 = vmul.f32 %v5197_v31, %v7526_v38  ;;  %v5334_v38 = vsel %vm275_vm0, %v5295_v26, 0.0  ;;  %v1644_v0 = vsel %vm275_vm0, %v1453_v29, 0.0  ;;  %v912_v60 = vadd.f32 %v911_v2, %v910_v18 }
  0xe3   : > { %v5305_v40 = vadd.f32 %v1642_v52, %v1641_v20  ;;  %v5326_v20 = vmul.f32 %v5197_v31, %v7529_v7  ;;  %v494_v52 = vrot.slane %v493_v47, 2  ;;  %v1645_v7 = vsel %vm275_vm0, %v1454_v42, 0.0 }
  0xe4   : > { %7527 = vst [vmem:[#allocation76_spill] sm:$0xff] %v5311_v48  ;;  %v1646_v5 = vadd.f32 %v1645_v7, %v1644_v0  ;;  %v434_v39 = vadd.f32 %v433_v11, %v432_v37  ;;  %v5344_v9 = vsel %vm275_vm0, %v5316_v34, 0.0  ;;  %v7531_v26 = vsub.f32 %v7487_v49, %v4992_v56 }
  0xe5   : > { %7525 = vst [vmem:[#allocation62_spill] sm:$0xff] %v5305_v40  ;;  %7530 = vst [vmem:[#allocation78_spill] sm:$0xff] %v5326_v20  ;;  %v1835_v21 = vsel %vm275_vm0, %v5305_v40, -inf  ;;  %v1457_v45 = vmul.f32 %v4786_v10, %v5311_v48  ;;  %v1647_v29 = vsel %vm275_vm0, %v1455_v24, 0.0  ;;  %v645_v42 = vmul.f32 %v5130_v25, %v5130_v25 }
  0xe6   : > { %1836 = vmax.xlane.f32.xlu0 %v1835_v21  ;;  %v5350_v40 = vmul.f32 %v5197_v31, %v7531_v26  ;;  %v1648_v2 = vadd.f32 %v1647_v29, %v1646_v5  ;;  %v495_v37 = vadd.f32 %v494_v52, %v493_v47  ;;  %v646_v21 = vmul.f32 %v5133_v35, %v5133_v35 }
  0xe7   : > { %v647_v18 = vmul.f32 %v5160_v58, %v5160_v58  ;;  %v7533_v26 = vsub.f32 %v7488_v57, %v4992_v56  ;;  %v1458_v11 = vmul.f32 %v4784_v41, %v5326_v20  ;;  %v1649_v24 = vsel %vm275_vm0, %v1456_v6, 0.0 }
  0xe8   : > { %7532 = vst [vmem:[#allocation79_spill] sm:$0xff] %v5350_v40  ;;  %v648_v5 = vmul.f32 %v5186_v17, %v5186_v17  ;;  %v1650_v47 = vadd.f32 %v1649_v24, %v1648_v2  ;;  %v914_v52 = vadd.f32 %v5201_v22, %v912_v60  ;;  %v436_v0 = vadd.f32 %v435_v54, %v434_v39 }
  0xe9   : > { %v5365_v49 = vmul.f32 %v5197_v31, %v7533_v26  ;;  %v649_v7 = vmul.f32 %v5204_v12, %v5204_v12  ;;  %v7535_v57 = vsub.f32 %v7489_v16, %v4992_v56  ;;  %v7537_v26 = vsub.f32 %v7490_v51, %v4992_v56 }
  0xea   : > { %v1459_v2 = vmul.f32 %v4810_v30, %v5350_v40  ;;  %v1651_v60 = vsel %vm275_vm0, %v1457_v45, 0.0  ;;  %v7539_v22 = vsub.f32 %v7491_v1, %v4992_v56  ;;  %v916_v39 = vadd.f32 %v5209_v61, %v914_v52 }
  0xeb   : > { %7534 = vst [vmem:[#allocation63_spill] sm:$0xff] %v5365_v49  ;;  %v5379_v29 = vmul.f32 %v5197_v31, %v7535_v57  ;;  %v5385_v6 = vmul.f32 %v5197_v31, %v7537_v26  ;;  %v1652_v16 = vadd.f32 %v1651_v60, %v1650_v47  ;;  %v438_v24 = vadd.f32 %v437_v15, %v436_v0 }
  0xec   : > { %v5394_v54 = vmul.f32 %v5197_v31, %v7539_v22  ;;  %v7541_v51 = vsub.f32 %v7493_v28, %v4992_v56  ;;  %v7543_v26 = vsub.f32 %v7494_v46, %v4992_v56  ;;  %v1460_v1 = vmul.f32 %v4808_v4, %v5365_v49  ;;  %v7556_v49 = vld [vmem:[#allocation42_spill] sm:$0xff] }
  0xed   : > { %7536 = vst [vmem:[#allocation95_spill] sm:$0xff] %v5379_v29  ;;  %7538 = vst [vmem:[#allocation96_spill] sm:$0xff] %v5385_v6  ;;  %v1653_v47 = vsel %vm275_vm0, %v1458_v11, 0.0  ;;  %v7545_v61 = vsub.f32 %v7495_v19, %v4992_v56  ;;  %v7547_v28 = vsub.f32 %v7496_v53, %v4992_v56  ;;  %v918_v0 = vadd.f32 %v5212_v62, %v916_v39 }
  0xee   : > { %7540 = vst [vmem:[#allocation97_spill] sm:$0xff] %v5394_v54  ;;  %v5401_v57 = vmul.f32 %v5197_v31, %v7541_v51  ;;  %v5407_v45 = vmul.f32 %v5197_v31, %v7543_v26  ;;  %v1654_v46 = vadd.f32 %v1653_v47, %v1652_v16  ;;  %v7549_v60 = vsub.f32 %v7502_v33, %v4992_v56  ;;  %v7551_v33 = vld [vmem:[#allocation92_spill] sm:$0xff] }
  0xef   : > { %v5416_v15 = vmul.f32 %v5197_v31, %v7545_v61  ;;  %v5422_v52 = vmul.f32 %v5197_v31, %v7547_v28  ;;  %v1461_v19 = vmul.f32 %v4838_v44, %v5379_v29  ;;  %v1462_v22 = vmul.f32 %v4836_v59, %v5385_v6  ;;  %v7553_v28 = vld [vmem:[#allocation94_spill] sm:$0xff]  ;;  %v7557_v6 = vld [vmem:[#allocation57_spill] sm:$0xff] }
  0xf0   : > { %7542 = vst [vmem:[#allocation98_spill] sm:$0xff] %v5401_v57  ;;  %7544 = vst [vmem:[#allocation99_spill] sm:$0xff] %v5407_v45  ;;  %v5429_v11 = vmul.f32 %v5197_v31, %v7549_v60  ;;  %v1655_v53 = vsel %vm275_vm0, %v1459_v2, 0.0  ;;  %v1463_v51 = vmul.f32 %v4863_v50, %v5394_v54  ;;  %v920_v62 = vadd.f32 %v5215_v32, %v918_v0  ;;  %v7552_v2 = vld [vmem:[#allocation91_spill] sm:$0xff]  ;;  %v7554_v0 = vld [vmem:[#allocation38_spill] sm:$0xff] }
  0xf1   : > { %7546 = vst [vmem:[#allocation100_spill] sm:$0xff] %v5416_v15  ;;  %7548 = vst [vmem:[#allocation101_spill] sm:$0xff] %v5422_v52  ;;  %v1656_v16 = vadd.f32 %v1655_v53, %v1654_v46  ;;  %v440_v39 = vadd.f32 %v5275_v8, %v438_v24  ;;  %v1464_v56 = vmul.f32 %v4861_v27, %v5401_v57  ;;  %v1657_v26 = vsel %vm275_vm0, %v1460_v1, 0.0  ;;  %v7555_v24 = vld [vmem:[#allocation93_spill] sm:$0xff] }
  0xf2   : > { %7550 = vst [vmem:[#allocation102_spill] sm:$0xff] %v5429_v11  ;;  %v1465_v31 = vmul.f32 %v7551_v33, %v5407_v45  ;;  %v650_v47 = vmul.f32 %v5218_v43, %v5218_v43  ;;  %v1466_v61 = vmul.f32 %v7552_v2, %v5416_v15  ;;  %v1467_v46 = vmul.f32 %v7553_v28, %v5422_v52  ;;  %v5598_v52 = vld [vmem:[%s3811_s14 + $0x358] sm:$0xff] }
  0xf3   : > { %v1658_v32 = vadd.f32 %v1657_v26, %v1656_v16  ;;  %v922_v8 = vadd.f32 %v7554_v0, %v920_v62  ;;  %v1468_v60 = vmul.f32 %v7555_v24, %v5429_v11  ;;  %v1659_v53 = vsel %vm275_vm0, %v1461_v19, 0.0  ;;  %7577 = vst [vmem:[#allocation109_spill] sm:$0xff] %v5598_v52 }
  0xf4   : > { %v1661_v48 = vsel %vm275_vm0, %v1462_v22, 0.0  ;;  %v496_v1 = vrot.slane %v495_v37, 1  ;;  %v1663_v40 = vsel %vm275_vm0, %v1463_v51, 0.0  ;;  %v442_v54 = vadd.f32 %v7557_v6, %v440_v39 }
  0xf5   : > { %v1660_v20 = vadd.f32 %v1659_v53, %v1658_v32  ;;  %v924_v29 = vadd.f32 %v7556_v49, %v922_v8  ;;  %v1665_v57 = vsel %vm275_vm0, %v1464_v56, 0.0  ;;  %v857_v16 = vsel %vm275_vm0, %v645_v42, 0.0  ;;  %v7563_v8 = vld [vmem:[#allocation40_spill] sm:$0xff] }
  0xf6   : > { %v858_v62 = vsel %vm275_vm0, %v646_v21, 0.0  ;;  %v860_v26 = vsel %vm275_vm0, %v647_v18, 0.0  ;;  %v444_v22 = vadd.f32 %v5299_v14, %v442_v54  ;;  %v1667_v32 = vsel %vm275_vm0, %v1465_v31, 0.0  ;;  %v7559_v54 = vld [vmem:[#allocation39_spill] sm:$0xff] }
  0xf7   : > { %v1662_v0 = vadd.f32 %v1661_v48, %v1660_v20  ;;  %v925_v19 = vrot.slane %v924_v29, 4  ;;  %v859_v45 = vadd.f32 %v858_v62, %v857_v16  ;;  %v1669_v49 = vsel %vm275_vm0, %v1466_v61, 0.0  ;;  %v7558_v20 = vld [vmem:[#allocation86_spill] sm:$0xff] }
  0xf8   : > { %v497_v6 = vadd.f32 %v496_v1, %v495_v37  ;;  %v862_v51 = vsel %vm275_vm0, %v648_v5, 0.0  ;;  %v446_v21 = vadd.f32 %v5303_v23, %v444_v22  ;;  %v1671_v48 = vsel %vm275_vm0, %v1467_v46, 0.0  ;;  %v5479_v23 = vld [vmem:[%s3811_s14 + $0x308] sm:$0xff]  ;;  %v7564_v1 = vld [vmem:[#allocation41_spill] sm:$0xff] }
  0xf9   : > { %v1664_v42 = vadd.f32 %v1663_v40, %v1662_v0  ;;  %v926_v39 = vadd.f32 %v925_v19, %v924_v29  ;;  %v861_v18 = vadd.f32 %v860_v26, %v859_v45  ;;  %v651_v14 = vmul.f32 %v7558_v20, %v7558_v20  ;;  %v5476_v29 = vld [vmem:[%s3811_s14 + $0x300] sm:$0xff]  ;;  %7561 = vst [vmem:[#allocation91_spill] sm:$0xff] %v5479_v23  ;;  %v5482_v45 = vld [vmem:[%s3811_s14 + $0x310] sm:$0xff]  ;;  %v5493_v0 = vld [vmem:[%s3811_s14 + $0x318] sm:$0xff] }
  0xfa   : > { %v652_v56 = vmul.f32 %v7559_v54, %v7559_v54  ;;  %v864_v31 = vsel %vm275_vm0, %v649_v7, 0.0  ;;  %v448_v5 = vadd.f32 %v5320_v13, %v446_v21  ;;  %7560 = vst [vmem:[#allocation92_spill] sm:$0xff] %v5476_v29  ;;  %7562 = vst [vmem:[#allocation94_spill] sm:$0xff] %v5482_v45  ;;  %v5484_v46 = vmul.f32 0.0078125, %v497_v6 }
  0xfb   : > { %v1666_v37 = vadd.f32 %v1665_v57, %v1664_v42  ;;  %v927_v61 = vrot.slane %v926_v39, 2  ;;  %v863_v40 = vadd.f32 %v862_v51, %v861_v18  ;;  %v653_v53 = vmul.f32 %v7563_v8, %v7563_v8  ;;  %7565 = vst [vmem:[#allocation38_spill] sm:$0xff] %v5493_v0  ;;  %v5507_v18 = vld [vmem:[%s3811_s14 + $0x320] sm:$0xff]  ;;  %v5639_v8 = vld [vmem:[%s3811_s14 + $0x370] sm:$0xff] }
  0xfc   : > { %v654_v7 = vmul.f32 %v7564_v1, %v7564_v1  ;;  %v866_v57 = vsel %vm275_vm0, %v650_v47, 0.0  ;;  %v450_v62 = vadd.f32 %v5330_v3, %v448_v5  ;;  %v868_v19 = vsel %vm275_vm0, %v651_v14, 0.0  ;;  %7566 = vst [vmem:[#allocation42_spill] sm:$0xff] %v5507_v18 }
  0xfd   : > { %v1668_v16 = vadd.f32 %v1667_v32, %v1666_v37  ;;  %v928_v13 = vadd.f32 %v927_v61, %v926_v39  ;;  %v865_v26 = vadd.f32 %v864_v31, %v863_v40  ;;  %v498_v22 = vsel %vm275_vm0, %v5476_v29, 0.0 }
  0xfe   : > { %v499_v6 = vsel %vm275_vm0, %v5479_v23, 0.0  ;;  %v501_v51 = vsel %vm275_vm0, %v5482_v45, 0.0  ;;  %v452_v42 = vadd.f32 %v5334_v38, %v450_v62  ;;  %v1018_v39 = vmul.f32 %v5484_v46, %v5484_v46 }
  0xff   : > { %v1670_v47 = vadd.f32 %v1669_v49, %v1668_v16  ;;  %v929_v32 = vrot.slane %v928_v13, 1  ;;  %v867_v3 = vadd.f32 %v866_v57, %v865_v26  ;;  %v870_v21 = vsel %vm275_vm0, %v652_v56, 0.0  ;;  %v5517_v16 = vld [vmem:[%s3811_s14 + $0x328] sm:$0xff] }
 0x100   : > { %v500_v14 = vadd.f32 %v499_v6, %v498_v22  ;;  %v503_v31 = vsel %vm275_vm0, %v5493_v0, 0.0  ;;  %v454_v49 = vadd.f32 %v5344_v9, %v452_v42  ;;  %v1673_v40 = vsel %vm275_vm0, %v1468_v60, 0.0  ;;  %7567 = vst [vmem:[#allocation57_spill] sm:$0xff] %v5517_v16 }
 0x101   : > { %v1672_v37 = vadd.f32 %v1671_v48, %v1670_v47  ;;  %v930_v61 = vadd.f32 %v929_v32, %v928_v13  ;;  %v869_v5 = vadd.f32 %v868_v19, %v867_v3  ;;  %v655_v38 = vmul.f32 %v5259_v55, %v5259_v55  ;;  %v7581_v55 = vld [vmem:[#allocation90_spill] sm:$0xff] }
 0x102   : > { %v872_v57 = vsel %vm275_vm0, %v653_v53, 0.0  ;;  %v502_v56 = vadd.f32 %v501_v51, %v500_v14  ;;  %v505_v48 = vsel %vm275_vm0, %v5507_v18, 0.0  ;;  %v455_v13 = vrot.slane %v454_v49, 4  ;;  %v7568_v51 = vld [vmem:[#allocation53_spill] sm:$0xff]  ;;  %7582 = vst [vmem:[#allocation90_spill] sm:$0xff] %v5639_v8 }
 0x103   : > { %v1674_v62 = vadd.f32 %v1673_v40, %v1672_v37  ;;  %v1010_v26 = vmul.f32 0.0078125, %v930_v61  ;;  %v871_v22 = vadd.f32 %v870_v21, %v869_v5  ;;  %v656_v9 = vmul.f32 %v5262_v36, %v5262_v36  ;;  %v5530_v21 = vld [vmem:[%s3811_s14 + $0x330] sm:$0xff]  ;;  %v5634_v36 = vld [vmem:[%s3811_s14 + $0x368] sm:$0xff] }
 0x104   : > { %v874_v60 = vsel %vm275_vm0, %v654_v7, 0.0  ;;  %v504_v19 = vadd.f32 %v503_v31, %v502_v56  ;;  %v507_v32 = vsel %vm275_vm0, %v5517_v16, 0.0  ;;  %v657_v42 = vmul.f32 %v7568_v51, %v7568_v51  ;;  %7569 = vst [vmem:[#allocation103_spill] sm:$0xff] %v5530_v21  ;;  %v7570_v31 = vld [vmem:[#allocation60_spill] sm:$0xff] }
 0x105   : > { %v1675_v6 = vrot.slane %v1674_v62, 4  ;;  %v1026_v47 = vsub.f32 %v1010_v26, %v1018_v39  ;;  %v873_v53 = vadd.f32 %v872_v57, %v871_v22  ;;  %v876_v3 = vsel %vm275_vm0, %v655_v38, 0.0 }
 0x106   : > { %v506_v14 = vadd.f32 %v505_v48, %v504_v19  ;;  %v456_v7 = vadd.f32 %v455_v13, %v454_v49  ;;  %v658_v39 = vmul.f32 %v7570_v31, %v7570_v31  ;;  %v878_v40 = vsel %vm275_vm0, %v656_v9, 0.0  ;;  %v5539_v48 = vld [vmem:[%s3811_s14 + $0x338] sm:$0xff]  ;;  %v5627_v31 = vld [vmem:[%s3811_s14 + $0x2e8] sm:$0xff] }
 0x107   : > { %v1676_v37 = vadd.f32 %v1675_v6, %v1674_v62  ;;  %v1034_v61 = vmax.f32 %v1026_v47, 0.0  ;;  %v875_v5 = vadd.f32 %v874_v60, %v873_v53  ;;  %v509_v38 = vsel %vm275_vm0, %v5530_v21, 0.0  ;;  %7571 = vst [vmem:[#allocation104_spill] sm:$0xff] %v5539_v48  ;;  %v7572_v60 = vld [vmem:[#allocation61_spill] sm:$0xff] }
 0x108   : > { %v508_v57 = vadd.f32 %v507_v32, %v506_v14  ;;  %v880_v15 = vsel %vm275_vm0, %v657_v42, 0.0  ;;  %v457_v13 = vrot.slane %v456_v7, 2  ;;  %v659_v19 = vmul.f32 %v7572_v60, %v7572_v60  ;;  %v5547_v42 = vld [vmem:[%s3811_s14 + $0x340] sm:$0xff]  ;;  %v5617_v60 = vld [vmem:[%s3811_s14 + $0x2d8] sm:$0xff] }
 0x109   : > { %v1677_v56 = vrot.slane %v1676_v37, 2  ;;  %v1170_v26 = vadd.f32 1e-05, %v1034_v61  ;;  %v877_v22 = vadd.f32 %v876_v3, %v875_v5  ;;  %v882_v53 = vsel %vm275_vm0, %v658_v39, 0.0  ;;  %7573 = vst [vmem:[#allocation105_spill] sm:$0xff] %v5547_v42 }
 0x10a   : > { %v510_v9 = vadd.f32 %v509_v38, %v508_v57  ;;  %v511_v32 = vsel %vm275_vm0, %v5539_v48, 0.0  ;;  %v458_v14 = vadd.f32 %v457_v13, %v456_v7  ;;  %v884_v39 = vsel %vm275_vm0, %v659_v19, 0.0  ;;  %v3646_v7 = vld [vmem:[%s3811_s14 + $0x280] sm:$0xff]  ;;  %v5567_v13 = vld [vmem:[%s3811_s14 + $0x348] sm:$0xff] }
 0x10b   : > { %v1678_v62 = vadd.f32 %v1677_v56, %v1676_v37  ;;  %3606 = vrsqrt.f32 %v1170_v26  ;;  %v879_v49 = vadd.f32 %v878_v40, %v877_v22  ;;  %v513_v40 = vsel %vm275_vm0, %v5547_v42, 0.0  ;;  %v3647_v56 = vld [vmem:[%s3811_s14 + $0x288] sm:$0xff]  ;;  %v3648_v22 = vld [vmem:[%s3811_s14 + $0x290] sm:$0xff]  ;;  %7575 = vst [vmem:[#allocation107_spill] sm:$0xff] %v5567_v13  ;;  %v5570_v19 = vld [vmem:[%s3811_s14 + $0x2a0] sm:$0xff] }
 0x10c   : > { %v512_v61 = vadd.f32 %v511_v32, %v510_v9  ;;  %v1117_v57 = vsub.f32 %v3646_v7, %v5484_v46  ;;  %v1118_v26 = vsub.f32 %v3647_v56, %v5484_v46  ;;  %v1119_v38 = vsub.f32 %v3648_v22, %v5484_v46  ;;  %v5590_v56 = vld [vmem:[%s3811_s14 + $0x2c0] sm:$0xff]  ;;  %v5595_v9 = vld [vmem:[%s3811_s14 + $0x350] sm:$0xff] }
 0x10d   : > { %v1679_v6 = vrot.slane %v1678_v62, 1  ;;  %v881_v47 = vadd.f32 %v880_v15, %v879_v49  ;;  %v660_v15 = vmul.f32 %v5316_v34, %v5316_v34  ;;  %7576 = vst [vmem:[#allocation108_spill] sm:$0xff] %v5595_v9  ;;  %v5601_v32 = vld [vmem:[%s3811_s14 + $0x360] sm:$0xff]  ;;  %v5609_v34 = vld [vmem:[%s3811_s14 + $0x2d0] sm:$0xff]  ;;  %v515_v22 = vsel %vm275_vm0, %v5567_v13, 0.0 }
 0x10e   : > { %7578 = vst [vmem:[#allocation110_spill] sm:$0xff] %v5601_v32  ;;  %v514_v11 = vadd.f32 %v513_v40, %v512_v61  ;;  %v5622_v40 = vld [vmem:[%s3811_s14 + $0x2e0] sm:$0xff]  ;;  %v5642_v61 = vld [vmem:[%s3811_s14 + $0x378] sm:$0xff]  ;;  %v517_v7 = vsel %vm275_vm0, %v5595_v9, 0.0  ;;  %v519_v54 = vsel %vm275_vm0, %v5598_v52, 0.0  ;;  %v677_v1 = vmul.f32 %v5476_v29, %v5476_v29 }
 0x10f   : > { %v5549_v3 = vadd.f32 %v1679_v6, %v1678_v62  ;;  %v883_v37 = vadd.f32 %v882_v53, %v881_v47  ;;  %v3649_v62 = vld [vmem:[%s3811_s14 + $0x298] sm:$0xff]  ;;  %v5575_v6 = vld [vmem:[%s3811_s14 + $0x2a8] sm:$0xff]  ;;  %v5580_v53 = vld [vmem:[%s3811_s14 + $0x2b0] sm:$0xff]  ;;  %7583 = vst [vmem:[#allocation111_spill] sm:$0xff] %v5642_v61  ;;  %v523_v24 = vsel %vm275_vm0, %v5634_v36, 0.0  ;;  %v678_v35 = vmul.f32 %v5479_v23, %v5479_v23 }
 0x110   : > { %v1120_v49 = vsub.f32 %v3649_v62, %v5484_v46  ;;  %v459_v62 = vrot.slane %v458_v14, 1  ;;  %v516_v12 = vadd.f32 %v515_v22, %v514_v11  ;;  %v5670_v11 = vsel %vm275_vm0, %v5642_v61, 0.0 }
 0x111   : > { %7574 = vst [vmem:[#allocation106_spill] sm:$0xff] %v5549_v3  ;;  %v1838_v5 = vsel %vm275_vm0, %v5549_v3, -inf  ;;  %v885_v47 = vadd.f32 %v884_v39, %v883_v37  ;;  %v5604_v3 = vld [vmem:[%s3811_s14 + $0x2c8] sm:$0xff]  ;;  %v886_v39 = vsel %vm275_vm0, %v660_v15, 0.0  ;;  %v7579_v15 = vld [vmem:[#allocation89_spill] sm:$0xff]  ;;  %v521_v37 = vsel %vm275_vm0, %v5601_v32, 0.0 }
 0x112   : > { %1839 = vmax.xlane.f32.xlu0 %v1838_v5  ;;  %v5585_v5 = vld [vmem:[%s3811_s14 + $0x2b8] sm:$0xff]  ;;  %7580 = vst [vmem:[#allocation89_spill] sm:$0xff] %v5634_v36  ;;  %v460_v51 = vadd.f32 %v459_v62, %v458_v14  ;;  %v5666_v14 = vsel %vm275_vm0, %v5639_v8, 0.0  ;;  %v681_v22 = vmul.f32 %v5507_v18, %v5507_v18  ;;  %v682_v62 = vmul.f32 %v5517_v16, %v5517_v16 }
 0x113   : > { %v887_v43 = vadd.f32 %v886_v39, %v885_v47  ;;  %v683_v39 = vmul.f32 %v5530_v21, %v5530_v21  ;;  %v518_v61 = vadd.f32 %v517_v7, %v516_v12  ;;  %v7589_v18 = vld [vmem:[#allocation82_spill] sm:$0xff]  ;;  %v932_v16 = vsel %vm275_vm0, %v678_v35, 0.0  ;;  %v7592_v7 = vld [vmem:[#allocation73_spill] sm:$0xff] }
 0x114   : > { %v5685_v23 = vmul.f32 0.0078125, %v460_v51  ;;  %v5698_v21 = vmul.f32 %v5539_v48, %v5539_v48  ;;  %v5702_v12 = vmul.f32 %v5547_v42, %v5547_v42  ;;  %v5710_v51 = vmul.f32 %v5595_v9, %v5595_v9 }
 0x115   : > { %v888_v29 = vrot.slane %v887_v43, 4 }
 0x116   : > { %v5730_v9 = vmul.f32 %v5685_v23, %v5685_v23 }
 0x117   : > { %v889_v42 = vadd.f32 %v888_v29, %v887_v43 }
 0x118   : > { %v5650_v20 = vpop.eup %3606 }
 0x119   : > { %v5655_v17 = vmul.f32 %v5650_v20, %v1117_v57  ;;  %v5658_v58 = vmul.f32 %v5650_v20, %v1118_v26  ;;  %v679_v57 = vmul.f32 %v5482_v45, %v5482_v45  ;;  %v680_v26 = vmul.f32 %v5493_v0, %v5493_v0 }
 0x11a   : > { %v5677_v47 = vmul.f32 %v5650_v20, %v1119_v38  ;;  %v931_v45 = vsel %vm275_vm0, %v677_v1, 0.0  ;;  %v5689_v0 = vmul.f32 %v5650_v20, %v1120_v49  ;;  %v7588_v38 = vld [vmem:[#allocation74_spill] sm:$0xff]  ;;  %v5706_v1 = vmul.f32 %v5567_v13, %v5567_v13 }
 0x11b   : > { %7584 = vst [vmem:[#allocation112_spill] sm:$0xff] %v5655_v17  ;;  %7585 = vst [vmem:[#allocation113_spill] sm:$0xff] %v5658_v58  ;;  %v1485_v25 = vmul.f32 %v7588_v38, %v5655_v17  ;;  %v1486_v8 = vmul.f32 %v7589_v18, %v5658_v58  ;;  %v7590_v49 = vsub.f32 %v5570_v19, %v5484_v46  ;;  %v934_v29 = vsel %vm275_vm0, %v679_v57, 0.0 }
 0x11c   : > { %7586 = vst [vmem:[#allocation114_spill] sm:$0xff] %v5677_v47  ;;  %7587 = vst [vmem:[#allocation115_spill] sm:$0xff] %v5689_v0  ;;  %v1487_v17 = vmul.f32 %v7592_v7, %v5677_v47  ;;  %v5722_v58 = vmul.f32 %v5598_v52, %v5598_v52  ;;  %v5726_v13 = vmul.f32 %v5601_v32, %v5601_v32  ;;  %v936_v18 = vsel %vm275_vm0, %v680_v26, 0.0 }
 0x11d   : > { %v5716_v35 = vmul.f32 %v5650_v20, %v7590_v49  ;;  %v520_v19 = vadd.f32 %v519_v54, %v518_v61  ;;  %v933_v48 = vadd.f32 %v932_v16, %v931_v45  ;;  %v7593_v49 = vsub.f32 %v5575_v6, %v5484_v46 }
 0x11e   : > { %v1488_v52 = vmul.f32 %v4747_v63, %v5689_v0  ;;  %v1718_v7 = vsel %vm275_vm0, %v1485_v25, 0.0  ;;  %v1719_v32 = vsel %vm275_vm0, %v1486_v8, 0.0  ;;  %v938_v54 = vsel %vm275_vm0, %v681_v22, 0.0 }
 0x11f   : > { %7591 = vst [vmem:[#allocation116_spill] sm:$0xff] %v5716_v35  ;;  %v5736_v47 = vmul.f32 %v5650_v20, %v7593_v49  ;;  %v1720_v43 = vadd.f32 %v1719_v32, %v1718_v7  ;;  %v7595_v45 = vsub.f32 %v5580_v53, %v5484_v46  ;;  %v1489_v6 = vmul.f32 %v4786_v10, %v5716_v35 }
 0x120   : > { %v1721_v25 = vsel %vm275_vm0, %v1487_v17, 0.0  ;;  %v940_v8 = vsel %vm275_vm0, %v682_v62, 0.0  ;;  %v7597_v32 = vsub.f32 %v5585_v5, %v5484_v46  ;;  %v7599_v57 = vsub.f32 %v5590_v56, %v5484_v46 }
 0x121   : > { %7594 = vst [vmem:[#allocation117_spill] sm:$0xff] %v5736_v47  ;;  %v5749_v16 = vmul.f32 %v5650_v20, %v7595_v45  ;;  %v1722_v26 = vadd.f32 %v1721_v25, %v1720_v43  ;;  %v942_v22 = vsel %vm275_vm0, %v683_v39, 0.0  ;;  %v1490_v17 = vmul.f32 %v4784_v41, %v5736_v47 }
 0x122   : > { %v5759_v61 = vmul.f32 %v5650_v20, %v7597_v32  ;;  %v5765_v53 = vmul.f32 %v5650_v20, %v7599_v57  ;;  %v1723_v62 = vsel %vm275_vm0, %v1488_v52, 0.0  ;;  %v890_v5 = vrot.slane %v889_v42, 2  ;;  %v5787_v57 = vld [vmem:[%s3811_s14 + $0x380] sm:$0xff] }
 0x123   : > { %7596 = vst [vmem:[#allocation118_spill] sm:$0xff] %v5749_v16  ;;  %v522_v7 = vadd.f32 %v521_v37, %v520_v19  ;;  %v7601_v49 = vsub.f32 %v5604_v3, %v5484_v46  ;;  %v7603_v43 = vsub.f32 %v5609_v34, %v5484_v46  ;;  %v1724_v45 = vadd.f32 %v1723_v62, %v1722_v26  ;;  %v5802_v62 = vld [vmem:[%s3811_s14 + $0x388] sm:$0xff] }
 0x124   : > { %7598 = vst [vmem:[#allocation119_spill] sm:$0xff] %v5759_v61  ;;  %7600 = vst [vmem:[#allocation120_spill] sm:$0xff] %v5765_v53  ;;  %v935_v25 = vadd.f32 %v934_v29, %v933_v48  ;;  %v1491_v52 = vmul.f32 %v4810_v30, %v5749_v16  ;;  %v1725_v32 = vsel %vm275_vm0, %v1489_v6, 0.0  ;;  %v891_v37 = vadd.f32 %v890_v5, %v889_v42  ;;  %v5805_v42 = vld [vmem:[%s3811_s14 + $0x390] sm:$0xff]  ;;  %v5936_v16 = vld [vmem:[%s3811_s14 + $0x3c8] sm:$0xff] }
 0x125   : > { %v5775_v56 = vmul.f32 %v5650_v20, %v7601_v49  ;;  %v5781_v39 = vmul.f32 %v5650_v20, %v7603_v43  ;;  %v524_v19 = vadd.f32 %v523_v24, %v522_v7  ;;  %7605 = vst [vmem:[#allocation123_spill] sm:$0xff] %v5787_v57  ;;  %v7606_v3 = vsub.f32 %v5617_v60, %v5484_v46 }
 0x126   : > { %v7608_v34 = vsub.f32 %v5622_v40, %v5484_v46  ;;  %v1726_v29 = vadd.f32 %v1725_v32, %v1724_v45  ;;  %v937_v26 = vadd.f32 %v936_v18, %v935_v25  ;;  %7610 = vst [vmem:[#allocation126_spill] sm:$0xff] %v5802_v62  ;;  %7611 = vst [vmem:[#allocation127_spill] sm:$0xff] %v5805_v42  ;;  %v1727_v60 = vsel %vm275_vm0, %v1490_v17, 0.0 }
 0x127   : > { %7602 = vst [vmem:[#allocation121_spill] sm:$0xff] %v5775_v56  ;;  %7604 = vst [vmem:[#allocation122_spill] sm:$0xff] %v5781_v39  ;;  %v5793_v49 = vmul.f32 %v5650_v20, %v7606_v3  ;;  %v1492_v24 = vmul.f32 %v4808_v4, %v5759_v61  ;;  %v892_v6 = vrot.slane %v891_v37, 1  ;;  %v526_v5 = vadd.f32 %v5666_v14, %v524_v19 }
 0x128   : > { %v5799_v48 = vmul.f32 %v5650_v20, %v7608_v34  ;;  %v1493_v40 = vmul.f32 %v4838_v44, %v5765_v53  ;;  %v1728_v7 = vadd.f32 %v1727_v60, %v1726_v29  ;;  %v939_v43 = vadd.f32 %v938_v54, %v937_v26  ;;  %v5823_v34 = vld [vmem:[%s3811_s14 + $0x398] sm:$0xff]  ;;  %v7641_v53 = vld [vmem:[#allocation60_spill] sm:$0xff] }
 0x129   : > { %7607 = vst [vmem:[#allocation124_spill] sm:$0xff] %v5793_v49  ;;  %v535_v18 = vsel %vm275_vm0, %v5787_v57, 0.0  ;;  %v1729_v45 = vsel %vm275_vm0, %v1491_v52, 0.0  ;;  %v893_v25 = vadd.f32 %v892_v6, %v891_v37  ;;  %v536_v32 = vsel %vm275_vm0, %v5802_v62, 0.0  ;;  %7612 = vst [vmem:[#allocation128_spill] sm:$0xff] %v5823_v34 }
 0x12a   : > { %7609 = vst [vmem:[#allocation125_spill] sm:$0xff] %v5799_v48  ;;  %v538_v17 = vsel %vm275_vm0, %v5805_v42, 0.0  ;;  %v1494_v14 = vmul.f32 %v4836_v59, %v5775_v56  ;;  %v1730_v19 = vadd.f32 %v1729_v45, %v1728_v7  ;;  %v941_v3 = vadd.f32 %v940_v8, %v939_v43 }
 0x12b   : > { %v537_v54 = vadd.f32 %v536_v32, %v535_v18  ;;  %v1731_v29 = vsel %vm275_vm0, %v1492_v24, 0.0  ;;  %v1009_v26 = vmul.f32 0.0078125, %v893_v25  ;;  %v528_v52 = vadd.f32 %v5670_v11, %v526_v5 }
 0x12c   : > { %v944_v37 = vsel %vm275_vm0, %v5698_v21, 0.0  ;;  %v1495_v60 = vmul.f32 %v4863_v50, %v5781_v39  ;;  %v1732_v6 = vadd.f32 %v1731_v29, %v1730_v19  ;;  %v943_v0 = vadd.f32 %v942_v22, %v941_v3  ;;  %v5948_v39 = vld [vmem:[%s3811_s14 + $0x3d8] sm:$0xff] }
 0x12d   : > { %v539_v35 = vadd.f32 %v538_v17, %v537_v54  ;;  %v1733_v8 = vsel %vm275_vm0, %v1493_v40, 0.0  ;;  %v1025_v7 = vsub.f32 %v1009_v26, %v5730_v9  ;;  %v946_v24 = vsel %vm275_vm0, %v5702_v12, 0.0  ;;  %v5846_v40 = vld [vmem:[%s3811_s14 + $0x3a0] sm:$0xff] }
 0x12e   : > { %v540_v43 = vsel %vm275_vm0, %v5823_v34, 0.0  ;;  %v7613_v11 = vsub.f32 %v5627_v31, %v5484_v46  ;;  %v1496_v22 = vmul.f32 %v4861_v27, %v5793_v49  ;;  %v1734_v5 = vadd.f32 %v1733_v8, %v1732_v6  ;;  %7615 = vst [vmem:[#allocation130_spill] sm:$0xff] %v5846_v40 }
 0x12f   : > { %v945_v18 = vadd.f32 %v944_v37, %v943_v0  ;;  %v1735_v9 = vsel %vm275_vm0, %v1494_v14, 0.0  ;;  %v1033_v12 = vmax.f32 %v1025_v7, 0.0  ;;  %v529_v45 = vrot.slane %v528_v52, 4 }
 0x130   : > { %v5841_v21 = vmul.f32 %v5650_v20, %v7613_v11  ;;  %v948_v25 = vsel %vm275_vm0, %v5706_v1, 0.0  ;;  %v1497_v31 = vmul.f32 %v7551_v33, %v5799_v48  ;;  %v1736_v32 = vadd.f32 %v1735_v9, %v1734_v5 }
 0x131   : > { %v947_v17 = vadd.f32 %v946_v24, %v945_v18  ;;  %v541_v19 = vadd.f32 %v540_v43, %v539_v35  ;;  %v1737_v3 = vsel %vm275_vm0, %v1495_v60, 0.0  ;;  %v1169_v54 = vadd.f32 1e-05, %v1033_v12  ;;  %v5867_v60 = vld [vmem:[%s3811_s14 + $0x3a8] sm:$0xff] }
 0x132   : > { %7614 = vst [vmem:[#allocation129_spill] sm:$0xff] %v5841_v21  ;;  %v950_v0 = vsel %vm275_vm0, %v5710_v51, 0.0  ;;  %v542_v14 = vsel %vm275_vm0, %v5846_v40, 0.0  ;;  %v7616_v29 = vsub.f32 %v7579_v15, %v5484_v46  ;;  %v1498_v26 = vmul.f32 %v7552_v2, %v5841_v21  ;;  %7618 = vst [vmem:[#allocation132_spill] sm:$0xff] %v5867_v60  ;;  %v7645_v21 = vld [vmem:[#allocation77_spill] sm:$0xff] }
 0x133   : > { %v1738_v37 = vadd.f32 %v1737_v3, %v1736_v32  ;;  %v949_v35 = vadd.f32 %v948_v25, %v947_v17  ;;  %v1739_v6 = vsel %vm275_vm0, %v1496_v22, 0.0  ;;  %3608 = vrsqrt.f32 %v1169_v54  ;;  %v5880_v22 = vld [vmem:[%s3811_s14 + $0x3b0] sm:$0xff] }
 0x134   : > { %v5862_v1 = vmul.f32 %v5650_v20, %v7616_v29  ;;  %v530_v51 = vadd.f32 %v529_v45, %v528_v52  ;;  %v952_v8 = vsel %vm275_vm0, %v5722_v58, 0.0  ;;  %v543_v24 = vadd.f32 %v542_v14, %v541_v19  ;;  %7619 = vst [vmem:[#allocation133_spill] sm:$0xff] %v5880_v22  ;;  %v7622_v19 = vld [vmem:[#allocation90_spill] sm:$0xff]  ;;  %v7625_v14 = vld [vmem:[#allocation111_spill] sm:$0xff] }
 0x135   : > { %v1740_v7 = vadd.f32 %v1739_v6, %v1738_v37  ;;  %v951_v15 = vadd.f32 %v950_v0, %v949_v35  ;;  %v1741_v43 = vsel %vm275_vm0, %v1497_v31, 0.0  ;;  %v544_v11 = vsel %vm275_vm0, %v5867_v60, 0.0  ;;  %v5903_v37 = vld [vmem:[%s3811_s14 + $0x3b8] sm:$0xff]  ;;  %v7627_v35 = vld [vmem:[#allocation93_spill] sm:$0xff] }
 0x136   : > { %7617 = vst [vmem:[#allocation131_spill] sm:$0xff] %v5862_v1  ;;  %v690_v18 = vmul.f32 %v5634_v36, %v5634_v36  ;;  %v954_v52 = vsel %vm275_vm0, %v5726_v13, 0.0  ;;  %v7620_v58 = vsub.f32 %v7581_v55, %v5484_v46  ;;  %v1499_v45 = vmul.f32 %v7553_v28, %v5862_v1  ;;  %v7623_v55 = vld [vmem:[#allocation34_spill] sm:$0xff]  ;;  %7639 = vst [vmem:[#allocation93_spill] sm:$0xff] %v5936_v16 }
 0x137   : > { %v1742_v5 = vadd.f32 %v1741_v43, %v1740_v7  ;;  %v953_v9 = vadd.f32 %v952_v8, %v951_v15  ;;  %v1743_v25 = vsel %vm275_vm0, %v1498_v26, 0.0  ;;  %v531_v31 = vrot.slane %v530_v51, 2  ;;  %7626 = vst [vmem:[#allocation34_spill] sm:$0xff] %v5903_v37  ;;  %v7628_v7 = vld [vmem:[#allocation35_spill] sm:$0xff] }
 0x138   : > { %v5886_v12 = vmul.f32 %v5650_v20, %v7620_v58  ;;  %v545_v17 = vadd.f32 %v544_v11, %v543_v24  ;;  %v691_v3 = vmul.f32 %v7622_v19, %v7622_v19  ;;  %v546_v54 = vsel %vm275_vm0, %v5880_v22, 0.0  ;;  %v7624_v20 = vld [vmem:[#allocation83_spill] sm:$0xff]  ;;  %v7629_v11 = vld [vmem:[#allocation36_spill] sm:$0xff]  ;;  %v7631_v58 = vld [vmem:[#allocation85_spill] sm:$0xff] }
 0x139   : > { %v1744_v32 = vadd.f32 %v1743_v25, %v1742_v5  ;;  %v955_v13 = vadd.f32 %v954_v52, %v953_v9  ;;  %v1101_v46 = vsub.f32 %v7623_v55, %v5685_v23  ;;  %v1102_v0 = vsub.f32 %v7624_v20, %v5685_v23  ;;  %v7630_v9 = vld [vmem:[#allocation84_spill] sm:$0xff]  ;;  %v7632_v55 = vld [vmem:[#allocation86_spill] sm:$0xff] }
 0x13a   : > { %7621 = vst [vmem:[#allocation134_spill] sm:$0xff] %v5886_v12  ;;  %v692_v29 = vmul.f32 %v7625_v14, %v7625_v14  ;;  %v956_v26 = vsel %vm275_vm0, %v690_v18, 0.0  ;;  %v1500_v6 = vmul.f32 %v7627_v35, %v5886_v12  ;;  %v1745_v8 = vsel %vm275_vm0, %v1499_v45, 0.0 }
 0x13b   : > { %v1103_v15 = vsub.f32 %v7628_v7, %v5685_v23  ;;  %v532_v24 = vadd.f32 %v531_v31, %v530_v51  ;;  %v1746_v43 = vadd.f32 %v1745_v8, %v1744_v32  ;;  %v1104_v5 = vsub.f32 %v7629_v11, %v5685_v23  ;;  %v7633_v31 = vld [vmem:[#allocation39_spill] sm:$0xff]  ;;  %v7634_v8 = vld [vmem:[#allocation40_spill] sm:$0xff]  ;;  %v7644_v32 = vld [vmem:[#allocation61_spill] sm:$0xff] }
 0x13c   : > { %v1105_v18 = vsub.f32 %v7630_v9, %v5685_v23  ;;  %v547_v52 = vadd.f32 %v546_v54, %v545_v17  ;;  %v1106_v25 = vsub.f32 %v7631_v58, %v5685_v23  ;;  %v1107_v20 = vsub.f32 %v7632_v55, %v5685_v23  ;;  %v7635_v17 = vld [vmem:[#allocation41_spill] sm:$0xff]  ;;  %v5928_v9 = vld [vmem:[%s3811_s14 + $0x3c0] sm:$0xff]  ;;  %v7638_v55 = vld [vmem:[#allocation52_spill] sm:$0xff] }
 0x13d   : > { %v957_v45 = vadd.f32 %v956_v26, %v955_v13  ;;  %v548_v51 = vsel %vm275_vm0, %v5903_v37, 0.0  ;;  %v958_v11 = vsel %vm275_vm0, %v691_v3, 0.0  ;;  %7636 = vst [vmem:[#allocation83_spill] sm:$0xff] %v5928_v9  ;;  %v1747_v13 = vsel %vm275_vm0, %v1500_v6, 0.0  ;;  %v7637_v26 = vld [vmem:[#allocation22_spill] sm:$0xff]  ;;  %v7640_v54 = vld [vmem:[#allocation53_spill] sm:$0xff] }
 0x13e   : > { %v533_v47 = vrot.slane %v532_v24, 1  ;;  %v1748_v61 = vadd.f32 %v1747_v13, %v1746_v43  ;;  %v5945_v6 = vld [vmem:[%s3811_s14 + $0x3d0] sm:$0xff]  ;;  %v5951_v58 = vld [vmem:[%s3811_s14 + $0x3e0] sm:$0xff]  ;;  %v549_v49 = vadd.f32 %v548_v51, %v547_v52  ;;  %v5958_v13 = vld [vmem:[%s3811_s14 + $0x3e8] sm:$0xff]  ;;  %v550_v3 = vsel %vm275_vm0, %v5928_v9, 0.0 }
 0x13f   : > { %7642 = vst [vmem:[#allocation35_spill] sm:$0xff] %v5945_v6  ;;  %7643 = vst [vmem:[#allocation36_spill] sm:$0xff] %v5951_v58  ;;  %v959_v43 = vadd.f32 %v958_v11, %v957_v45  ;;  %v960_v52 = vsel %vm275_vm0, %v692_v29, 0.0  ;;  %v552_v51 = vsel %vm275_vm0, %v5936_v16, 0.0  ;;  %v554_v45 = vsel %vm275_vm0, %v5945_v6, 0.0 }
 0x140   : > { %v5938_v7 = vpop.eup %3608  ;;  %7646 = vst [vmem:[#allocation84_spill] sm:$0xff] %v5958_v13  ;;  %v534_v48 = vadd.f32 %v533_v47, %v532_v24  ;;  %v5975_v11 = vsel %vm275_vm0, %v5948_v39, 0.0  ;;  %v1749_v1 = vrot.slane %v1748_v61, 4  ;;  %v551_v29 = vadd.f32 %v550_v3, %v549_v49 }
 0x141   : > { %v5963_v56 = vmul.f32 %v5938_v7, %v1101_v46  ;;  %v5966_v12 = vmul.f32 %v5938_v7, %v1102_v0  ;;  %v5979_v46 = vsel %vm275_vm0, %v5951_v58, 0.0  ;;  %v5982_v0 = vmul.f32 %v5938_v7, %v1103_v15  ;;  %v7651_v15 = vld [vmem:[#allocation82_spill] sm:$0xff] }
 0x142   : > { %v5986_v14 = vsel %vm275_vm0, %v5958_v13, 0.0  ;;  %v961_v47 = vadd.f32 %v960_v52, %v959_v43  ;;  %v693_v24 = vmul.f32 %v5787_v57, %v5787_v57  ;;  %v694_v19 = vmul.f32 %v5802_v62, %v5802_v62 }
 0x143   : > { %7647 = vst [vmem:[#allocation85_spill] sm:$0xff] %v5963_v56  ;;  %7648 = vst [vmem:[#allocation86_spill] sm:$0xff] %v5966_v12  ;;  %v695_v36 = vmul.f32 %v5805_v42, %v5805_v42  ;;  %v5995_v58 = vmul.f32 %v5938_v7, %v1104_v5  ;;  %v1469_v49 = vmul.f32 %v7588_v38, %v5963_v56  ;;  %v6003_v52 = vmul.f32 0.0078125, %v534_v48 }
 0x144   : > { %7649 = vst [vmem:[#allocation39_spill] sm:$0xff] %v5982_v0  ;;  %v1470_v3 = vmul.f32 %v7651_v15, %v5966_v12  ;;  %v696_v43 = vmul.f32 %v5823_v34, %v5823_v34  ;;  %v697_v62 = vmul.f32 %v5846_v40, %v5846_v40  ;;  %v6009_v42 = vmul.f32 %v5867_v60, %v5867_v60  ;;  %v7654_v12 = vld [vmem:[#allocation73_spill] sm:$0xff] }
 0x145   : > { %7650 = vst [vmem:[#allocation40_spill] sm:$0xff] %v5995_v58  ;;  %7652 = vst [vmem:[#allocation41_spill] sm:$0xff] %v6003_v52  ;;  %v6013_v5 = vmul.f32 %v5880_v22, %v5880_v22  ;;  %v1750_v56 = vadd.f32 %v1749_v1, %v1748_v61  ;;  %v6016_v57 = vmul.f32 %v5938_v7, %v1105_v18  ;;  %v962_v15 = vrot.slane %v961_v47, 4 }
 0x146   : > { %v1471_v34 = vmul.f32 %v7654_v12, %v5982_v0  ;;  %v553_v48 = vadd.f32 %v552_v51, %v551_v29  ;;  %v6022_v40 = vmul.f32 %v5903_v37, %v5903_v37  ;;  %v6026_v60 = vmul.f32 %v5928_v9, %v5928_v9  ;;  %v7661_v12 = vld [vmem:[#allocation80_spill] sm:$0xff] }
 0x147   : > { %7653 = vst [vmem:[#allocation22_spill] sm:$0xff] %v6016_v57  ;;  %v6030_v22 = vmul.f32 %v5936_v16, %v5936_v16  ;;  %v6033_v61 = vmul.f32 %v5938_v7, %v1106_v25  ;;  %v1472_v1 = vmul.f32 %v4747_v63, %v5995_v58  ;;  %v1681_v18 = vsel %vm275_vm0, %v1469_v49, 0.0  ;;  %v7660_v63 = vld [vmem:[#allocation28_spill] sm:$0xff] }
 0x148   : > { %v1682_v51 = vsel %vm275_vm0, %v1470_v3, 0.0  ;;  %v6040_v29 = vmul.f32 %v5938_v7, %v1107_v20  ;;  %v6044_v9 = vmul.f32 %v6003_v52, %v6003_v52  ;;  %v6048_v16 = vmul.f32 %v5945_v6, %v5945_v6 }
 0x149   : > { %7655 = vst [vmem:[#allocation52_spill] sm:$0xff] %v6033_v61  ;;  %v1683_v0 = vadd.f32 %v1682_v51, %v1681_v18  ;;  %v1751_v25 = vrot.slane %v1750_v56, 2  ;;  %v1473_v58 = vmul.f32 %v4786_v10, %v6016_v57  ;;  %v1684_v49 = vsel %vm275_vm0, %v1471_v34, 0.0 }
 0x14a   : > { %v555_v37 = vadd.f32 %v554_v45, %v553_v48  ;;  %v7656_v20 = vsub.f32 %v7633_v31, %v5685_v23  ;;  %v7657_v18 = vsub.f32 %v7634_v8, %v5685_v23  ;;  %v7658_v6 = vsub.f32 %v7635_v17, %v5685_v23 }
 0x14b   : > { %v1685_v34 = vadd.f32 %v1684_v49, %v1683_v0  ;;  %v7659_v31 = vsub.f32 %v7637_v26, %v5685_v23  ;;  %v1474_v8 = vmul.f32 %v4784_v41, %v6033_v61  ;;  %v963_v10 = vadd.f32 %v962_v15, %v961_v47 }
 0x14c   : > { %v6057_v3 = vmul.f32 %v5938_v7, %v7656_v20  ;;  %v6063_v51 = vmul.f32 %v5938_v7, %v7657_v18  ;;  %v6069_v57 = vmul.f32 %v5938_v7, %v7658_v6  ;;  %v1686_v18 = vsel %vm275_vm0, %v1472_v1, 0.0 }
 0x14d   : > { %v6075_v20 = vmul.f32 %v5938_v7, %v7659_v31  ;;  %v1475_v0 = vmul.f32 %v4810_v30, %v6040_v29  ;;  %v1687_v49 = vadd.f32 %v1686_v18, %v1685_v34  ;;  %v1688_v38 = vsel %vm275_vm0, %v1473_v58, 0.0 }
 0x14e   : > { %v1834_v45 = vpop.xlane.xlu1 %1833  ;;  %v1831_v48 = vpop.xlane.xlu0 %1830  ;;  %v964_v26 = vrot.slane %v963_v10, 2  ;;  %v968_v31 = vsel %vm275_vm0, %v693_v24, 0.0  ;;  %v969_v13 = vsel %vm275_vm0, %v694_v19, 0.0  ;;  %v971_v47 = vsel %vm275_vm0, %v695_v36, 0.0 }
 0x14f   : > { %v1854_v17 = vsub.f32 %v7660_v63, %v1834_v45  ;;  %v1853_v6 = vsub.f32 %v7661_v12, %v1831_v48  ;;  %v1689_v41 = vadd.f32 %v1688_v38, %v1687_v49  ;;  %v1476_v63 = vmul.f32 %v4808_v4, %v6057_v3 }
 0x150   : > { %v1690_v12 = vsel %vm275_vm0, %v1474_v8, 0.0  ;;  %v965_v15 = vadd.f32 %v964_v26, %v963_v10  ;;  %v970_v1 = vadd.f32 %v969_v13, %v968_v31  ;;  %v1477_v58 = vmul.f32 %v4838_v44, %v6063_v51 }
 0x151   : > { %v1863_v52 = vmul.f32 1.442695, %v1854_v17  ;;  %v1861_v61 = vmul.f32 1.442695, %v1853_v6  ;;  %v1691_v34 = vadd.f32 %v1690_v12, %v1689_v41  ;;  %v973_v24 = vsel %vm275_vm0, %v696_v43, 0.0 }
 0x152   : > { %v1692_v19 = vsel %vm275_vm0, %v1475_v0, 0.0  ;;  %v966_v38 = vrot.slane %v965_v15, 1  ;;  %v972_v45 = vadd.f32 %v971_v47, %v970_v1  ;;  %v1752_v36 = vadd.f32 %v1751_v25, %v1750_v56 }
 0x153   : > { %3610 = vpow2.f32 %v1863_v52  ;;  %v7662_v48 = vsub.f32 %v7638_v55, %v5685_v23  ;;  %v1693_v10 = vadd.f32 %v1692_v19, %v1691_v34  ;;  %v975_v13 = vsel %vm275_vm0, %v697_v62, 0.0  ;;  %v7666_v34 = vld [vmem:[#allocation69_spill] sm:$0xff] }
 0x154   : > { %3612 = vpow2.f32 %v1861_v61  ;;  %v1478_v41 = vmul.f32 %v4836_v59, %v6069_v57  ;;  %v1694_v43 = vsel %vm275_vm0, %v1476_v63, 0.0  ;;  %v967_v52 = vadd.f32 %v966_v38, %v965_v15  ;;  %v6148_v38 = vld [vmem:[%s3811_s14 + $0x3f0] sm:$0xff] }
 0x155   : > { %v6099_v8 = vmul.f32 %v5938_v7, %v7662_v48  ;;  %v974_v61 = vadd.f32 %v973_v24, %v972_v45  ;;  %v7663_v18 = vsub.f32 %v7640_v54, %v5685_v23  ;;  %v1695_v55 = vadd.f32 %v1694_v43, %v1693_v10 }
 0x156   : > { %v557_v25 = vadd.f32 %v5975_v11, %v555_v37  ;;  %v977_v17 = vsel %vm275_vm0, %v6009_v42, 0.0  ;;  %v1479_v62 = vmul.f32 %v4863_v50, %v6075_v20  ;;  %v1696_v6 = vsel %vm275_vm0, %v1477_v58, 0.0 }
 0x157   : > { %v6109_v56 = vmul.f32 %v5938_v7, %v7663_v18  ;;  %v1011_v0 = vmul.f32 0.0078125, %v967_v52  ;;  %v976_v49 = vadd.f32 %v975_v13, %v974_v61  ;;  %v7664_v26 = vsub.f32 %v7641_v53, %v5685_v23 }
 0x158   : > { %v1697_v31 = vadd.f32 %v1696_v6, %v1695_v55  ;;  %v979_v37 = vsel %vm275_vm0, %v6013_v5, 0.0  ;;  %v1480_v42 = vmul.f32 %v4861_v27, %v6099_v8  ;;  %v1698_v11 = vsel %vm275_vm0, %v1478_v41, 0.0 }
 0x159   : > { %v6121_v54 = vmul.f32 %v5938_v7, %v7664_v26  ;;  %v1027_v47 = vsub.f32 %v1011_v0, %v6044_v9  ;;  %v978_v63 = vadd.f32 %v977_v17, %v976_v49  ;;  %v7233_v12 = vmov 0.0   ;;  %v7667_v9 = vld [vmem:[#allocation59_spill] sm:$0xff] }
 0x15a   : > { %3274 = vmatprep.subr.mxu0 %v7233_v12  ;;  %3309 = vmatprep.subr.mxu1 %v7233_v12  ;;  %v7665_v53 = vsub.f32 %v7644_v32, %v5685_v23  ;;  %v1699_v5 = vadd.f32 %v1698_v11, %v1697_v31  ;;  %v559_v1 = vadd.f32 %v5979_v46, %v557_v25  ;;  %v981_v58 = vsel %vm275_vm0, %v6022_v40, 0.0  ;;  %v6186_v31 = vld [vmem:[%s3811_s14 + $0x3f8] sm:$0xff]  ;;  %s137_s14 = sand.u32 1, %s3712_s10  }
 0x15b   : > { %3275 = vmatpush3.xpose.msk.msra.mxu0 %vm275_vm0, %v7666_v34  ;;  %3310 = vmatpush3.xpose.msk.msra.mxu1 %vm275_vm0, %v7667_v9  ;;  %v1481_v24 = vmul.f32 %v7551_v33, %v6109_v56  ;;  %v1700_v32 = vsel %vm275_vm0, %v1479_v62, 0.0  ;;  %v1035_v19 = vmax.f32 %v1027_v47, 0.0  ;;  %v980_v45 = vadd.f32 %v979_v37, %v978_v63  ;;  %v7672_v34 = vld [vmem:[#allocation55_spill] sm:$0xff]  ;;  %s2993_s21 = sshll.u32 %s137_s14, 3  ;;  %s2917_s28 = scalar_lea.sflag [#allocation3], %s137_s14 }
 0x15c   : > { %v6135_v15 = vmul.f32 %v5938_v7, %v7665_v53  ;;  %3276 = vmatprep.subr.mxu0 %v7233_v12  ;;  %3311 = vmatprep.subr.mxu1 %v7233_v12  ;;  %v1753_v40 = vrot.slane %v1752_v36, 1  ;;  %v7668_v46 = vsub.f32 %v7645_v21, %v5685_v23  ;;  %v1701_v10 = vadd.f32 %v1700_v32, %v1699_v5  ;;  %v7671_v53 = vld [vmem:[#allocation67_spill] sm:$0xff]  ;;  %s139_s23 = scalar_lea.vmem [#allocation2], %s2993_s21 }
 0x15d   : > { %v983_v13 = vsel %vm275_vm0, %v6026_v60, 0.0  ;;  %v1482_v41 = vmul.f32 %v7552_v2, %v6121_v54  ;;  %v1702_v43 = vsel %vm275_vm0, %v1480_v42, 0.0  ;;  %v1171_v52 = vadd.f32 1e-05, %v1035_v19  ;;  %v7670_v60 = vld [vmem:[#allocation56_spill] sm:$0xff]  ;;  %s2930_s24 = sshll.u32 %s139_s23, 4  ;;  %s2931_s24 = int_to_ptr.vmem [resolvable:$true] %s2930_s24 }
 0x15e   : > { %v6156_v48 = vmul.f32 %v5938_v7, %v7668_v46  ;;  %v982_v61 = vadd.f32 %v981_v58, %v980_v45  ;;  %v1483_v18 = vmul.f32 %v7553_v28, %v6135_v15  ;;  %v1703_v55 = vadd.f32 %v1702_v43, %v1701_v10  ;;  %v7669_v7 = vld [vmem:[#allocation68_spill] sm:$0xff]  ;;  %v7673_v46 = vld [vmem:[#allocation66_spill] sm:$0xff]  ;;  %s3660_s29 = scalar_lea.vmem %s2931_s24, 128  ;;  %p3667_p0 = scmp.lt.s32.totalorder %s2931_s24, %s3665_s30 }
 0x15f   : > { %v561_v23 = vadd.f32 %v5986_v14, %v559_v1  ;;  %v562_v21 = vsel %vm275_vm0, %v6148_v38, 0.0  ;;  %3277 = vmatpush3.xpose.msk.msra.mxu0 %vm275_vm0, %v7669_v7  ;;  %3312 = vmatpush3.xpose.msk.msra.mxu1 %vm275_vm0, %v7670_v60  ;;  %v1704_v17 = vsel %vm275_vm0, %v1481_v24, 0.0  ;;  %3614 = vrsqrt.f32 %v1171_v52  ;;  %v7679_v60 = vld [vmem:[#allocation91_spill] sm:$0xff]  ;;  %p3661_p11 = scmp.ne.s32.totalorder %s2931_s24, %s3660_s29  ;;  %p3668_p1 = scmp.lt.s32.totalorder %s3666_s3, %s3660_s29 }
 0x160   : > { %v6172_v25 = vpop.eup %3610  ;;  %v984_v62 = vadd.f32 %v983_v13, %v982_v61  ;;  %v985_v6 = vsel %vm275_vm0, %v6030_v22, 0.0  ;;  %3278 = vmatprep.subr.mxu0 %v7233_v12  ;;  %3313 = vmatprep.subr.mxu1 %v7233_v12  ;;  %v6183_v49 = vadd.f32 %v1753_v40, %v1752_v36  ;;  %v1705_v26 = vadd.f32 %v1704_v17, %v1703_v55  ;;  %v7676_v55 = vld [vmem:[#allocation65_spill] sm:$0xff] }
 0x161   : > { %v6179_v14 = vpop.eup %3612  ;;  %v1880_v0 = vsel %vm275_vm0, %v6172_v25, 0.0  ;;  %v1484_v22 = vmul.f32 %v7627_v35, %v6156_v48  ;;  %v1706_v42 = vsel %vm275_vm0, %v1482_v41, 0.0  ;;  %v563_v47 = vadd.f32 %v562_v21, %v561_v23  ;;  %v7675_v41 = vld [vmem:[#allocation54_spill] sm:$0xff]  ;;  %v7677_v23 = vld [vmem:[#allocation41_spill] sm:$0xff]  ;;  %v7678_v21 = vld [vmem:[#allocation92_spill] sm:$0xff]  ;;  %p3662_p12 = pnand %p3661_p11, %p3779_p5  ;;  %p3669_p2 = por %p3668_p1, %p3667_p0 }
 0x162   : > { %1881 = vadd.xlane.f32.xlu0 %v1880_v0  ;;  %v1877_v37 = vsel %vm275_vm0, %v6179_v14, 0.0  ;;  %v1707_v11 = vadd.f32 %v1706_v42, %v1705_v26  ;;  %v986_v63 = vadd.f32 %v985_v6, %v984_v62  ;;  %v1708_v36 = vsel %vm275_vm0, %v1483_v18, 0.0  ;;  %v7680_v62 = vld [vmem:[#allocation84_spill] sm:$0xff]  ;;  %v7681_v26 = vld [vmem:[#allocation51_spill] sm:$0xff] }
 0x163   : > { %1878 = vadd.xlane.f32.xlu1 %v1877_v37  ;;  %3279 = vmatpush3.xpose.msk.msra.mxu0 %vm275_vm0, %v7671_v53  ;;  %v564_v5 = vsel %vm275_vm0, %v6186_v31, 0.0  ;;  %v704_v1 = vmul.f32 %v5948_v39, %v5948_v39  ;;  %v987_v58 = vsel %vm275_vm0, %v6048_v16, 0.0  ;;  %v1844_v9 = vsel %vm275_vm0, %v6183_v49, -inf  ;;  %v7674_v16 = vld [vmem:[#allocation36_spill] sm:$0xff]  ;;  %p3663_p13 = pneg %p3662_p12 }
 0x164   : > { %3314 = vmatpush3.xpose.msk.msra.mxu1 %vm275_vm0, %v7672_v34  ;;  %3280 = vmatprep.subr.mxu0 %v7233_v12  ;;  %v1709_v24 = vadd.f32 %v1708_v36, %v1707_v11  ;;  %v1710_v32 = vsel %vm275_vm0, %v1484_v22, 0.0  ;;  %v565_v45 = vadd.f32 %v564_v5, %v563_v47  ;;  %v988_v40 = vadd.f32 %v987_v58, %v986_v63  ;;  %v7682_v11 = vld [vmem:[#allocation94_spill] sm:$0xff] }
 0x165   : > { %3315 = vmatprep.subr.mxu1 %v7233_v12  ;;  %v705_v10 = vmul.f32 %v7674_v16, %v7674_v16  ;;  %v989_v13 = vsel %vm275_vm0, %v704_v1, 0.0  ;;  %v1133_v7 = vsub.f32 %v7678_v21, %v7677_v23  ;;  %v1134_v17 = vsub.f32 %v7679_v60, %v7677_v23  ;;  %v7683_v63 = vld [vmem:[#allocation38_spill] sm:$0xff]  ;;  %p3670_p3 = pnand %p3669_p2, %p3663_p13 }
 0x166   : > { %1845 = vmax.xlane.f32.xlu0 %v1844_v9  ;;  %v1711_v19 = vadd.f32 %v1710_v32, %v1709_v24  ;;  %v566_v61 = vrot.slane %v565_v45, 4  ;;  %v990_v18 = vadd.f32 %v989_v13, %v988_v40  ;;  %v706_v6 = vmul.f32 %v7680_v62, %v7680_v62  ;;  %v7684_v36 = vld [vmem:[#allocation62_spill] sm:$0xff]  ;;  %v7685_v9 = vld [vmem:[#allocation15_spill] sm:$0xff] }
 0x167   : > { %3281 = vmatpush3.xpose.msk.msra.mxu0 %vm275_vm0, %v7673_v46  ;;  %v991_v0 = vsel %vm275_vm0, %v705_v10, 0.0  ;;  %v1135_v47 = vsub.f32 %v7682_v11, %v7677_v23  ;;  %v1136_v53 = vsub.f32 %v7683_v63, %v7677_v23  ;;  %v7688_v46 = vld [vmem:[#allocation50_spill] sm:$0xff]  ;;  %v7697_v63 = vld [vmem:[#allocation103_spill] sm:$0xff] }
 0x168   : > { %3316 = vmatpush3.xpose.msk.msra.mxu1 %vm275_vm0, %v7675_v41  ;;  %v1712_v43 = vrot.slane %v1711_v19, 4  ;;  %3282 = vmatprep.subr.mxu0 %v7233_v12  ;;  %v567_v58 = vadd.f32 %v566_v61, %v565_v45  ;;  %v992_v34 = vadd.f32 %v991_v0, %v990_v18  ;;  %v993_v40 = vsel %vm275_vm0, %v706_v6, 0.0  ;;  %v7689_v13 = vld [vmem:[#allocation42_spill] sm:$0xff] }
 0x169   : > { %3317 = vmatprep.subr.mxu1 %v7233_v12  ;;  %v1137_v41 = vsub.f32 %v7689_v13, %v7677_v23  ;;  %v7695_v0 = vld [vmem:[#allocation82_spill] sm:$0xff] }
 0x16a   : > { %v1713_v52 = vadd.f32 %v1712_v43, %v1711_v19  ;;  %v707_v19 = vmul.f32 %v6148_v38, %v6148_v38  ;;  %v7690_v43 = vld [vmem:[#allocation57_spill] sm:$0xff]  ;;  %v994_v21 = vadd.f32 %v993_v40, %v992_v34  ;;  %v7700_v34 = vld [vmem:[#allocation104_spill] sm:$0xff] }
 0x16b   : > { %3283 = vmatpush3.xpose.msk.msra.mxu0 %vm275_vm0, %v7676_v55  ;;  %v568_v55 = vrot.slane %v567_v58, 2 }
 0x16c   : > { %3318 = vmatpush3.xpose.msk.msra.mxu1 %vm275_vm0, %v7681_v26  ;;  %3284 = vmatprep.subr.mxu0 %v7233_v12  ;;  %v6230_v37 = vpop.eup %3614  ;;  %v1714_v22 = vrot.slane %v1713_v52, 2 }
 0x16d   : > { %3319 = vmatprep.subr.mxu1 %v7233_v12  ;;  %v6241_v24 = vmul.f32 %v6230_v37, %v1133_v7  ;;  %v6244_v32 = vmul.f32 %v6230_v37, %v1134_v17  ;;  %v6258_v61 = vmul.f32 %v6230_v37, %v1135_v47  ;;  %v7692_v7 = vld [vmem:[#allocation14_spill] sm:$0xff]  ;;  %v6265_v60 = vmul.f32 %v6230_v37, %v1136_v53 }
 0x16e   : > { %v1715_v1 = vadd.f32 %v1714_v22, %v1713_v52  ;;  %v1138_v52 = vsub.f32 %v7690_v43, %v7677_v23  ;;  %v7694_v17 = vld [vmem:[#allocation74_spill] sm:$0xff]  ;;  %v995_v22 = vsel %vm275_vm0, %v707_v19, 0.0  ;;  %v708_v47 = vmul.f32 %v6186_v31, %v6186_v31 }
 0x16f   : > { %v1837_v42 = vpop.xlane.xlu0 %1836  ;;  %3285 = vmatpush3.xpose.msk.msra.mxu0 %vm275_vm0, %v7685_v9  ;;  %7686 = vst [vmem:[#allocation53_spill] sm:$0xff] %v6241_v24  ;;  %7687 = vst [vmem:[#allocation60_spill] sm:$0xff] %v6244_v32  ;;  %v1501_v6 = vmul.f32 %v7694_v17, %v6241_v24  ;;  %v1502_v26 = vmul.f32 %v7695_v0, %v6244_v32  ;;  %v1139_v53 = vsub.f32 %v7697_v63, %v7677_v23 }
 0x170   : > { %v1855_v5 = vsub.f32 %v7684_v36, %v1837_v42  ;;  %3320 = vmatpush3.xpose.msk.msra.mxu1 %vm275_vm0, %v7688_v46  ;;  %v1716_v45 = vrot.slane %v1715_v1, 1  ;;  %3286 = vmatprep.subr.mxu0 %v7233_v12  ;;  %7691 = vst [vmem:[#allocation61_spill] sm:$0xff] %v6258_v61  ;;  %7693 = vst [vmem:[#allocation77_spill] sm:$0xff] %v6265_v60  ;;  %v7696_v42 = vld [vmem:[#allocation49_spill] sm:$0xff]  ;;  %v6283_v36 = vmul.f32 %v6230_v37, %v1137_v41 }
 0x171   : > { %3321 = vmatprep.subr.mxu1 %v7233_v12  ;;  %v1140_v9 = vsub.f32 %v7700_v34, %v7677_v23  ;;  %v569_v19 = vadd.f32 %v568_v55, %v567_v58  ;;  %v996_v40 = vadd.f32 %v995_v22, %v994_v21  ;;  %v7701_v46 = vld [vmem:[#allocation13_spill] sm:$0xff]  ;;  %v1755_v41 = vsel %vm275_vm0, %v1501_v6, 0.0  ;;  %v7707_v6 = vld [vmem:[#allocation88_spill] sm:$0xff] }
 0x172   : > { %v1865_v10 = vmul.f32 1.442695, %v1855_v5  ;;  %v6260_v18 = vadd.f32 %v1716_v45, %v1715_v1  ;;  %7698 = vst [vmem:[#allocation28_spill] sm:$0xff] %v6283_v36  ;;  %v7699_v5 = vld [vmem:[#allocation73_spill] sm:$0xff]  ;;  %v1756_v43 = vsel %vm275_vm0, %v1502_v26, 0.0  ;;  %v997_v55 = vsel %vm275_vm0, %v708_v47, 0.0 }
 0x173   : > { %3287 = vmatpush3.xpose.msk.msra.mxu0 %vm275_vm0, %v7692_v7  ;;  %v1503_v1 = vmul.f32 %v7699_v5, %v6258_v61  ;;  %v7703_v45 = vld [vmem:[#allocation81_spill] sm:$0xff]  ;;  %v7704_v7 = vld [vmem:[#allocation48_spill] sm:$0xff]  ;;  %v1757_v58 = vadd.f32 %v1756_v43, %v1755_v41  ;;  %v6306_v22 = vmul.f32 %v6230_v37, %v1139_v53  ;;  %v6316_v47 = vmul.f32 %v6230_v37, %v1140_v9  ;;  %v7711_v43 = vld [vmem:[#allocation87_spill] sm:$0xff] }
 0x174   : > { %3616 = vpow2.f32 %v1865_v10  ;;  %3322 = vmatpush3.xpose.msk.msra.mxu1 %vm275_vm0, %v7696_v42  ;;  %v1841_v11 = vsel %vm275_vm0, %v6260_v18, -inf  ;;  %3288 = vmatprep.subr.mxu0 %v7233_v12  ;;  %v6292_v10 = vmul.f32 %v6230_v37, %v1138_v52  ;;  %v1504_v13 = vmul.f32 %v7703_v45, %v6265_v60  ;;  %v7705_v52 = vld [vmem:[#allocation105_spill] sm:$0xff]  ;;  %v7709_v41 = vld [vmem:[#allocation12_spill] sm:$0xff]  ;;  %v7716_v61 = vld [vmem:[#allocation11_spill] sm:$0xff] }
 0x175   : > { %3323 = vmatprep.subr.mxu1 %v7233_v12  ;;  %1842 = vmax.xlane.f32.xlu1 %v1841_v11  ;;  %v1141_v21 = vsub.f32 %v7705_v52, %v7677_v23  ;;  %7706 = vst [vmem:[#allocation69_spill] sm:$0xff] %v6306_v22  ;;  %v1505_v42 = vmul.f32 %v7707_v6, %v6283_v36  ;;  %v1758_v26 = vsel %vm275_vm0, %v1503_v1, 0.0  ;;  %v7708_v11 = vld [vmem:[#allocation107_spill] sm:$0xff]  ;;  %7710 = vst [vmem:[#allocation59_spill] sm:$0xff] %v6316_v47  ;;  %v7713_v1 = vmov 0.0   ;;  %v7717_v60 = vld [vmem:[#allocation46_spill] sm:$0xff] }
 0x176   : > { %7702 = vst [vmem:[#allocation80_spill] sm:$0xff] %v6292_v10  ;;  %v1142_v63 = vsub.f32 %v7708_v11, %v7677_v23  ;;  %v1759_v34 = vadd.f32 %v1758_v26, %v1757_v58  ;;  %v1506_v53 = vmul.f32 %v7711_v43, %v6292_v10  ;;  %v998_v52 = vadd.f32 %v997_v55, %v996_v40  ;;  %v7714_v58 = vld [vmem:[#allocation108_spill] sm:$0xff]  ;;  %v7715_v55 = vld [vmem:[#allocation109_spill] sm:$0xff] }
 0x177   : > { %3289 = vmatpush3.xpose.msk.msra.mxu0 %vm275_vm0, %v7701_v46  ;;  %v570_v46 = vrot.slane %v569_v19, 1  ;;  %v1143_v26 = vsub.f32 %v7714_v58, %v7677_v23  ;;  %v6328_v9 = vmul.f32 %v6230_v37, %v1141_v21  ;;  %v1508_v21 = vmul.f32 %v4808_v4, %v6316_v47  ;;  %3306 = vmatprep.mubr.msk.f32.mxu0 %vm3724_vm1, %v7713_v1 }
 0x178   : > { %3324 = vmatpush3.xpose.msk.msra.mxu1 %vm275_vm0, %v7704_v7  ;;  %3290 = vmatprep.subr.mxu0 %v7233_v12  ;;  %v1760_v7 = vsel %vm275_vm0, %v1504_v13, 0.0  ;;  %v1762_v13 = vsel %vm275_vm0, %v1505_v42, 0.0  ;;  %v999_v40 = vrot.slane %v998_v52, 4  ;;  %v1764_v58 = vsel %vm275_vm0, %v1506_v53, 0.0 }
 0x179   : > { %3325 = vmatprep.subr.mxu1 %v7233_v12  ;;  %v7712_v12 = vld [vmem:[#allocation47_spill] sm:$0xff]  ;;  %v1761_v11 = vadd.f32 %v1760_v7, %v1759_v34  ;;  %v571_v32 = vadd.f32 %v570_v46, %v569_v19  ;;  %v6340_v7 = vmul.f32 %v6230_v37, %v1142_v63  ;;  %v6354_v63 = vmul.f32 %v6230_v37, %v1143_v26 }
 0x17a   : > { %v1000_v42 = vadd.f32 %v999_v40, %v998_v52  ;;  %v1509_v53 = vmul.f32 %v4838_v44, %v6328_v9  ;;  %3341 = vmatprep.mubr.msk.f32.mxu1 %vm3724_vm1, %v7713_v1 }
 0x17b   : > { %3291 = vmatpush3.xpose.msk.msra.mxu0 %vm275_vm0, %v7709_v41  ;;  %v1507_v41 = vmul.f32 %v4810_v30, %v6306_v22  ;;  %v1763_v24 = vadd.f32 %v1762_v13, %v1761_v11  ;;  %v7719_v13 = vld [vmem:[#allocation89_spill] sm:$0xff]  ;;  %v6361_v36 = vmul.f32 0.0078125, %v571_v32  ;;  %v1510_v26 = vmul.f32 %v4836_v59, %v6340_v7  ;;  %v7722_v32 = vld [vmem:[#allocation90_spill] sm:$0xff]  ;;  %v7725_v22 = vld [vmem:[#allocation44_spill] sm:$0xff] }
 0x17c   : > { %3326 = vmatpush3.xpose.msk.msra.mxu1 %vm275_vm0, %v7712_v12  ;;  %3292 = vmatprep.subr.mxu0 %v7713_v1  ;;  %v1144_v12 = vsub.f32 %v7715_v55, %v7677_v23  ;;  %v1001_v52 = vrot.slane %v1000_v42, 2  ;;  %v1146_v40 = vsub.f32 %v7719_v13, %v7677_v23  ;;  %v1511_v13 = vmul.f32 %v4863_v50, %v6354_v63 }
 0x17d   : > { %3327 = vmatprep.subr.mxu1 %v7713_v1  ;;  %v1765_v11 = vadd.f32 %v1764_v58, %v1763_v24  ;;  %v1768_v58 = vsel %vm275_vm0, %v1508_v21, 0.0  ;;  %v1770_v21 = vsel %vm275_vm0, %v1509_v53, 0.0  ;;  %v1020_v10 = vmul.f32 %v6361_v36, %v6361_v36 }
 0x17e   : > { %v6366_v24 = vmul.f32 %v6230_v37, %v1144_v12 }
 0x17f   : > { %3293 = vmatpush3.xpose.msk.msra.mxu0 %vm275_vm0, %v7716_v61  ;;  %v7718_v61 = vld [vmem:[#allocation110_spill] sm:$0xff] }
 0x180   : > { %3328 = vmatpush3.xpose.msk.msra.mxu1 %vm275_vm0, %v7717_v60  ;;  %3294 = vmatprep.subr.mxu0 %v7713_v1  ;;  %v1145_v46 = vsub.f32 %v7718_v61, %v7677_v23  ;;  %v1766_v60 = vsel %vm275_vm0, %v1507_v41, 0.0  ;;  %v7720_v61 = vld [vmem:[#allocation10_spill] sm:$0xff]  ;;  %v7721_v41 = vld [vmem:[#allocation45_spill] sm:$0xff] }
 0x181   : > { %v6337_v34 = vpop.eup %3616  ;;  %3329 = vmatprep.subr.mxu1 %v7713_v1  ;;  %v1767_v55 = vadd.f32 %v1766_v60, %v1765_v11  ;;  %v1147_v11 = vsub.f32 %v7722_v32, %v7677_v23  ;;  %v7724_v32 = vld [vmem:[#allocation9_spill] sm:$0xff] }
 0x182   : > { %v1883_v19 = vsel %vm275_vm0, %v6337_v34, 0.0  ;;  %v6378_v12 = vmul.f32 %v6230_v37, %v1145_v46  ;;  %v1512_v46 = vmul.f32 %v4861_v27, %v6366_v24 }
 0x183   : > { %1884 = vadd.xlane.f32.xlu1 %v1883_v19  ;;  %3295 = vmatpush3.xpose.msk.msra.mxu0 %vm275_vm0, %v7720_v61  ;;  %v1002_v19 = vadd.f32 %v1001_v52, %v1000_v42  ;;  %v1769_v60 = vadd.f32 %v1768_v58, %v1767_v55  ;;  %v7723_v52 = vld [vmem:[#allocation111_spill] sm:$0xff]  ;;  %v6390_v55 = vmul.f32 %v6230_v37, %v1146_v40  ;;  %v1772_v58 = vsel %vm275_vm0, %v1510_v26, 0.0  ;;  %v7726_v26 = vld [vmem:[#allocation8_spill] sm:$0xff] }
 0x184   : > { %3330 = vmatpush3.xpose.msk.msra.mxu1 %vm275_vm0, %v7721_v41  ;;  %3296 = vmatprep.subr.mxu0 %v7713_v1  ;;  %v1148_v61 = vsub.f32 %v7723_v52, %v7677_v23  ;;  %v1513_v40 = vmul.f32 %v7551_v33, %v6378_v12 }
 0x185   : > { %3331 = vmatprep.subr.mxu1 %v7713_v1  ;;  %v1003_v42 = vrot.slane %v1002_v19, 1  ;;  %v1771_v41 = vadd.f32 %v1770_v21, %v1769_v60  ;;  %v6400_v60 = vmul.f32 %v6230_v37, %v1147_v11  ;;  %v1774_v21 = vsel %vm275_vm0, %v1511_v13, 0.0 }
 0x187   : > { %3297 = vmatpush3.xpose.msk.msra.mxu0 %vm275_vm0, %v7724_v32  ;;  %v1004_v53 = vadd.f32 %v1003_v42, %v1002_v19  ;;  %v1773_v23 = vadd.f32 %v1772_v58, %v1771_v41  ;;  %v1514_v19 = vmul.f32 %v7552_v2, %v6390_v55  ;;  %v1776_v42 = vsel %vm275_vm0, %v1512_v46, 0.0  ;;  %v7727_v41 = vld [vmem:[#allocation43_spill] sm:$0xff] }
 0x188   : > { %3332 = vmatpush3.xpose.msk.msra.mxu1 %vm275_vm0, %v7725_v22  ;;  %3298 = vmatprep.subr.mxu0 %v7713_v1  ;;  %v6408_v22 = vmul.f32 %v6230_v37, %v1148_v61  ;;  %v1515_v58 = vmul.f32 %v7553_v28, %v6400_v60  ;;  %v1778_v37 = vsel %vm275_vm0, %v1513_v40, 0.0 }
 0x189   : > { %3333 = vmatprep.subr.mxu1 %v7713_v1  ;;  %v1012_v52 = vmul.f32 0.0078125, %v1004_v53  ;;  %v1775_v32 = vadd.f32 %v1774_v21, %v1773_v23  ;;  %v7728_v23 = vld [vmem:[#allocation7_spill] sm:$0xff]  ;;  %v1780_v46 = vsel %vm275_vm0, %v1514_v19, 0.0 }
 0x18a   : > { %v1782_v40 = vsel %vm275_vm0, %v1515_v58, 0.0  ;;  %v7733_v58 = vld [vmem:[#allocation17_spill] sm:$0xff] }
 0x18b   : > { %3299 = vmatpush3.xpose.msk.msra.mxu0 %vm275_vm0, %v7726_v26  ;;  %v1028_v11 = vsub.f32 %v1012_v52, %v1020_v10  ;;  %v1777_v13 = vadd.f32 %v1776_v42, %v1775_v32  ;;  %v1516_v10 = vmul.f32 %v7627_v35, %v6408_v22  ;;  %v7729_v52 = vld [vmem:[#allocation25_spill] sm:$0xff]  ;;  %v7730_v42 = vld [vmem:[#allocation6_spill] sm:$0xff] }
 0x18c   : > { %3334 = vmatpush3.xpose.msk.msra.mxu1 %vm275_vm0, %v7727_v41  ;;  %3300 = vmatprep.subr.mxu0 %v7713_v1  ;;  %v7731_v41 = vld [vmem:[#allocation18_spill] sm:$0xff] }
 0x18d   : > { %3335 = vmatprep.subr.mxu1 %v7713_v1  ;;  %v1036_v61 = vmax.f32 %v1028_v11, 0.0  ;;  %v1779_v53 = vadd.f32 %v1778_v37, %v1777_v13  ;;  %v1784_v11 = vsel %vm275_vm0, %v1516_v10, 0.0  ;;  %v7732_v37 = vld [vmem:[#allocation5_spill] sm:$0xff] }
 0x18f   : > { %3301 = vmatpush3.xpose.msk.msra.mxu0 %vm275_vm0, %v7728_v23  ;;  %v1172_v21 = vadd.f32 1e-05, %v1036_v61  ;;  %v1781_v32 = vadd.f32 %v1780_v46, %v1779_v53  ;;  %v7734_v23 = vld [vmem:[#allocation106_spill] sm:$0xff] }
 0x190   : > { %3336 = vmatpush3.xpose.msk.msra.mxu1 %vm275_vm0, %v7729_v52  ;;  %3302 = vmatprep.subr.mxu0 %v7713_v1  ;;  %v7735_v52 = vld [vmem:[#allocation123_spill] sm:$0xff] }
 0x191   : > { %3337 = vmatprep.subr.mxu1 %v7713_v1  ;;  %3618 = vrsqrt.f32 %v1172_v21  ;;  %v1783_v26 = vadd.f32 %v1782_v40, %v1781_v32  ;;  %v1149_v32 = vsub.f32 %v7735_v52, %v6361_v36  ;;  %v7736_v40 = vld [vmem:[#allocation126_spill] sm:$0xff] }
 0x193   : > { %3303 = vmatpush3.xpose.msk.msra.mxu0 %vm275_vm0, %v7730_v42  ;;  %v1785_v19 = vadd.f32 %v1784_v11, %v1783_v26  ;;  %v1150_v26 = vsub.f32 %v7736_v40, %v6361_v36  ;;  %v7737_v11 = vld [vmem:[#allocation127_spill] sm:$0xff]  ;;  %v7743_v40 = vld [vmem:[#allocation132_spill] sm:$0xff] }
 0x194   : > { %3338 = vmatpush3.xpose.msk.msra.mxu1 %vm275_vm0, %v7731_v41  ;;  %3304 = vmatprep.subr.mxu0 %v7713_v1  ;;  %v1151_v41 = vsub.f32 %v7737_v11, %v6361_v36  ;;  %v1154_v11 = vsub.f32 %v7743_v40, %v6361_v36 }
 0x195   : > { %3339 = vmatprep.subr.mxu1 %v7713_v1  ;;  %v1786_v13 = vrot.slane %v1785_v19, 4 }
 0x197   : > { %3305 = vmatpush3.xpose.msk.msra.mxu0 %vm275_vm0, %v7732_v37  ;;  %v1787_v53 = vadd.f32 %v1786_v13, %v1785_v19  ;;  %v7738_v13 = vld [vmem:[#allocation128_spill] sm:$0xff] }
 0x198   : > { %3340 = vmatpush3.xpose.msk.msra.mxu1 %vm275_vm0, %v7733_v58  ;;  %3344 = vmatprep.subr.mxu0 %v7713_v1  ;;  %v1152_v58 = vsub.f32 %v7738_v13, %v6361_v36 }
 0x199   : > { %3379 = vmatprep.subr.mxu1 %v7713_v1  ;;  %v1788_v46 = vrot.slane %v1787_v53, 2 }
 0x19b   : > { %v1840_v61 = vpop.xlane.xlu0 %1839  ;;  %v1789_v42 = vadd.f32 %v1788_v46, %v1787_v53  ;;  %v7741_v53 = vld [vmem:[#allocation130_spill] sm:$0xff] }
 0x19c   : > { %v1856_v10 = vsub.f32 %v7734_v23, %v1840_v61  ;;  %v1153_v46 = vsub.f32 %v7741_v53, %v6361_v36 }
 0x19d   : > { %v1790_v19 = vrot.slane %v1789_v42, 1 }
 0x19e   : > { %v1867_v21 = vmul.f32 1.442695, %v1856_v10  ;;  %v6450_v37 = vpop.eup %3618 }
 0x19f   : > { %v6455_v61 = vmul.f32 %v6450_v37, %v1149_v32  ;;  %v6458_v23 = vmul.f32 %v6450_v37, %v1150_v26  ;;  %v6460_v10 = vadd.f32 %v1790_v19, %v1789_v42  ;;  %v6472_v32 = vmul.f32 %v6450_v37, %v1152_v58  ;;  %v7745_v19 = vld [vmem:[#allocation133_spill] sm:$0xff] }
 0x1a0   : > { %3620 = vpow2.f32 %v1867_v21  ;;  %v6465_v21 = vmul.f32 %v6450_v37, %v1151_v41  ;;  %v1155_v41 = vsub.f32 %v7745_v19, %v6361_v36  ;;  %v6481_v13 = vmul.f32 %v6450_v37, %v1153_v46  ;;  %v7747_v46 = vld [vmem:[#allocation83_spill] sm:$0xff] }
 0x1a1   : > { %7739 = vst [vmem:[#allocation68_spill] sm:$0xff] %v6455_v61  ;;  %7740 = vst [vmem:[#allocation56_spill] sm:$0xff] %v6458_v23  ;;  %v1847_v52 = vsel %vm275_vm0, %v6460_v10, -inf  ;;  %v1517_v26 = vmul.f32 %v7694_v17, %v6455_v61  ;;  %v1518_v42 = vmul.f32 %v7695_v0, %v6458_v23  ;;  %v6488_v58 = vmul.f32 %v6450_v37, %v1154_v11 }
 0x1a2   : > { %7742 = vst [vmem:[#allocation67_spill] sm:$0xff] %v6465_v21  ;;  %1848 = vmax.xlane.f32.xlu1 %v1847_v52  ;;  %7744 = vst [vmem:[#allocation55_spill] sm:$0xff] %v6472_v32  ;;  %v1519_v53 = vmul.f32 %v7699_v5, %v6465_v21  ;;  %v7746_v52 = vld [vmem:[#allocation34_spill] sm:$0xff]  ;;  %v1520_v17 = vmul.f32 %v7703_v45, %v6472_v32  ;;  %v1157_v23 = vsub.f32 %v7747_v46, %v6361_v36  ;;  %v7748_v45 = vld [vmem:[#allocation93_spill] sm:$0xff] }
 0x1a3   : > { %v1156_v40 = vsub.f32 %v7746_v52, %v6361_v36  ;;  %v1792_v0 = vsel %vm275_vm0, %v1517_v26, 0.0  ;;  %v1793_v61 = vsel %vm275_vm0, %v1518_v42, 0.0  ;;  %v6497_v47 = vmul.f32 %v6450_v37, %v1155_v41 }
 0x1a4   : > { %v1794_v19 = vadd.f32 %v1793_v61, %v1792_v0  ;;  %v1521_v5 = vmul.f32 %v7707_v6, %v6481_v13  ;;  %v1795_v11 = vsel %vm275_vm0, %v1519_v53, 0.0  ;;  %v1158_v21 = vsub.f32 %v7748_v45, %v6361_v36  ;;  %v7749_v53 = vld [vmem:[#allocation35_spill] sm:$0xff] }
 0x1a5   : > { %v6509_v42 = vmul.f32 %v6450_v37, %v1156_v40  ;;  %v1522_v41 = vmul.f32 %v7711_v43, %v6488_v58  ;;  %v1797_v0 = vsel %vm275_vm0, %v1520_v17, 0.0  ;;  %v1159_v46 = vsub.f32 %v7749_v53, %v6361_v36 }
 0x1a6   : > { %v1796_v26 = vadd.f32 %v1795_v11, %v1794_v19  ;;  %v6517_v32 = vmul.f32 %v6450_v37, %v1157_v23  ;;  %v1523_v19 = vmul.f32 %v4810_v30, %v6497_v47  ;;  %v1799_v11 = vsel %vm275_vm0, %v1521_v5, 0.0 }
 0x1a7   : > { %v1160_v45 = vsub.f32 %v5948_v39, %v6361_v36  ;;  %v6525_v43 = vmul.f32 %v6450_v37, %v1158_v21  ;;  %v1524_v17 = vmul.f32 %v4808_v4, %v6509_v42  ;;  %v1161_v23 = vsub.f32 %v7674_v16, %v6361_v36 }
 0x1a8   : > { %v1798_v6 = vadd.f32 %v1797_v0, %v1796_v26  ;;  %v1801_v26 = vsel %vm275_vm0, %v1522_v41, 0.0  ;;  %v6533_v30 = vmul.f32 %v6450_v37, %v1159_v46  ;;  %v1525_v5 = vmul.f32 %v4838_v44, %v6517_v32 }
 0x1a9   : > { %v1803_v39 = vsel %vm275_vm0, %v1523_v19, 0.0  ;;  %v1162_v21 = vsub.f32 %v7680_v62, %v6361_v36  ;;  %v6541_v4 = vmul.f32 %v6450_v37, %v1160_v45  ;;  %v1526_v41 = vmul.f32 %v4836_v59, %v6525_v43 }
 0x1aa   : > { %v1800_v40 = vadd.f32 %v1799_v11, %v1798_v6  ;;  %v1805_v16 = vsel %vm275_vm0, %v1524_v17, 0.0  ;;  %v1163_v53 = vsub.f32 %v6148_v38, %v6361_v36  ;;  %v6549_v44 = vmul.f32 %v6450_v37, %v1161_v23 }
 0x1ab   : > { %v1527_v46 = vmul.f32 %v4863_v50, %v6533_v30  ;;  %v1807_v62 = vsel %vm275_vm0, %v1525_v5, 0.0  ;;  %v1164_v11 = vsub.f32 %v6186_v31, %v6361_v36  ;;  %v6557_v59 = vmul.f32 %v6450_v37, %v1162_v21 }
 0x1ac   : > { %v1809_v38 = vsel %vm275_vm0, %v1526_v41, 0.0  ;;  %v6563_v17 = vmul.f32 %v6450_v37, %v1163_v53  ;;  %v1529_v50 = vmul.f32 %v7551_v33, %v6549_v44 }
 0x1ad   : > { %v6502_v52 = vpop.eup %3620  ;;  %v6569_v31 = vmul.f32 %v6450_v37, %v1164_v11  ;;  %v1530_v36 = vmul.f32 %v7552_v2, %v6557_v59 }
 0x1ae   : > { %v1886_v61 = vsel %vm275_vm0, %v6502_v52, 0.0  ;;  %v1531_v5 = vmul.f32 %v7553_v28, %v6563_v17 }
 0x1af   : > { %1887 = vadd.xlane.f32.xlu0 %v1886_v61  ;;  %v1802_v61 = vadd.f32 %v1801_v26, %v1800_v40  ;;  %v1528_v40 = vmul.f32 %v4861_v27, %v6541_v4  ;;  %v1811_v26 = vsel %vm275_vm0, %v1527_v46, 0.0  ;;  %v1532_v33 = vmul.f32 %v7627_v35, %v6569_v31 }
 0x1b0   : > { %v1817_v21 = vsel %vm275_vm0, %v1530_v36, 0.0  ;;  %v1819_v37 = vsel %vm275_vm0, %v1531_v5, 0.0  ;;  %v7750_v5 = vld [vmem:[#allocation102_spill] sm:$0xff] }
 0x1b1   : > { %v1804_v0 = vadd.f32 %v1803_v39, %v1802_v61  ;;  %v1813_v27 = vsel %vm275_vm0, %v1528_v40, 0.0  ;;  %v1815_v39 = vsel %vm275_vm0, %v1529_v50, 0.0  ;;  %v1821_v2 = vsel %vm275_vm0, %v1532_v33, 0.0 }
 0x1b3   : > { %v1806_v6 = vadd.f32 %v1805_v16, %v1804_v0 }
 0x1b5   : > { %v1808_v19 = vadd.f32 %v1807_v62, %v1806_v6 }
 0x1b7   : > { %v1810_v45 = vadd.f32 %v1809_v38, %v1808_v19 }
 0x1b9   : > { %v1812_v61 = vadd.f32 %v1811_v26, %v1810_v45 }
 0x1bb   : > { %v1814_v23 = vadd.f32 %v1813_v27, %v1812_v61 }
 0x1bd   : > { %v1816_v0 = vadd.f32 %v1815_v39, %v1814_v23  ;;  %v7751_v39 = vld [vmem:[#allocation33_spill] sm:$0xff] }
 0x1bf   : > { %v1818_v41 = vadd.f32 %v1817_v21, %v1816_v0  ;;  %v7752_v0 = vld [vmem:[#allocation101_spill] sm:$0xff]  ;;  %v7753_v21 = vld [vmem:[#allocation32_spill] sm:$0xff] }
 0x1c1   : > { %v1820_v16 = vadd.f32 %v1819_v37, %v1818_v41  ;;  %v7755_v37 = vld [vmem:[#allocation31_spill] sm:$0xff] }
 0x1c3   : > { %v1822_v6 = vadd.f32 %v1821_v2, %v1820_v16  ;;  %v7756_v16 = vld [vmem:[#allocation99_spill] sm:$0xff]  ;;  %v7757_v2 = vld [vmem:[#allocation30_spill] sm:$0xff] }
 0x1c5   : > { %v1823_v53 = vrot.slane %v1822_v6, 4 }
 0x1c7   : > { %v1824_v46 = vadd.f32 %v1823_v53, %v1822_v6  ;;  %v7758_v6 = vld [vmem:[#allocation98_spill] sm:$0xff]  ;;  %v7759_v53 = vld [vmem:[#allocation29_spill] sm:$0xff] }
 0x1c9   : > { %v1825_v62 = vrot.slane %v1824_v46, 2 }
 0x1cb   : > { %v1826_v19 = vadd.f32 %v1825_v62, %v1824_v46  ;;  %v7760_v62 = vld [vmem:[#allocation97_spill] sm:$0xff] }
 0x1cd   : > { %v1827_v28 = vrot.slane %v1826_v19, 1 }
 0x1cf   : > { %v6582_v11 = vadd.f32 %v1827_v28, %v1826_v19  ;;  %v7761_v28 = vld [vmem:[#allocation27_spill] sm:$0xff] }
 0x1d1   : > { %v1850_v40 = vsel %vm275_vm0, %v6582_v11, -inf }
 0x1d2   : > { %1851 = vmax.xlane.f32.xlu0 %v1850_v40  ;;  %v7762_v40 = vld [vmem:[#allocation96_spill] sm:$0xff] }
 0x1eb   : > { %v1882_v35 = vpop.xlane.xlu0 %1881 }
 0x1ec   : > { %v1879_v38 = vpop.xlane.xlu1 %1878  ;;  %3622 = vrcp.f32 %v1882_v35  ;;  %v7763_v35 = vld [vmem:[#allocation26_spill] sm:$0xff] }
 0x1ed   : > { %3624 = vrcp.f32 %v1879_v38  ;;  %v7764_v38 = vld [vmem:[#allocation95_spill] sm:$0xff] }
 0x1ef   : > { %v1846_v45 = vpop.xlane.xlu0 %1845 }
 0x1f0   : > { %v1858_v50 = vsub.f32 %v6183_v49, %v1846_v45  ;;  %v7765_v45 = vld [vmem:[#allocation72_spill] sm:$0xff] }
 0x1f2   : > { %v1871_v26 = vmul.f32 1.442695, %v1858_v50  ;;  %v7766_v50 = vld [vmem:[#allocation63_spill] sm:$0xff] }
 0x1f4   : > { %3626 = vpow2.f32 %v1871_v26  ;;  %v7767_v26 = vld [vmem:[#allocation24_spill] sm:$0xff] }
 0x1f9   : > { %v3623_v61 = vpop.eup %3622 }
 0x1fa   : > { %v3625_v36 = vpop.eup %3624  ;;  %v1910_v27 = vmul.f32 %v3623_v61, %v6172_v25  ;;  %v7768_v61 = vld [vmem:[#allocation79_spill] sm:$0xff] }
 0x1fb   : > { %v1909_v23 = vmul.f32 %v3625_v36, %v6179_v14  ;;  %v7769_v36 = vld [vmem:[#allocation71_spill] sm:$0xff] }
 0x1fc   : > { %3342 = vmatmul.mubr.msk.f32.vlgmr.msra.gmra.mxu1 %vm275_vm0, %v1910_v27  ;;  %v7770_v27 = vld [vmem:[#allocation78_spill] sm:$0xff] }
 0x1fd   : > { %3307 = vmatmul.mubr.msk.f32.vlgmr.msra.gmra.mxu0 %vm275_vm0, %v1909_v23  ;;  %3380 = vmatpush3.xpose.msk.msra.mxu1 %vm275_vm0, %v7750_v5  ;;  %v7771_v23 = vld [vmem:[#allocation23_spill] sm:$0xff] }
 0x1fe   : > { %3345 = vmatpush3.xpose.msk.msra.mxu0 %vm275_vm0, %v7751_v39  ;;  %3381 = vmatprep.subr.mxu1 %v7713_v1  ;;  %v1843_v49 = vpop.xlane.xlu1 %1842  ;;  %v7772_v39 = vld [vmem:[#allocation76_spill] sm:$0xff] }
 0x1ff   : > { %3346 = vmatprep.subr.mxu0 %v7713_v1  ;;  %3376 = vmatprep.mubr.msk.f32.mxu0 %vm3724_vm1, %v7713_v1  ;;  %v1857_v25 = vsub.f32 %v6260_v18, %v1843_v49  ;;  %v7754_v18 = vld [vmem:[#allocation100_spill] sm:$0xff]  ;;  %v7773_v49 = vld [vmem:[#allocation21_spill] sm:$0xff] }
 0x200   : > { %3411 = vmatprep.mubr.msk.f32.mxu1 %vm3724_vm1, %v7713_v1 }
 0x201   : > { %v6606_v14 = vpop.eup %3626  ;;  %3382 = vmatpush3.xpose.msk.msra.mxu1 %vm275_vm0, %v7752_v0  ;;  %v1869_v33 = vmul.f32 1.442695, %v1857_v25  ;;  %v7774_v0 = vld [vmem:[#allocation58_spill] sm:$0xff] }
 0x202   : > { %3347 = vmatpush3.xpose.msk.msra.mxu0 %vm275_vm0, %v7753_v21  ;;  %3383 = vmatprep.subr.mxu1 %v7713_v1  ;;  %v1892_v41 = vsel %vm275_vm0, %v6606_v14, 0.0  ;;  %v7775_v21 = vld [vmem:[#allocation70_spill] sm:$0xff] }
 0x203   : > { %3348 = vmatprep.subr.mxu0 %v7713_v1  ;;  %1893 = vadd.xlane.f32.xlu0 %v1892_v41  ;;  %3628 = vpow2.f32 %v1869_v33 }
 0x205   : > { %3384 = vmatpush3.xpose.msk.msra.mxu1 %vm275_vm0, %v7754_v18  ;;  %v7776_v18 = vld [vmem:[#allocation16_spill] sm:$0xff] }
 0x206   : > { %3349 = vmatpush3.xpose.msk.msra.mxu0 %vm275_vm0, %v7755_v37  ;;  %3385 = vmatprep.subr.mxu1 %v7713_v1  ;;  %v7777_v37 = vld [vmem:[#allocation20_spill] sm:$0xff] }
 0x207   : > { %3350 = vmatprep.subr.mxu0 %v7713_v1 }
 0x209   : > { %3386 = vmatpush3.xpose.msk.msra.mxu1 %vm275_vm0, %v7756_v16 }
 0x20a   : > { %3351 = vmatpush3.xpose.msk.msra.mxu0 %vm275_vm0, %v7757_v2  ;;  %3387 = vmatprep.subr.mxu1 %v7713_v1  ;;  %v7779_v2 = vld [vmem:[#allocation64_spill] sm:$0xff] }
 0x20b   : > { %3352 = vmatprep.subr.mxu0 %v7713_v1 }
 0x20c   : > { %v1885_v5 = vpop.xlane.xlu1 %1884 }
 0x20d   : > { %3388 = vmatpush3.xpose.msk.msra.mxu1 %vm275_vm0, %v7758_v6  ;;  %3630 = vrcp.f32 %v1885_v5  ;;  %v7797_v5 = vld [vmem:[#allocation116_spill] sm:$0xff] }
 0x20e   : > { %3353 = vmatpush3.xpose.msk.msra.mxu0 %vm275_vm0, %v7759_v53  ;;  %3389 = vmatprep.subr.mxu1 %v7713_v1  ;;  %v7780_v53 = vld [vmem:[#allocation75_spill] sm:$0xff] }
 0x20f   : > { %3354 = vmatprep.subr.mxu0 %v7713_v1 }
 0x210   : > { %v6634_v46 = vpop.eup %3628 }
 0x211   : > { %3390 = vmatpush3.xpose.msk.msra.mxu1 %vm275_vm0, %v7760_v62  ;;  %v1889_v19 = vsel %vm275_vm0, %v6634_v46, 0.0  ;;  %v7781_v62 = vld [vmem:[#allocation19_spill] sm:$0xff] }
 0x212   : > { %3355 = vmatpush3.xpose.msk.msra.mxu0 %vm275_vm0, %v7761_v28  ;;  %3391 = vmatprep.subr.mxu1 %v7713_v1 }
 0x213   : > { %1890 = vadd.xlane.f32.xlu1 %v1889_v19  ;;  %3356 = vmatprep.subr.mxu0 %v7713_v1 }
 0x215   : > { %3392 = vmatpush3.xpose.msk.msra.mxu1 %vm275_vm0, %v7762_v40 }
 0x216   : > { %3357 = vmatpush3.xpose.msk.msra.mxu0 %vm275_vm0, %v7763_v35  ;;  %3393 = vmatprep.subr.mxu1 %v7713_v1 }
 0x217   : > { %3358 = vmatprep.subr.mxu0 %v7713_v1 }
 0x219   : > { %3394 = vmatpush3.xpose.msk.msra.mxu1 %vm275_vm0, %v7764_v38 }
 0x21a   : > { %3359 = vmatpush3.xpose.msk.msra.mxu0 %vm275_vm0, %v7765_v45  ;;  %3395 = vmatprep.subr.mxu1 %v7713_v1  ;;  %v3631_v6 = vpop.eup %3630  ;;  %v7788_v45 = vld [vmem:[#allocation121_spill] sm:$0xff] }
 0x21b   : > { %3360 = vmatprep.subr.mxu0 %v7713_v1  ;;  %v1911_v19 = vmul.f32 %v3631_v6, %v6337_v34 }
 0x21d   : > { %3396 = vmatpush3.xpose.msk.msra.mxu1 %vm275_vm0, %v7766_v50  ;;  %v7792_v50 = vld [vmem:[#allocation22_spill] sm:$0xff] }
 0x21e   : > { %3361 = vmatpush3.xpose.msk.msra.mxu0 %vm275_vm0, %v7767_v26  ;;  %3397 = vmatprep.subr.mxu1 %v7713_v1  ;;  %v7794_v26 = vld [vmem:[#allocation40_spill] sm:$0xff] }
 0x21f   : > { %3362 = vmatprep.subr.mxu0 %v7713_v1 }
 0x221   : > { %3398 = vmatpush3.xpose.msk.msra.mxu1 %vm275_vm0, %v7768_v61 }
 0x222   : > { %3363 = vmatpush3.xpose.msk.msra.mxu0 %vm275_vm0, %v7769_v36  ;;  %3399 = vmatprep.subr.mxu1 %v7713_v1 }
 0x223   : > { %3364 = vmatprep.subr.mxu0 %v7713_v1 }
 0x225   : > { %3400 = vmatpush3.xpose.msk.msra.mxu1 %vm275_vm0, %v7770_v27  ;;  %v7795_v27 = vld [vmem:[#allocation117_spill] sm:$0xff] }
 0x226   : > { %3365 = vmatpush3.xpose.msk.msra.mxu0 %vm275_vm0, %v7771_v23  ;;  %3401 = vmatprep.subr.mxu1 %v7713_v1  ;;  %v7796_v23 = vld [vmem:[#allocation39_spill] sm:$0xff] }
 0x227   : > { %3366 = vmatprep.subr.mxu0 %v7713_v1 }
 0x229   : > { %3402 = vmatpush3.xpose.msk.msra.mxu1 %vm275_vm0, %v7772_v39  ;;  %v7798_v39 = vld [vmem:[#allocation86_spill] sm:$0xff] }
 0x22a   : > { %3367 = vmatpush3.xpose.msk.msra.mxu0 %vm275_vm0, %v7773_v49  ;;  %3403 = vmatprep.subr.mxu1 %v7713_v1  ;;  %v7799_v49 = vld [vmem:[#allocation115_spill] sm:$0xff] }
 0x22b   : > { %3368 = vmatprep.subr.mxu0 %v7713_v1  ;;  %v1849_v25 = vpop.xlane.xlu1 %1848 }
 0x22c   : > { %v1859_v33 = vsub.f32 %v6460_v10, %v1849_v25  ;;  %v7778_v10 = vld [vmem:[#allocation37_spill] sm:$0xff] }
 0x22d   : > { %3404 = vmatpush3.xpose.msk.msra.mxu1 %vm275_vm0, %v7774_v0  ;;  %v7800_v25 = vld [vmem:[#allocation85_spill] sm:$0xff]  ;;  %v7801_v0 = vld [vmem:[#allocation114_spill] sm:$0xff] }
 0x22e   : > { %3369 = vmatpush3.xpose.msk.msra.mxu0 %vm275_vm0, %v7775_v21  ;;  %3405 = vmatprep.subr.mxu1 %v7713_v1  ;;  %v1873_v41 = vmul.f32 1.442695, %v1859_v33  ;;  %v7802_v33 = vld [vmem:[#allocation113_spill] sm:$0xff]  ;;  %v7803_v21 = vld [vmem:[#allocation112_spill] sm:$0xff] }
 0x22f   : > { %3370 = vmatprep.subr.mxu0 %v7713_v1 }
 0x230   : > { %3632 = vpow2.f32 %v1873_v41 }
 0x231   : > { %3406 = vmatpush3.xpose.msk.msra.mxu1 %vm275_vm0, %v7776_v18 }
 0x232   : > { %3371 = vmatpush3.xpose.msk.msra.mxu0 %vm275_vm0, %v7777_v37  ;;  %3407 = vmatprep.subr.mxu1 %v7713_v1 }
 0x233   : > { %3372 = vmatprep.subr.mxu0 %v7713_v1 }
 0x235   : > { %3408 = vmatpush3.xpose.msk.msra.mxu1 %vm275_vm0, %v7778_v10 }
 0x236   : > { %3373 = vmatpush3.xpose.msk.msra.mxu0 %vm275_vm0, %v7779_v2  ;;  %3409 = vmatprep.subr.mxu1 %v7713_v1 }
 0x237   : > { %3374 = vmatprep.subr.mxu0 %v7713_v1 }
 0x238   : > { %v1888_v16 = vpop.xlane.xlu0 %1887 }
 0x239   : > { %3634 = vrcp.f32 %v1888_v16  ;;  %3410 = vmatpush3.xpose.msk.msra.mxu1 %vm275_vm0, %v7780_v53 }
 0x23a   : > { %3375 = vmatpush3.xpose.msk.msra.mxu0 %vm275_vm0, %v7781_v62  ;;  %3449 = vmatprep.subr.mxu1 %v7713_v1 }
 0x23b   : > { %3414 = vmatprep.subr.mxu0 %v7713_v1 }
 0x23d   : > { %3377 = vmatmul.mubr.msk.f32.vlgmr.msra.gmra.mxu0 %vm275_vm0, %v1911_v19  ;;  %v6711_v28 = vpop.eup %3632 }
 0x23e   : > { %3415 = vmatpush3.xpose.msk.msra.mxu0 %vm275_vm0, %v6156_v48  ;;  %3446 = vmatprep.mubr.msk.f32.mxu0 %vm3724_vm1, %v7713_v1  ;;  %v1895_v40 = vsel %vm275_vm0, %v6711_v28, 0.0  ;;  %v7782_v48 = vld [vmem:[#allocation134_spill] sm:$0xff] }
 0x23f   : > { %3416 = vmatprep.subr.mxu0 %v7713_v1  ;;  %1896 = vadd.xlane.f32.xlu1 %v1895_v40 }
 0x242   : > { %3417 = vmatpush3.xpose.msk.msra.mxu0 %vm275_vm0, %v6135_v15  ;;  %v7783_v15 = vld [vmem:[#allocation131_spill] sm:$0xff] }
 0x243   : > { %3418 = vmatprep.subr.mxu0 %v7713_v1 }
 0x246   : > { %v3635_v34 = vpop.eup %3634  ;;  %3419 = vmatpush3.xpose.msk.msra.mxu0 %vm275_vm0, %v6121_v54  ;;  %v7784_v54 = vld [vmem:[#allocation129_spill] sm:$0xff] }
 0x247   : > { %v1912_v35 = vmul.f32 %v3635_v34, %v6502_v52  ;;  %3420 = vmatprep.subr.mxu0 %v7713_v1 }
 0x249   : > { %3412 = vmatmul.mubr.msk.f32.vlgmr.msra.gmra.mxu1 %vm275_vm0, %v1912_v35 }
 0x24a   : > { %3450 = vmatpush3.xpose.msk.msra.mxu1 %vm275_vm0, %v7782_v48  ;;  %3481 = vmatprep.mubr.msk.f32.mxu1 %vm3724_vm1, %v7713_v1 }
 0x24b   : > { %3451 = vmatprep.subr.mxu1 %v7713_v1  ;;  %3421 = vmatpush3.xpose.msk.msra.mxu0 %vm275_vm0, %v6109_v56  ;;  %v7785_v56 = vld [vmem:[#allocation125_spill] sm:$0xff] }
 0x24c   : > { %3422 = vmatprep.subr.mxu0 %v7713_v1 }
 0x24e   : > { %3452 = vmatpush3.xpose.msk.msra.mxu1 %vm275_vm0, %v7783_v15 }
 0x24f   : > { %3453 = vmatprep.subr.mxu1 %v7713_v1  ;;  %3423 = vmatpush3.xpose.msk.msra.mxu0 %vm275_vm0, %v6099_v8  ;;  %v7786_v8 = vld [vmem:[#allocation124_spill] sm:$0xff] }
 0x250   : > { %3424 = vmatprep.subr.mxu0 %v7713_v1 }
 0x252   : > { %3454 = vmatpush3.xpose.msk.msra.mxu1 %vm275_vm0, %v7784_v54 }
 0x253   : > { %3455 = vmatprep.subr.mxu1 %v7713_v1  ;;  %3425 = vmatpush3.xpose.msk.msra.mxu0 %vm275_vm0, %v6075_v20  ;;  %v7787_v20 = vld [vmem:[#allocation122_spill] sm:$0xff] }
 0x254   : > { %3426 = vmatprep.subr.mxu0 %v7713_v1 }
 0x256   : > { %3456 = vmatpush3.xpose.msk.msra.mxu1 %vm275_vm0, %v7785_v56 }
 0x257   : > { %3457 = vmatprep.subr.mxu1 %v7713_v1  ;;  %3427 = vmatpush3.xpose.msk.msra.mxu0 %vm275_vm0, %v6069_v57 }
 0x258   : > { %3428 = vmatprep.subr.mxu0 %v7713_v1 }
 0x25a   : > { %3458 = vmatpush3.xpose.msk.msra.mxu1 %vm275_vm0, %v7786_v8 }
 0x25b   : > { %3459 = vmatprep.subr.mxu1 %v7713_v1  ;;  %3429 = vmatpush3.xpose.msk.msra.mxu0 %vm275_vm0, %v6063_v51  ;;  %v1852_v52 = vpop.xlane.xlu0 %1851  ;;  %v7789_v51 = vld [vmem:[#allocation120_spill] sm:$0xff] }
 0x25c   : > { %3430 = vmatprep.subr.mxu0 %v7713_v1  ;;  %v1860_v57 = vsub.f32 %v6582_v11, %v1852_v52  ;;  %v7791_v11 = vld [vmem:[#allocation119_spill] sm:$0xff] }
 0x25e   : > { %3460 = vmatpush3.xpose.msk.msra.mxu1 %vm275_vm0, %v7787_v20  ;;  %v1875_v38 = vmul.f32 1.442695, %v1860_v57 }
 0x25f   : > { %3461 = vmatprep.subr.mxu1 %v7713_v1  ;;  %3431 = vmatpush3.xpose.msk.msra.mxu0 %vm275_vm0, %v6057_v3  ;;  %v7790_v3 = vld [vmem:[#allocation52_spill] sm:$0xff] }
 0x260   : > { %3432 = vmatprep.subr.mxu0 %v7713_v1  ;;  %3636 = vpow2.f32 %v1875_v38 }
 0x262   : > { %3462 = vmatpush3.xpose.msk.msra.mxu1 %vm275_vm0, %v7788_v45 }
 0x263   : > { %3463 = vmatprep.subr.mxu1 %v7713_v1  ;;  %3433 = vmatpush3.xpose.msk.msra.mxu0 %vm275_vm0, %v6040_v29  ;;  %v7793_v29 = vld [vmem:[#allocation118_spill] sm:$0xff] }
 0x264   : > { %3434 = vmatprep.subr.mxu0 %v7713_v1 }
 0x266   : > { %3464 = vmatpush3.xpose.msk.msra.mxu1 %vm275_vm0, %v7789_v51 }
 0x267   : > { %3465 = vmatprep.subr.mxu1 %v7713_v1  ;;  %3435 = vmatpush3.xpose.msk.msra.mxu0 %vm275_vm0, %v7790_v3 }
 0x268   : > { %3436 = vmatprep.subr.mxu0 %v7713_v1 }
 0x26a   : > { %3466 = vmatpush3.xpose.msk.msra.mxu1 %vm275_vm0, %v7791_v11 }
 0x26b   : > { %3467 = vmatprep.subr.mxu1 %v7713_v1  ;;  %3437 = vmatpush3.xpose.msk.msra.mxu0 %vm275_vm0, %v7792_v50 }
 0x26c   : > { %3438 = vmatprep.subr.mxu0 %v7713_v1 }
 0x26d   : > { %v6786_v61 = vpop.eup %3636 }
 0x26e   : > { %3468 = vmatpush3.xpose.msk.msra.mxu1 %vm275_vm0, %v7793_v29  ;;  %v1898_v36 = vsel %vm275_vm0, %v6786_v61, 0.0 }
 0x26f   : > { %3469 = vmatprep.subr.mxu1 %v7713_v1  ;;  %3439 = vmatpush3.xpose.msk.msra.mxu0 %vm275_vm0, %v7794_v26 }
 0x270   : > { %3440 = vmatprep.subr.mxu0 %v7713_v1  ;;  %1899 = vadd.xlane.f32.xlu0 %v1898_v36 }
 0x272   : > { %3470 = vmatpush3.xpose.msk.msra.mxu1 %vm275_vm0, %v7795_v27 }
 0x273   : > { %3471 = vmatprep.subr.mxu1 %v7713_v1  ;;  %3441 = vmatpush3.xpose.msk.msra.mxu0 %vm275_vm0, %v7796_v23 }
 0x274   : > { %3442 = vmatprep.subr.mxu0 %v7713_v1 }
 0x276   : > { %3472 = vmatpush3.xpose.msk.msra.mxu1 %vm275_vm0, %v7797_v5 }
 0x277   : > { %3473 = vmatprep.subr.mxu1 %v7713_v1  ;;  %3443 = vmatpush3.xpose.msk.msra.mxu0 %vm275_vm0, %v7798_v39 }
 0x278   : > { %3444 = vmatprep.subr.mxu0 %v7713_v1 }
 0x27a   : > { %3474 = vmatpush3.xpose.msk.msra.mxu1 %vm275_vm0, %v7799_v49 }
 0x27b   : > { %3475 = vmatprep.subr.mxu1 %v7713_v1  ;;  %3445 = vmatpush3.xpose.msk.msra.mxu0 %vm275_vm0, %v7800_v25 }
 0x27c   : > { %3484 = vmatprep.subr.mxu0 %v7713_v1 }
 0x27e   : > { %3476 = vmatpush3.xpose.msk.msra.mxu1 %vm275_vm0, %v7801_v0 }
 0x27f   : > { %3477 = vmatprep.subr.mxu1 %v7713_v1 }
 0x282   : > { %3478 = vmatpush3.xpose.msk.msra.mxu1 %vm275_vm0, %v7802_v33 }
 0x283   : > { %3479 = vmatprep.subr.mxu1 %v7713_v1 }
 0x286   : > { %3480 = vmatpush3.xpose.msk.msra.mxu1 %vm275_vm0, %v7803_v21 }
 0x287   : > { %3519 = vmatprep.subr.mxu1 %v7713_v1 }
 0x28c   : > { %v1894_v41 = vpop.xlane.xlu0 %1893 }
 0x28d   : > { %3638 = vrcp.f32 %v1894_v41 }
 0x29a   : > { %v3639_v18 = vpop.eup %3638 }
 0x29b   : > { %v1914_v37 = vmul.f32 %v3639_v18, %v6606_v14 }
 0x29c   : > { %v1891_v10 = vpop.xlane.xlu1 %1890 }
 0x29d   : > { %3640 = vrcp.f32 %v1891_v10  ;;  %3482 = vmatmul.mubr.msk.f32.vlgmr.msra.gmra.mxu1 %vm275_vm0, %v1914_v37 }
 0x29e   : > { %3520 = vmatpush3.xpose.msk.msra.mxu1 %vm275_vm0, %v6569_v31  ;;  %3551 = vmatprep.mubr.msk.f32.mxu1 %vm3724_vm1, %v7713_v1 }
 0x29f   : > { %3521 = vmatprep.subr.mxu1 %v7713_v1 }
 0x2a2   : > { %3522 = vmatpush3.xpose.msk.msra.mxu1 %vm275_vm0, %v6563_v17 }
 0x2a3   : > { %3523 = vmatprep.subr.mxu1 %v7713_v1 }
 0x2a6   : > { %3524 = vmatpush3.xpose.msk.msra.mxu1 %vm275_vm0, %v6557_v59  ;;  %v7814_v59 = vld [vmem:[#allocation60_spill] sm:$0xff] }
 0x2a7   : > { %3525 = vmatprep.subr.mxu1 %v7713_v1 }
 0x2aa   : > { %v3641_v14 = vpop.eup %3640  ;;  %3526 = vmatpush3.xpose.msk.msra.mxu1 %vm275_vm0, %v6549_v44  ;;  %v7813_v44 = vld [vmem:[#allocation61_spill] sm:$0xff] }
 0x2ab   : > { %v1913_v31 = vmul.f32 %v3641_v14, %v6634_v46  ;;  %3527 = vmatprep.subr.mxu1 %v7713_v1  ;;  %v7815_v46 = vld [vmem:[#allocation53_spill] sm:$0xff] }
 0x2ad   : > { %3447 = vmatmul.mubr.msk.f32.vlgmr.msra.gmra.mxu0 %vm275_vm0, %v1913_v31 }
 0x2ae   : > { %3485 = vmatpush3.xpose.msk.msra.mxu0 %vm275_vm0, %v6408_v22  ;;  %3528 = vmatpush3.xpose.msk.msra.mxu1 %vm275_vm0, %v6541_v4  ;;  %v7812_v4 = vld [vmem:[#allocation77_spill] sm:$0xff] }
 0x2af   : > { %3486 = vmatprep.subr.mxu0 %v7713_v1  ;;  %3529 = vmatprep.subr.mxu1 %v7713_v1 }
 0x2b0   : > { %3516 = vmatprep.mubr.msk.f32.mxu0 %vm3724_vm1, %v7713_v1 }
 0x2b2   : > { %3487 = vmatpush3.xpose.msk.msra.mxu0 %vm275_vm0, %v6400_v60  ;;  %3530 = vmatpush3.xpose.msk.msra.mxu1 %vm275_vm0, %v6533_v30 }
 0x2b3   : > { %3488 = vmatprep.subr.mxu0 %v7713_v1  ;;  %3531 = vmatprep.subr.mxu1 %v7713_v1 }
 0x2b6   : > { %3489 = vmatpush3.xpose.msk.msra.mxu0 %vm275_vm0, %v6390_v55  ;;  %3532 = vmatpush3.xpose.msk.msra.mxu1 %vm275_vm0, %v6525_v43 }
 0x2b7   : > { %3490 = vmatprep.subr.mxu0 %v7713_v1  ;;  %3533 = vmatprep.subr.mxu1 %v7713_v1 }
 0x2ba   : > { %3491 = vmatpush3.xpose.msk.msra.mxu0 %vm275_vm0, %v6378_v12  ;;  %3534 = vmatpush3.xpose.msk.msra.mxu1 %vm275_vm0, %v6517_v32  ;;  %v7809_v32 = vld [vmem:[#allocation56_spill] sm:$0xff] }
 0x2bb   : > { %3492 = vmatprep.subr.mxu0 %v7713_v1  ;;  %3535 = vmatprep.subr.mxu1 %v7713_v1 }
 0x2bc   : > { %v2155_v60 = vpop.f32.mrf.mxu1 }
 0x2bd   : > { %v2034_v55 = vpop.f32.mrf.mxu0  ;;  %v2893_v22 = vrot.slane %v2155_v60, 7 }
 0x2be   : > { %3493 = vmatpush3.xpose.msk.msra.mxu0 %vm275_vm0, %v6366_v24  ;;  %3536 = vmatpush3.xpose.msk.msra.mxu1 %vm275_vm0, %v6509_v42  ;;  %v3343_v43 = vpop.f32.mrf.mxu1  ;;  %v7808_v24 = vld [vmem:[#allocation80_spill] sm:$0xff] }
 0x2bf   : > { %3494 = vmatprep.subr.mxu0 %v7713_v1  ;;  %v2895_v12 = vsel %vm2894_vm2, %v2893_v22, %v2034_v55  ;;  %v3308_v30 = vpop.f32.mrf.mxu0  ;;  %3537 = vmatprep.subr.mxu1 %v7713_v1  ;;  %v7811_v42 = vld [vmem:[#allocation68_spill] sm:$0xff] }
 0x2c2   : > { %3495 = vmatpush3.xpose.msk.msra.mxu0 %vm275_vm0, %v6354_v63  ;;  %3538 = vmatpush3.xpose.msk.msra.mxu1 %vm275_vm0, %v6497_v47  ;;  %v7804_v47 = vld [vmem:[#allocation59_spill] sm:$0xff]  ;;  %v7806_v63 = vld [vmem:[#allocation69_spill] sm:$0xff] }
 0x2c3   : > { %3496 = vmatprep.subr.mxu0 %v7713_v1  ;;  %3539 = vmatprep.subr.mxu1 %v7713_v1 }
 0x2c6   : > { %3497 = vmatpush3.xpose.msk.msra.mxu0 %vm275_vm0, %v6340_v7  ;;  %3540 = vmatpush3.xpose.msk.msra.mxu1 %vm275_vm0, %v6488_v58  ;;  %v7805_v7 = vld [vmem:[#allocation55_spill] sm:$0xff]  ;;  %v7810_v58 = vld [vmem:[#allocation28_spill] sm:$0xff] }
 0x2c7   : > { %3498 = vmatprep.subr.mxu0 %v7713_v1  ;;  %3541 = vmatprep.subr.mxu1 %v7713_v1 }
 0x2ca   : > { %3499 = vmatpush3.xpose.msk.msra.mxu0 %vm275_vm0, %v6328_v9  ;;  %3542 = vmatpush3.xpose.msk.msra.mxu1 %vm275_vm0, %v6481_v13  ;;  %v7807_v9 = vld [vmem:[#allocation67_spill] sm:$0xff]  ;;  %v1897_v13 = vpop.xlane.xlu1 %1896 }
 0x2cb   : > { %3500 = vmatprep.subr.mxu0 %v7713_v1  ;;  %3543 = vmatprep.subr.mxu1 %v7713_v1  ;;  %3642 = vrcp.f32 %v1897_v13 }
 0x2ce   : > { %3501 = vmatpush3.xpose.msk.msra.mxu0 %vm275_vm0, %v7804_v47  ;;  %3544 = vmatpush3.xpose.msk.msra.mxu1 %vm275_vm0, %v7805_v7 }
 0x2cf   : > { %3502 = vmatprep.subr.mxu0 %v7713_v1  ;;  %3545 = vmatprep.subr.mxu1 %v7713_v1 }
 0x2d2   : > { %3503 = vmatpush3.xpose.msk.msra.mxu0 %vm275_vm0, %v7806_v63  ;;  %3546 = vmatpush3.xpose.msk.msra.mxu1 %vm275_vm0, %v7807_v9 }
 0x2d3   : > { %3504 = vmatprep.subr.mxu0 %v7713_v1  ;;  %3547 = vmatprep.subr.mxu1 %v7713_v1 }
 0x2d6   : > { %3505 = vmatpush3.xpose.msk.msra.mxu0 %vm275_vm0, %v7808_v24  ;;  %3548 = vmatpush3.xpose.msk.msra.mxu1 %vm275_vm0, %v7809_v32 }
 0x2d7   : > { %3506 = vmatprep.subr.mxu0 %v7713_v1  ;;  %3549 = vmatprep.subr.mxu1 %v7713_v1 }
 0x2d8   : > { %v3643_v17 = vpop.eup %3642 }
 0x2d9   : > { %v1915_v16 = vmul.f32 %v3643_v17, %v6711_v28 }
 0x2da   : > { %3507 = vmatpush3.xpose.msk.msra.mxu0 %vm275_vm0, %v7810_v58  ;;  %3550 = vmatpush3.xpose.msk.msra.mxu1 %vm275_vm0, %v7811_v42 }
 0x2db   : > { %3508 = vmatprep.subr.mxu0 %v7713_v1 }
 0x2de   : > { %3509 = vmatpush3.xpose.msk.msra.mxu0 %vm275_vm0, %v7812_v4 }
 0x2df   : > { %3510 = vmatprep.subr.mxu0 %v7713_v1 }
 0x2e2   : > { %3511 = vmatpush3.xpose.msk.msra.mxu0 %vm275_vm0, %v7813_v44 }
 0x2e3   : > { %3512 = vmatprep.subr.mxu0 %v7713_v1 }
 0x2e6   : > { %3513 = vmatpush3.xpose.msk.msra.mxu0 %vm275_vm0, %v7814_v59 }
 0x2e7   : > { %3514 = vmatprep.subr.mxu0 %v7713_v1 }
 0x2ea   : > { %3515 = vmatpush3.xpose.msk.msra.mxu0 %vm275_vm0, %v7815_v46 }
 0x2ed   : > { %3517 = vmatmul.mubr.msk.f32.vlgmr.msra.gmra.mxu0 %vm275_vm0, %v1915_v16 }
 0x2f9   : > { %v1900_v2 = vpop.xlane.xlu0 %1899 }
 0x2fa   : > { %3644 = vrcp.f32 %v1900_v2 }
 0x2fd   : > { %v2276_v6 = vpop.f32.mrf.mxu0 }
 0x2fe   : > { %v2896_v53 = vrot.slane %v2276_v6, 6 }
 0x2ff   : > { %v3378_v62 = vpop.f32.mrf.mxu0 }
 0x300   : > { %v2898_v19 = vsel %vm2897_vm3, %v2896_v53, %v2895_v12 }
 0x307   : > { %v3645_v34 = vpop.eup %3644 }
 0x308   : > { %v1916_v1 = vmul.f32 %v3645_v34, %v6786_v61 }
 0x309   : > { %v2397_v40 = vpop.f32.mrf.mxu1 }
 0x30a   : > { %v2899_v35 = vrot.slane %v2397_v40, 5  ;;  %3552 = vmatmul.mubr.msk.f32.vlgmr.msra.gmra.mxu1 %vm275_vm0, %v1916_v1 }
 0x30b   : > { %v3413_v48 = vpop.f32.mrf.mxu1 }
 0x30c   : > { %v2901_v15 = vsel %vm2900_vm4, %v2899_v35, %v2898_v19 }
 0x35d   : > { %v2639_v28 = vpop.f32.mrf.mxu1 }
 0x35e   : > { %v2905_v8 = vrot.slane %v2639_v28, 3 }
 0x35f   : > { %v3483_v54 = vpop.f32.mrf.mxu1 }
 0x36d   : > { %v2518_v56 = vpop.f32.mrf.mxu0 }
 0x36e   : > { %v2902_v20 = vrot.slane %v2518_v56, 4 }
 0x36f   : > { %v3448_v52 = vpop.f32.mrf.mxu0 }
 0x370   : > { %v2904_v57 = vsel %vm2903_vm5, %v2902_v20, %v2901_v15 }
 0x371   : > { %v2907_v38 = vsel %vm2906_vm6, %v2905_v8, %v2904_v57 }
 0x3ad   : > { %v2760_v45 = vpop.f32.mrf.mxu0 }
 0x3ae   : > { %v2908_v3 = vrot.slane %v2760_v45, 2 }
 0x3af   : > { %v3518_v51 = vpop.f32.mrf.mxu0 }
 0x3b0   : > { %v2910_v11 = vsel %vm2909_vm7, %v2908_v3, %v2907_v38 }
 0x3ca   : > { %v2881_v50 = vpop.f32.mrf.mxu1 }
 0x3cb   : > { %v2911_v29 = vrot.slane %v2881_v50, 1 }
 0x3cc   : > { %v3553_v26 = vpop.f32.mrf.mxu1 }
 0x3cd   : > { %v2913_v61 = vsel %vm2912_vm8, %v2911_v29, %v2910_v11 }
 0x3ce   : > { %2915 = vst [vmem:[%s139_s23] sm:$0xff] %v2913_v61 }
 0x3cf   : > { %3673 = shalt.err (!%p3670_p3)
}
 0x3d0   : > { %s3674_s4 = scalar_lea.hbm %s6929_s27, 128  ;;  %s3678_s7 = scalar_lea.hbm %s6966_s2, 512 }
 0x3d1   : > { %p3675_p4 = scmp.ne.s32.totalorder %s6929_s27, %s3674_s4  ;;  %p3679_p9 = scmp.lt.s32.totalorder %s6929_s27, %s6966_s2 }
 0x3d2   : > { %p3680_p10 = scmp.lt.s32.totalorder %s3678_s7, %s3674_s4 }
 0x3d3   : > { %p3676_p7 = pnand %p3675_p4, %p3779_p5 }
 0x3d4   : > { %p3681_p11 = por %p3680_p10, %p3679_p9 }
 0x3d5   : > { %p3677_p8 = pneg %p3676_p7 }
 0x3d7   : > { %p3682_p12 = pnand %p3681_p11, %p3677_p8 }
 0x3d9   : > { %3685 = shalt.err (!%p3682_p12)
}
 0x3da   : > { %3554 = dma.vmem_to_hbm [thread:$0]  (%p3779_p5), %s2931_s24, 128, %s6929_s27, %s2917_s28  }
 0x3db PF: > { %p3560_p13 = scmp.ge.s32.totalorder %s3720_s12, 2  ;;  %s2942_s17 = sand.u32 1, %s3708_s9  }
 0x3dc   : > { %s2943_s14 = scalar_lea.sflag [#allocation3], %s2942_s17 }
 0x3dd   : > { %p3557_p0 = pnand %p3560_p13, %p3783_p6 }
 0x3df   : > { %p3558_p1 = pneg %p3557_p0 }
 0x3e1   : > { %3703 = dma.done.wait (%p3558_p1), %s2943_s14, 128  }
 0x3e2   : > { %3705 = vsyncadd (%p3558_p1), %s2943_s14, 4294967168  ;;  %p12_p2 = scmp.ge.s32.totalorder %s3766_s15, 6   ;;  %s7816_s9 = smov %s3712_s10 }
 0x3e3   : > { %s7817_s10 = smov %s3716_s11  ;;  %s7818_s11 = smov %s3777_s18 }
 0x3e4   : > { %s7819_s12 = smov %s3766_s15  ;;  %14 = sbr.rel (!%p12_p2) target bundleno = 3 (0x3), region = 63 }
 0x3e9   :  { %2948 = vsyncpa [#allocation3], 1 }
 0x3ea   :  { %2950 = vsyncpa [#allocation3 + $0x1], 1 }

</bundles_post_ra>
